<compile_context>
chip_gen: v5e
topology: v5e:2x2
jax: 0.10.0
libtpu: 0.0.40
codegen_flags: <defaults>
</compile_context>

<pallas_src>
import jax
import jax.numpy as jnp
from jax.experimental import pallas as pl
from jax.experimental.pallas import tpu as pltpu


LANE = 128
NEG_MASK = -1e30  # finite mask for padded class lanes (exp underflows to 0; never use -inf here)


def _mlp_kernel(x_ref,
                w1_ref, b1_ref,
                w2_ref, b2_ref,
                w3_ref, b3_ref,
                w4_ref, b4_ref,
                w5_ref, b5_ref,
                o_ref):
    # Layer 1: Linear(384, 256) + ReLU   (x is bf16, zero-padded 310 -> 384)
    h = jnp.dot(x_ref[...], w1_ref[...],
                preferred_element_type=jnp.float32) + b1_ref[...]
    h = jnp.maximum(h, 0.0)

    # Layer 2: Linear(256, 128) + ReLU
    h = jnp.dot(h.astype(jnp.bfloat16), w2_ref[...],
                preferred_element_type=jnp.float32) + b2_ref[...]
    h = jnp.maximum(h, 0.0)

    # Layer 3: Linear(128, 128) + ReLU   (64 -> padded to 128, zero cols)
    h = jnp.dot(h.astype(jnp.bfloat16), w3_ref[...],
                preferred_element_type=jnp.float32) + b3_ref[...]
    h = jnp.maximum(h, 0.0)

    # Layer 4: Linear(128, 128) + ReLU   (32 -> padded to 128, zero cols)
    h = jnp.dot(h.astype(jnp.bfloat16), w4_ref[...],
                preferred_element_type=jnp.float32) + b4_ref[...]
    h = jnp.maximum(h, 0.0)

    # Layer 5: Linear(128, 128) + Softmax.  Padded class lanes already carry
    # bias = -1e30 (class mask folded into b5), so no iota/where is needed.
    logits = jnp.dot(h.astype(jnp.bfloat16), w5_ref[...],
                     preferred_element_type=jnp.float32) + b5_ref[...]
    m = jnp.max(logits, axis=-1, keepdims=True)
    e = jnp.exp(logits - m)
    denom = jnp.sum(e, axis=-1, keepdims=True)
    o_ref[...] = (e * pl.reciprocal(denom, approx=True)).astype(o_ref.dtype)


def _round_up(n, m):
    return ((n + m - 1) // m) * m


def _pad2d(a, rows, cols, fill=0.0, dtype=None):
    dtype = a.dtype if dtype is None else dtype
    r, c = a.shape
    out = jnp.full((rows, cols), fill, dtype)
    return out.at[:r, :c].set(a.astype(dtype))


def _choose_tile_b(batch):
    """Adaptive batch tile: large enough to amortize per-step overhead and fill
    the 256-wide MXU M-dim, capped so big batches keep >=2 parallel grid steps
    (v7x megacore sharding).  Always a multiple of 128 (sublane/lane rules)."""
    b_aligned = _round_up(batch, 256)
    tile = min(1024, b_aligned)
    if b_aligned >= 512 and b_aligned // tile < 2:
        tile = _round_up(max(256, b_aligned // 2), 128)
    return tile


def mlp_forward(x, params, tile_b=None):
    """x: (B, 310) float32; params: list of (W(in,out) f32, b(1,out) f32)."""
    B, F = x.shape
    num_classes = params[-1][0].shape[1]
    n_layers = len(params)

    # Lane-dense padded layer dims.
    in_dims = [F] + [w.shape[1] for w, _ in params[:-1]]
    out_dims = [w.shape[1] for w, _ in params]
    pad_in = [_round_up(d, LANE) for d in in_dims]
    pad_out = [_round_up(d, LANE) for d in out_dims]

    if tile_b is None:
        tile_b = _choose_tile_b(B)
    B_pad = _round_up(B, tile_b)
    F_pad = pad_in[0]
    C_pad = pad_out[-1]

    # Ship x as bf16: the pad already materializes a fresh array, so the cast
    # is free and halves the kernel's dominant input DMA stream.
    x_p = _pad2d(x, B_pad, F_pad, dtype=jnp.bfloat16)

    flat_args = [x_p]
    in_specs = [pl.BlockSpec((tile_b, F_pad), lambda i: (i, 0))]
    for k, (w, b) in enumerate(params):
        w_p = _pad2d(w, pad_in[k], pad_out[k], dtype=jnp.bfloat16)
        # Last layer: fold the class mask into the bias -> padded class lanes
        # get -1e30 (padded W5 columns are zero), so softmax prob there is 0.
        fill = NEG_MASK if k == n_layers - 1 else 0.0
        b_p = _pad2d(b, 1, pad_out[k], fill=fill, dtype=jnp.float32)
        flat_args.append(w_p)
        flat_args.append(b_p)
        # Weights / biases: whole array resident across all grid steps.
        in_specs.append(pl.BlockSpec(w_p.shape, lambda i: (0, 0)))
        in_specs.append(pl.BlockSpec(b_p.shape, lambda i: (0, 0)))

    out = pl.pallas_call(
        _mlp_kernel,
        out_shape=jax.ShapeDtypeStruct((B_pad, C_pad), jnp.float32),
        grid_spec=pl.GridSpec(
            grid=(B_pad // tile_b,),
            in_specs=in_specs,
            out_specs=pl.BlockSpec((tile_b, C_pad), lambda i: (i, 0)),
        ),
        compiler_params=pltpu.CompilerParams(
            dimension_semantics=("parallel",),
        ),
    )(*flat_args)

    return out[:B, :num_classes]


def init_params(key, sizes):
    """nn.Linear-style init U(-1/sqrt(fan_in), 1/sqrt(fan_in)).

    Weights stored as (in, out) — transposed vs. PyTorch's (out, in)."""
    params = []
    for fan_in, fan_out in zip(sizes[:-1], sizes[1:]):
        key, kw, kb = jax.random.split(key, 3)
        bound = 1.0 / jnp.sqrt(fan_in)
        w = jax.random.uniform(kw, (fan_in, fan_out), jnp.float32, -bound, bound)
        b = jax.random.uniform(kb, (1, fan_out), jnp.float32, -bound, bound)
        params.append((w, b))
    return params


def mlp_reference(x, params):
    """Pure-JAX reference with the same bf16 input/weight quantization as the kernel."""
    h = x.astype(jnp.float32)
    n = len(params)
    for idx, (w, b) in enumerate(params):
        h = jnp.dot(h.astype(jnp.bfloat16), w.astype(jnp.bfloat16),
                    preferred_element_type=jnp.float32) + b
        if idx < n - 1:
            h = jnp.maximum(h, 0.0)
    return jax.nn.softmax(h, axis=1)


if __name__ == "__main__":
    key = jax.random.PRNGKey(0)
    key, kx = jax.random.split(key)

    B, input_size, num_classes = 8, 310, 3
    sizes = [input_size, 256, 128, 64, 32, num_classes]

    x = jax.random.normal(kx, (B, input_size), dtype=jnp.float32)
    params = init_params(key, sizes)

    out = mlp_forward(x, params)
    out = jax.block_until_ready(out)

    # sanity: shape, softmax rows sum to 1, matches reference math
    assert out.shape == (B, num_classes)
    assert jnp.allclose(jnp.sum(out, axis=1), 1.0, atol=1e-2)
    ref = mlp_reference(x, params)
    assert jnp.allclose(out, ref, atol=1e-2)

    print("KERNEL_OK")
</pallas_src>

<mosaic_0001>
module attributes {stable_mosaic.version = 11 : i64} {
  func.func @_mlp_kernel(%arg0: i32, %arg1: memref<256x384xbf16, #tpu.memory_space<vmem>>, %arg2: memref<384x256xbf16, #tpu.memory_space<vmem>>, %arg3: memref<1x256xf32, #tpu.memory_space<vmem>>, %arg4: memref<256x128xbf16, #tpu.memory_space<vmem>>, %arg5: memref<1x128xf32, #tpu.memory_space<vmem>>, %arg6: memref<128x128xbf16, #tpu.memory_space<vmem>>, %arg7: memref<1x128xf32, #tpu.memory_space<vmem>>, %arg8: memref<128x128xbf16, #tpu.memory_space<vmem>>, %arg9: memref<1x128xf32, #tpu.memory_space<vmem>>, %arg10: memref<128x128xbf16, #tpu.memory_space<vmem>>, %arg11: memref<1x128xf32, #tpu.memory_space<vmem>>, %arg12: memref<256x128xf32, #tpu.memory_space<vmem>>) attributes {dimension_semantics = [#tpu.dimension_semantics<parallel>], iteration_bounds = array<i64: 1>, scalar_prefetch = 0 : i64, scratch_operands = 0 : i64, tpu.core_type = #tpu.core_type<tc>, window_params = [{transform_indices = @transform_0, window_bounds = array<i64: 256, 384>}, {pipeline_mode = #tpu.pipeline_mode<synchronous>, transform_indices = @transform_1, window_bounds = array<i64: 384, 256>}, {pipeline_mode = #tpu.pipeline_mode<synchronous>, transform_indices = @transform_2, window_bounds = array<i64: 1, 256>}, {pipeline_mode = #tpu.pipeline_mode<synchronous>, transform_indices = @transform_3, window_bounds = array<i64: 256, 128>}, {pipeline_mode = #tpu.pipeline_mode<synchronous>, transform_indices = @transform_4, window_bounds = array<i64: 1, 128>}, {pipeline_mode = #tpu.pipeline_mode<synchronous>, transform_indices = @transform_5, window_bounds = array<i64: 128, 128>}, {pipeline_mode = #tpu.pipeline_mode<synchronous>, transform_indices = @transform_6, window_bounds = array<i64: 1, 128>}, {pipeline_mode = #tpu.pipeline_mode<synchronous>, transform_indices = @transform_7, window_bounds = array<i64: 128, 128>}, {pipeline_mode = #tpu.pipeline_mode<synchronous>, transform_indices = @transform_8, window_bounds = array<i64: 1, 128>}, {pipeline_mode = #tpu.pipeline_mode<synchronous>, transform_indices = @transform_9, window_bounds = array<i64: 128, 128>}, {pipeline_mode = #tpu.pipeline_mode<synchronous>, transform_indices = @transform_10, window_bounds = array<i64: 1, 128>}, {transform_indices = @transform_11, window_bounds = array<i64: 256, 128>}]} {
    %c0 = arith.constant 0 : index
    %c0_0 = arith.constant 0 : index
    %0 = vector.load %arg1[%c0, %c0_0] : memref<256x384xbf16, #tpu.memory_space<vmem>>, vector<256x384xbf16>
    %c0_1 = arith.constant 0 : index
    %c0_2 = arith.constant 0 : index
    %1 = vector.load %arg2[%c0_1, %c0_2] : memref<384x256xbf16, #tpu.memory_space<vmem>>, vector<384x256xbf16>
    %cst = arith.constant dense<0.000000e+00> : vector<256x256xf32>
    %2 = tpu.matmul %0, %1, %cst {dimension_numbers = #tpu.dot_dimension_numbers<[1], [0], [0], [1], [0, 0, 1, 1], [], []>} : vector<256x384xbf16>, vector<384x256xbf16>, vector<256x256xf32> -> vector<256x256xf32>
    %c0_3 = arith.constant 0 : index
    %c0_4 = arith.constant 0 : index
    %3 = vector.load %arg3[%c0_3, %c0_4] : memref<1x256xf32, #tpu.memory_space<vmem>>, vector<1x256xf32>
    %4 = vector.broadcast %3 : vector<1x256xf32> to vector<256x256xf32>
    %5 = arith.addf %2, %4 : vector<256x256xf32>
    %cst_5 = arith.constant 0.000000e+00 : f32
    %6 = vector.broadcast %cst_5 : f32 to vector<256x256xf32>
    %7 = arith.maximumf %5, %6 : vector<256x256xf32>
    %8 = arith.truncf %7 : vector<256x256xf32> to vector<256x256xbf16>
    %c0_6 = arith.constant 0 : index
    %c0_7 = arith.constant 0 : index
    %9 = vector.load %arg4[%c0_6, %c0_7] : memref<256x128xbf16, #tpu.memory_space<vmem>>, vector<256x128xbf16>
    %cst_8 = arith.constant dense<0.000000e+00> : vector<256x128xf32>
    %10 = tpu.matmul %8, %9, %cst_8 {dimension_numbers = #tpu.dot_dimension_numbers<[1], [0], [0], [1], [0, 0, 1, 1], [], []>} : vector<256x256xbf16>, vector<256x128xbf16>, vector<256x128xf32> -> vector<256x128xf32>
    %c0_9 = arith.constant 0 : index
    %c0_10 = arith.constant 0 : index
    %11 = vector.load %arg5[%c0_9, %c0_10] : memref<1x128xf32, #tpu.memory_space<vmem>>, vector<1x128xf32>
    %12 = vector.broadcast %11 : vector<1x128xf32> to vector<256x128xf32>
    %13 = arith.addf %10, %12 : vector<256x128xf32>
    %cst_11 = arith.constant 0.000000e+00 : f32
    %14 = vector.broadcast %cst_11 : f32 to vector<256x128xf32>
    %15 = arith.maximumf %13, %14 : vector<256x128xf32>
    %16 = arith.truncf %15 : vector<256x128xf32> to vector<256x128xbf16>
    %c0_12 = arith.constant 0 : index
    %c0_13 = arith.constant 0 : index
    %17 = vector.load %arg6[%c0_12, %c0_13] : memref<128x128xbf16, #tpu.memory_space<vmem>>, vector<128x128xbf16>
    %cst_14 = arith.constant dense<0.000000e+00> : vector<256x128xf32>
    %18 = tpu.matmul %16, %17, %cst_14 {dimension_numbers = #tpu.dot_dimension_numbers<[1], [0], [0], [1], [0, 0, 1, 1], [], []>} : vector<256x128xbf16>, vector<128x128xbf16>, vector<256x128xf32> -> vector<256x128xf32>
    %c0_15 = arith.constant 0 : index
    %c0_16 = arith.constant 0 : index
    %19 = vector.load %arg7[%c0_15, %c0_16] : memref<1x128xf32, #tpu.memory_space<vmem>>, vector<1x128xf32>
    %20 = vector.broadcast %19 : vector<1x128xf32> to vector<256x128xf32>
    %21 = arith.addf %18, %20 : vector<256x128xf32>
    %cst_17 = arith.constant 0.000000e+00 : f32
    %22 = vector.broadcast %cst_17 : f32 to vector<256x128xf32>
    %23 = arith.maximumf %21, %22 : vector<256x128xf32>
    %24 = arith.truncf %23 : vector<256x128xf32> to vector<256x128xbf16>
    %c0_18 = arith.constant 0 : index
    %c0_19 = arith.constant 0 : index
    %25 = vector.load %arg8[%c0_18, %c0_19] : memref<128x128xbf16, #tpu.memory_space<vmem>>, vector<128x128xbf16>
    %cst_20 = arith.constant dense<0.000000e+00> : vector<256x128xf32>
    %26 = tpu.matmul %24, %25, %cst_20 {dimension_numbers = #tpu.dot_dimension_numbers<[1], [0], [0], [1], [0, 0, 1, 1], [], []>} : vector<256x128xbf16>, vector<128x128xbf16>, vector<256x128xf32> -> vector<256x128xf32>
    %c0_21 = arith.constant 0 : index
    %c0_22 = arith.constant 0 : index
    %27 = vector.load %arg9[%c0_21, %c0_22] : memref<1x128xf32, #tpu.memory_space<vmem>>, vector<1x128xf32>
    %28 = vector.broadcast %27 : vector<1x128xf32> to vector<256x128xf32>
    %29 = arith.addf %26, %28 : vector<256x128xf32>
    %cst_23 = arith.constant 0.000000e+00 : f32
    %30 = vector.broadcast %cst_23 : f32 to vector<256x128xf32>
    %31 = arith.maximumf %29, %30 : vector<256x128xf32>
    %32 = arith.truncf %31 : vector<256x128xf32> to vector<256x128xbf16>
    %c0_24 = arith.constant 0 : index
    %c0_25 = arith.constant 0 : index
    %33 = vector.load %arg10[%c0_24, %c0_25] : memref<128x128xbf16, #tpu.memory_space<vmem>>, vector<128x128xbf16>
    %cst_26 = arith.constant dense<0.000000e+00> : vector<256x128xf32>
    %34 = tpu.matmul %32, %33, %cst_26 {dimension_numbers = #tpu.dot_dimension_numbers<[1], [0], [0], [1], [0, 0, 1, 1], [], []>} : vector<256x128xbf16>, vector<128x128xbf16>, vector<256x128xf32> -> vector<256x128xf32>
    %c0_27 = arith.constant 0 : index
    %c0_28 = arith.constant 0 : index
    %35 = vector.load %arg11[%c0_27, %c0_28] : memref<1x128xf32, #tpu.memory_space<vmem>>, vector<1x128xf32>
    %36 = vector.broadcast %35 : vector<1x128xf32> to vector<256x128xf32>
    %37 = arith.addf %34, %36 : vector<256x128xf32>
    %cst_29 = arith.constant dense<0xFF800000> : vector<256xf32>
    %38 = vector.multi_reduction <maximumf>, %37, %cst_29 [1] : vector<256x128xf32> to vector<256xf32>
    %39 = vector.shape_cast %38 : vector<256xf32> to vector<256x1xf32>
    %40 = vector.broadcast %39 : vector<256x1xf32> to vector<256x128xf32>
    %41 = arith.subf %37, %40 : vector<256x128xf32>
    %42 = math.exp %41 : vector<256x128xf32>
    %cst_30 = arith.constant dense<0.000000e+00> : vector<256xf32>
    %43 = vector.multi_reduction <add>, %42, %cst_30 [1] : vector<256x128xf32> to vector<256xf32>
    %44 = vector.shape_cast %43 : vector<256xf32> to vector<256x1xf32>
    %45 = tpu.reciprocal %44 {approx = true} : vector<256x1xf32> -> vector<256x1xf32>
    %46 = vector.broadcast %45 : vector<256x1xf32> to vector<256x128xf32>
    %47 = arith.mulf %42, %46 : vector<256x128xf32>
    %c0_31 = arith.constant 0 : index
    %c0_32 = arith.constant 0 : index
    %48 = vector.load %arg12[%c0_31, %c0_32] : memref<256x128xf32, #tpu.memory_space<vmem>>, vector<256x128xf32>
    tpu.vector_store %arg12[%c0_31, %c0_32], %47 {strides = array<i32>} : memref<256x128xf32, #tpu.memory_space<vmem>>, vector<256x128xf32>,
    return
  }
  func.func @transform_0(%arg0: i32) -> (i32, i32) {
    %c0_i32 = arith.constant 0 : i32
    %c0_i32_0 = arith.constant 0 : i32
    return %arg0, %c0_i32 : i32, i32
  }
  func.func @transform_1(%arg0: i32) -> (i32, i32) {
    %c0_i32 = arith.constant 0 : i32
    %c0_i32_0 = arith.constant 0 : i32
    %c0_i32_1 = arith.constant 0 : i32
    return %c0_i32, %c0_i32_0 : i32, i32
  }
  func.func @transform_2(%arg0: i32) -> (i32, i32) {
    %c0_i32 = arith.constant 0 : i32
    %c0_i32_0 = arith.constant 0 : i32
    %c0_i32_1 = arith.constant 0 : i32
    return %c0_i32, %c0_i32_0 : i32, i32
  }
  func.func @transform_3(%arg0: i32) -> (i32, i32) {
    %c0_i32 = arith.constant 0 : i32
    %c0_i32_0 = arith.constant 0 : i32
    %c0_i32_1 = arith.constant 0 : i32
    return %c0_i32, %c0_i32_0 : i32, i32
  }
  func.func @transform_4(%arg0: i32) -> (i32, i32) {
    %c0_i32 = arith.constant 0 : i32
    %c0_i32_0 = arith.constant 0 : i32
    %c0_i32_1 = arith.constant 0 : i32
    return %c0_i32, %c0_i32_0 : i32, i32
  }
  func.func @transform_5(%arg0: i32) -> (i32, i32) {
    %c0_i32 = arith.constant 0 : i32
    %c0_i32_0 = arith.constant 0 : i32
    %c0_i32_1 = arith.constant 0 : i32
    return %c0_i32, %c0_i32_0 : i32, i32
  }
  func.func @transform_6(%arg0: i32) -> (i32, i32) {
    %c0_i32 = arith.constant 0 : i32
    %c0_i32_0 = arith.constant 0 : i32
    %c0_i32_1 = arith.constant 0 : i32
    return %c0_i32, %c0_i32_0 : i32, i32
  }
  func.func @transform_7(%arg0: i32) -> (i32, i32) {
    %c0_i32 = arith.constant 0 : i32
    %c0_i32_0 = arith.constant 0 : i32
    %c0_i32_1 = arith.constant 0 : i32
    return %c0_i32, %c0_i32_0 : i32, i32
  }
  func.func @transform_8(%arg0: i32) -> (i32, i32) {
    %c0_i32 = arith.constant 0 : i32
    %c0_i32_0 = arith.constant 0 : i32
    %c0_i32_1 = arith.constant 0 : i32
    return %c0_i32, %c0_i32_0 : i32, i32
  }
  func.func @transform_9(%arg0: i32) -> (i32, i32) {
    %c0_i32 = arith.constant 0 : i32
    %c0_i32_0 = arith.constant 0 : i32
    %c0_i32_1 = arith.constant 0 : i32
    return %c0_i32, %c0_i32_0 : i32, i32
  }
  func.func @transform_10(%arg0: i32) -> (i32, i32) {
    %c0_i32 = arith.constant 0 : i32
    %c0_i32_0 = arith.constant 0 : i32
    %c0_i32_1 = arith.constant 0 : i32
    return %c0_i32, %c0_i32_0 : i32, i32
  }
  func.func @transform_11(%arg0: i32) -> (i32, i32) {
    %c0_i32 = arith.constant 0 : i32
    %c0_i32_0 = arith.constant 0 : i32
    return %arg0, %c0_i32 : i32, i32
  }
}

</mosaic_0001>

<bundles_post_ra>
// kernel: tpu_custom_call.1
= control target key start
LH: loop header
LB: loop body
LE: loop exit
PB: predicated region body
PF: predicated region fallthrough
CT: control target
= control target key end

     0   :  { %16 = vsyncpa [#allocation3], 0  ;;  %s4818_s0 = inlined_call_operand.hbm [shape: bf16[256,384], index: 0, kind: input, shape index: {}]   ;;  %s4819_s1 = inlined_call_operand.hbm [shape: bf16[384,256], index: 1, kind: input, shape index: {}]   ;;  %s4820_s2 = inlined_call_operand.hbm [shape: f32[1,256], index: 2, kind: input, shape index: {}]   ;;  %s4821_s3 = inlined_call_operand.hbm [shape: bf16[256,128], index: 3, kind: input, shape index: {}]   ;;  %s4822_s4 = inlined_call_operand.vmem [shape: f32[1,128], index: 4, kind: input, shape index: {}]   ;;  %s4823_s5 = inlined_call_operand.hbm [shape: bf16[128,128], index: 5, kind: input, shape index: {}]   ;;  %s4824_s6 = inlined_call_operand.vmem [shape: f32[1,128], index: 6, kind: input, shape index: {}]   ;;  %s4825_s7 = inlined_call_operand.hbm [shape: bf16[128,128], index: 7, kind: input, shape index: {}]   ;;  %s4826_s8 = inlined_call_operand.vmem [shape: f32[1,128], index: 8, kind: input, shape index: {}]   ;;  %s4827_s9 = inlined_call_operand.hbm [shape: bf16[128,128], index: 9, kind: input, shape index: {}]   ;;  %s4828_s10 = inlined_call_operand.vmem [shape: f32[1,128], index: 10, kind: input, shape index: {}]   ;;  %s4829_s11 = inlined_call_operand.hbm [shape: f32[256,128], index: 11, kind: output, shape index: {}]  }
   0x1   :  { %17 = vsyncpa [#allocation6], 0 }
   0x2   :  { %18 = vsyncpa [#allocation9], 0 }
   0x3   :  { %19 = vsyncpa [#allocation12], 0  ;;  %s38_s19 = sshll.u32 %s4819_s1, 4  ;;  %s39_s19 = int_to_ptr.hbm [resolvable:$true] %s38_s19 }
   0x4   :  { %20 = vsyncpa [#allocation4], 0  ;;  %s3709_s20 = smov [#allocation5]   ;;  %s62_s24 = sshll.u32 %s4821_s3, 4  ;;  %s63_s24 = int_to_ptr.hbm [resolvable:$true] %s62_s24 }
   0x5   :  { %s40_s21 = sshll.u32 %s3709_s20, 4  ;;  %s3710_s25 = smov 128   ;;  %s41_s21 = int_to_ptr.vmem [resolvable:$true] %s40_s21 }
   0x6   :  { %s3711_s26 = smov 8   ;;  %s3712_s27 = smov [#allocation8]  }
   0x7   :  { %46 = dma.hbm_to_vmem [thread:$0]  %s39_s19, 6144, %s41_s21, [#allocation6], %s3710_s25, %s3710_s25, %s3711_s26  }
   0x8   :  { %s64_s28 = sshll.u32 %s3712_s27, 4  ;;  %s3713_s1 = smov 64   ;;  %s65_s28 = int_to_ptr.vmem [resolvable:$true] %s64_s28 }
   0x9   :  { %s3714_s29 = smov 4   ;;  %s92_s3 = sshll.u32 %s4825_s7, 4  ;;  %s93_s3 = int_to_ptr.hbm [resolvable:$true] %s92_s3 }
   0xa   :  { %70 = dma.hbm_to_vmem [thread:$0]  %s63_s24, 2048, %s65_s28, [#allocation9], %s3713_s1, %s3713_s1, %s3714_s29  }
   0xb   :  { %s3715_s13 = smov [#allocation11]   ;;  %s25_s17 = sshll.u32 %s4818_s0, 4  ;;  %s26_s17 = int_to_ptr.hbm [resolvable:$true] %s25_s17 }
   0xc   :  { %s94_s14 = sshll.u32 %s3715_s13, 4  ;;  %s3716_s18 = smov [#allocation2]   ;;  %s95_s14 = int_to_ptr.vmem [resolvable:$true] %s94_s14 }
   0xd   :  { %100 = dma.hbm_to_vmem [thread:$0]  %s93_s3, 1024, %s95_s14, [#allocation12], %s3713_s1, %s3713_s1, %s3714_s29  }
   0xe   :  { %s27_s19 = sshll.u32 %s3716_s18, 4  ;;  %s3717_s20 = smov 192   ;;  %s28_s19 = int_to_ptr.vmem [resolvable:$true] %s27_s19 }
   0xf   :  { %s3718_s21 = smov 12   ;;  %s52_s23 = sshll.u32 %s4820_s2, 4  ;;  %s53_s23 = int_to_ptr.hbm [resolvable:$true] %s52_s23 }
  0x10   :  { %33 = dma.hbm_to_vmem [thread:$0]  %s26_s17, 6144, %s28_s19, [#allocation3], %s3717_s20, %s3717_s20, %s3718_s21  }
  0x11   :  { %s3719_s24 = smov [#allocation7]   ;;  %s77_s30 = sshll.u32 %s4823_s5, 4  ;;  %s78_s30 = int_to_ptr.hbm [resolvable:$true] %s77_s30 }
  0x12   :  { %s54_s27 = sshll.u32 %s3719_s24, 4  ;;  %s3720_s12 = smov [#allocation10]   ;;  %s55_s27 = int_to_ptr.vmem [resolvable:$true] %s54_s27 }
  0x13   :  { %57 = dma.hbm_to_vmem [thread:$0]  %s53_s23, 32, %s55_s27, [#allocation6]  }
  0x14   :  { %s79_s3 = sshll.u32 %s3720_s12, 4  ;;  %s107_s15 = sshll.u32 %s4827_s9, 4  ;;  %s80_s3 = int_to_ptr.vmem [resolvable:$true] %s79_s3  ;;  %s108_s15 = int_to_ptr.hbm [resolvable:$true] %s107_s15 }
  0x15   :  { %85 = dma.hbm_to_vmem [thread:$0]  %s78_s30, 1024, %s80_s3, [#allocation9], %s3713_s1, %s3713_s1, %s3714_s29  }
  0x16   :  { %s3721_s2 = smov [#allocation13]  }
  0x17   :  { %s109_s16 = sshll.u32 %s3721_s2, 4  ;;  %s110_s16 = int_to_ptr.vmem [resolvable:$true] %s109_s16 }
  0x18   :  { %115 = dma.hbm_to_vmem [thread:$0]  %s108_s15, 1024, %s110_s16, [#allocation12], %s3713_s1, %s3713_s1, %s3714_s29  }
  0x19   :  { %3699 = dma.done.wait [#allocation3], 6144  }
  0x1a   :  { %3700 = vsyncadd [#allocation3], 4294961152 }
  0x1b   :  { %3701 = dma.done.wait [#allocation6], 6176  }
  0x1c   :  { %3702 = vsyncadd [#allocation6], 4294961120 }
  0x1d   :  { %3703 = dma.done.wait [#allocation9], 3072  }
  0x1e   :  { %3704 = vsyncadd [#allocation9], 4294964224 }
  0x1f   :  { %3705 = dma.done.wait [#allocation12], 2048  }
  0x20   :  { %3706 = vsyncadd [#allocation12], 4294965248  ;;  %v2907_v0 = vld [vmem:[#allocation5 + $0x70] sm:$0xf]  ;;  %v3264_v1 = vld [vmem:[#allocation5 + $0x74] sm:$0xf0] }
  0x21   :  { %v3035_v2 = vld [vmem:[#allocation5 + $0x170] sm:$0xf]  ;;  %v2908_v3 = vor.u32 %v3264_v1, %v2907_v0  ;;  %v3296_v4 = vld [vmem:[#allocation5 + $0x174] sm:$0xf0]  ;;  %v2899_v5 = vld [vmem:[#allocation5 + $0x60] sm:$0xf] }
  0x22   :  { %v3262_v6 = vld [vmem:[#allocation5 + $0x64] sm:$0xf0]  ;;  %v3819_v7 = vor.u32 %v3296_v4, %v3035_v2  ;;  %v3027_v8 = vld [vmem:[#allocation5 + $0x160] sm:$0xf]  ;;  %v2891_v11 = vld [vmem:[#allocation5 + $0x50] sm:$0xf] }
  0x23   :  { %v3294_v9 = vld [vmem:[#allocation5 + $0x164] sm:$0xf0]  ;;  %3337 = vmatpush.bf16.msra.mxu3 %v2908_v3  ;;  %v2900_v10 = vor.u32 %v3262_v6, %v2899_v5  ;;  %760 = vmatpush.bf16.msra.mxu0 %v2908_v3  ;;  %v3260_v13 = vld [vmem:[#allocation5 + $0x54] sm:$0xf0]  ;;  %v2971_v14 = vld [vmem:[#allocation5 + $0xf0] sm:$0xf] }
  0x24   :  { %938 = vmatpush.bf16.msra.mxu2 %v3819_v7  ;;  %v3822_v12 = vor.u32 %v3294_v9, %v3027_v8  ;;  %v3280_v15 = vld [vmem:[#allocation5 + $0xf4] sm:$0xf0]  ;;  %v3019_v16 = vld [vmem:[#allocation5 + $0x150] sm:$0xf]  ;;  %v2963_v19 = vld [vmem:[#allocation5 + $0xe0] sm:$0xf]  ;;  %v2892_v21 = vor.u32 %v3260_v13, %v2891_v11 }
  0x25   :  { %v3292_v17 = vld [vmem:[#allocation5 + $0x154] sm:$0xf0]  ;;  %v3824_v18 = vor.u32 %v3280_v15, %v2971_v14  ;;  %v3278_v20 = vld [vmem:[#allocation5 + $0xe4] sm:$0xf0]  ;;  %v2883_v22 = vld [vmem:[#allocation5 + $0x40] sm:$0xf] }
  0x26   :  { %v3827_v23 = vor.u32 %v3278_v20, %v2963_v19  ;;  %v3830_v24 = vor.u32 %v3292_v17, %v3019_v16  ;;  %v3258_v25 = vld [vmem:[#allocation5 + $0x44] sm:$0xf0]  ;;  %v2955_v26 = vld [vmem:[#allocation5 + $0xd0] sm:$0xf]  ;;  %v3276_v27 = vld [vmem:[#allocation5 + $0xd4] sm:$0xf0] }
  0x27   :  { %3338 = vmatpush.bf16.msra.mxu3 %v2900_v10  ;;  %849 = vmatpush.bf16.msra.mxu1 %v3824_v18  ;;  %v3011_v28 = vld [vmem:[#allocation5 + $0x140] sm:$0xf]  ;;  %v3290_v29 = vld [vmem:[#allocation5 + $0x144] sm:$0xf0]  ;;  %v2884_v30 = vor.u32 %v3258_v25, %v2883_v22  ;;  %v2875_v31 = vld [vmem:[#allocation5 + $0x30] sm:$0xf]  ;;  %v3833_v32 = vor.u32 %v3276_v27, %v2955_v26 }
  0x28   :  { %939 = vmatpush.bf16.msra.mxu2 %v3822_v12  ;;  %761 = vmatpush.bf16.msra.mxu0 %v2900_v10  ;;  %v3836_v33 = vor.u32 %v3290_v29, %v3011_v28  ;;  %v3256_v34 = vld [vmem:[#allocation5 + $0x34] sm:$0xf0]  ;;  %v2947_v35 = vld [vmem:[#allocation5 + $0xc0] sm:$0xf]  ;;  %v3274_v36 = vld [vmem:[#allocation5 + $0xc4] sm:$0xf0] }
  0x29   :  { %v3003_v37 = vld [vmem:[#allocation5 + $0x130] sm:$0xf]  ;;  %v3288_v38 = vld [vmem:[#allocation5 + $0x134] sm:$0xf0]  ;;  %v2876_v39 = vor.u32 %v3256_v34, %v2875_v31  ;;  %v2867_v40 = vld [vmem:[#allocation5 + $0x20] sm:$0xf]  ;;  %v3839_v41 = vor.u32 %v3274_v36, %v2947_v35 }
  0x2a   :  { %v3842_v42 = vor.u32 %v3288_v38, %v3003_v37  ;;  %v3254_v43 = vld [vmem:[#allocation5 + $0x24] sm:$0xf0]  ;;  %v2939_v44 = vld [vmem:[#allocation5 + $0xb0] sm:$0xf]  ;;  %v3272_v45 = vld [vmem:[#allocation5 + $0xb4] sm:$0xf0] }
  0x2b   :  { %3339 = vmatpush.bf16.msra.mxu3 %v2892_v21  ;;  %850 = vmatpush.bf16.msra.mxu1 %v3827_v23  ;;  %v2995_v46 = vld [vmem:[#allocation5 + $0x120] sm:$0xf]  ;;  %v3286_v47 = vld [vmem:[#allocation5 + $0x124] sm:$0xf0]  ;;  %v2868_v48 = vor.u32 %v3254_v43, %v2867_v40  ;;  %v2859_v49 = vld [vmem:[#allocation5 + $0x10] sm:$0xf]  ;;  %v3845_v51 = vor.u32 %v3272_v45, %v2939_v44 }
  0x2c   :  { %940 = vmatpush.bf16.msra.mxu2 %v3830_v24  ;;  %762 = vmatpush.bf16.msra.mxu0 %v2892_v21  ;;  %v3252_v50 = vld [vmem:[#allocation5 + $0x14] sm:$0xf0]  ;;  %v3848_v52 = vor.u32 %v3286_v47, %v2995_v46  ;;  %v2987_v53 = vld [vmem:[#allocation5 + $0x110] sm:$0xf]  ;;  %v2931_v54 = vld [vmem:[#allocation5 + $0xa0] sm:$0xf] }
  0x2d   :  { %v3270_v55 = vld [vmem:[#allocation5 + $0xa4] sm:$0xf0]  ;;  %v3284_v56 = vld [vmem:[#allocation5 + $0x114] sm:$0xf0]  ;;  %v2860_v57 = vor.u32 %v3252_v50, %v2859_v49  ;;  %v2851_v58 = vld [vmem:[#allocation5] sm:$0xf] }
  0x2e   :  { %v2932_v59 = vor.u32 %v3270_v55, %v2931_v54  ;;  %v3852_v60 = vor.u32 %v3284_v56, %v2987_v53  ;;  %v3250_v61 = vld [vmem:[#allocation5 + $0x4] sm:$0xf0]  ;;  %v2923_v62 = vld [vmem:[#allocation5 + $0x90] sm:$0xf]  ;;  %v3268_v63 = vld [vmem:[#allocation5 + $0x94] sm:$0xf0] }
  0x2f   :  { %3340 = vmatpush.bf16.msra.mxu3 %v2884_v30  ;;  %851 = vmatpush.bf16.msra.mxu1 %v3833_v32  ;;  %v2979_v0 = vld [vmem:[#allocation5 + $0x100] sm:$0xf]  ;;  %v3282_v1 = vld [vmem:[#allocation5 + $0x104] sm:$0xf0]  ;;  %v2852_v2 = vor.u32 %v3250_v61, %v2851_v58  ;;  %v3238_v4 = vld [vmem:[#allocation2 + $0x128] sm:$0xf0]  ;;  %v2924_v6 = vor.u32 %v3268_v63, %v2923_v62 }
  0x30   :  { %941 = vmatpush.bf16.msra.mxu2 %v3836_v33  ;;  %763 = vmatpush.bf16.msra.mxu0 %v2884_v30  ;;  %v2803_v3 = vld [vmem:[#allocation2 + $0x120] sm:$0xf]  ;;  %v2667_v5 = vld [vmem:[#allocation2 + $0x8] sm:$0xf]  ;;  %v3855_v8 = vor.u32 %v3282_v1, %v2979_v0  ;;  %v3203_v9 = vld [vmem:[#allocation2 + $0x10] sm:$0xf0] }
  0x31   :  { %v2915_v10 = vld [vmem:[#allocation5 + $0x80] sm:$0xf]  ;;  %v3266_v11 = vld [vmem:[#allocation5 + $0x84] sm:$0xf0]  ;;  %v3202_v14 = vld [vmem:[#allocation2 + $0x8] sm:$0xf0]  ;;  %v3857_v15 = vor.u32 %v3238_v4, %v2803_v3  ;;  %v3859_v16 = vor.u32 %v3203_v9, %v2667_v5 }
  0x32   :  { %v2659_v13 = vld [vmem:[#allocation2] sm:$0xf]  ;;  %v2916_v17 = vor.u32 %v3266_v11, %v2915_v10  ;;  %v3201_v19 = vld [vmem:[#allocation2 + $0x4] sm:$0xf]  ;;  %v2661_v20 = vld [vmem:[#allocation2 + $0xc] sm:$0xf0] }
  0x33   :  { %3341 = vmatpush.bf16.msra.mxu3 %v2876_v39  ;;  %852 = vmatpush.bf16.msra.mxu1 %v3839_v41  ;;  %4853 = vst [vmem:[#allocation20_spill] sm:$0xff] %v3857_v15  ;;  %v3863_v21 = vor.u32 %v3202_v14, %v2659_v13  ;;  %v3866_v22 = vor.u32 %v3201_v19, %v2661_v20  ;;  %v2815_v25 = vld [vmem:[#allocation2 + $0x138] sm:$0xf]  ;;  %v2679_v26 = vld [vmem:[#allocation2 + $0x20] sm:$0xf]  ;;  %s2641_s21 = sshll.u32 %s4829_s11, 4  ;;  %s2642_s21 = int_to_ptr.hbm [resolvable:$true] %s2641_s21 }
  0x34   :  { %942 = vmatpush.bf16.msra.mxu2 %v3842_v42  ;;  %764 = vmatpush.bf16.msra.mxu0 %v2876_v39  ;;  %v3206_v27 = vld [vmem:[#allocation2 + $0x28] sm:$0xf0]  ;;  %v2671_v28 = vld [vmem:[#allocation2 + $0x18] sm:$0xf]  ;;  %v3205_v29 = vld [vmem:[#allocation2 + $0x20] sm:$0xf0] }
  0x35   :  { %v3876_v31 = vor.u32 %v3206_v27, %v2679_v26  ;;  %v3204_v34 = vld [vmem:[#allocation2 + $0x1c] sm:$0xf]  ;;  %v2673_v35 = vld [vmem:[#allocation2 + $0x24] sm:$0xf0]  ;;  %v3878_v36 = vor.u32 %v3205_v29, %v2671_v28  ;;  %v2691_v38 = vld [vmem:[#allocation2 + $0x38] sm:$0xf] }
  0x36   :  { %v3244_v37 = vld [vmem:[#allocation2 + $0x158] sm:$0xf0]  ;;  %v3209_v39 = vld [vmem:[#allocation2 + $0x40] sm:$0xf0]  ;;  %v2683_v40 = vld [vmem:[#allocation2 + $0x30] sm:$0xf] }
  0x37   :  { %3342 = vmatpush.bf16.msra.mxu3 %v2868_v48  ;;  %853 = vmatpush.bf16.msra.mxu1 %v3845_v51  ;;  %v3890_v44 = vor.u32 %v3209_v39, %v2691_v38  ;;  %v3207_v45 = vld [vmem:[#allocation2 + $0x34] sm:$0xf]  ;;  %v2685_v46 = vld [vmem:[#allocation2 + $0x3c] sm:$0xf0]  ;;  %v2703_v50 = vld [vmem:[#allocation2 + $0x50] sm:$0xf] }
  0x38   :  { %943 = vmatpush.bf16.msra.mxu2 %v3848_v52  ;;  %765 = vmatpush.bf16.msra.mxu0 %v2868_v48  ;;  %v3896_v48 = vor.u32 %v3207_v45, %v2685_v46  ;;  %v3247_v49 = vld [vmem:[#allocation2 + $0x170] sm:$0xf0]  ;;  %v2695_v53 = vld [vmem:[#allocation2 + $0x48] sm:$0xf]  ;;  %v3210_v56 = vld [vmem:[#allocation2 + $0x4c] sm:$0xf] }
  0x39   :  { %v3215_v61 = vld [vmem:[#allocation2 + $0x70] sm:$0xf0]  ;;  %v2707_v62 = vld [vmem:[#allocation2 + $0x60] sm:$0xf]  ;;  %v3213_v1 = vld [vmem:[#allocation2 + $0x64] sm:$0xf] }
  0x3a   :  { %v3240_v4 = vld [vmem:[#allocation2 + $0x13c] sm:$0xf]  ;;  %v2817_v5 = vld [vmem:[#allocation2 + $0x144] sm:$0xf0]  ;;  %v2719_v9 = vld [vmem:[#allocation2 + $0x78] sm:$0xf] }
  0x3b   :  { %3343 = vmatpush.bf16.msra.mxu3 %v2860_v57  ;;  %854 = vmatpush.bf16.msra.mxu1 %v2932_v59  ;;  %v3217_v10 = vld [vmem:[#allocation2 + $0x80] sm:$0xf0]  ;;  %v3931_v11 = vor.u32 %v3240_v4, %v2817_v5  ;;  %v3216_v14 = vld [vmem:[#allocation2 + $0x7c] sm:$0xf]  ;;  %v3295_v26 = vld [vmem:[#allocation5 + $0x174] sm:$0xf] }
  0x3c   :  { %944 = vmatpush.bf16.msra.mxu2 %v3852_v60  ;;  %766 = vmatpush.bf16.msra.mxu0 %v2860_v57  ;;  %v2697_v57 = vld [vmem:[#allocation2 + $0x54] sm:$0xf0]  ;;  %v3935_v19 = vor.u32 %v3217_v10, %v2719_v9  ;;  %v3037_v28 = vld [vmem:[#allocation5 + $0x178] sm:$0xf0]  ;;  %v2731_v38 = vld [vmem:[#allocation2 + $0x90] sm:$0xf] }
  0x3d   :  { %4858 = vst [vmem:[#allocation25_spill] sm:$0xff] %v3931_v11  ;;  %v3040_v29 = vor.u32 %v3295_v26, %v3037_v28  ;;  %v3220_v39 = vld [vmem:[#allocation2 + $0x98] sm:$0xf0]  ;;  %v3219_v45 = vld [vmem:[#allocation2 + $0x94] sm:$0xf] }
  0x3e   :  { %v2733_v46 = vld [vmem:[#allocation2 + $0x9c] sm:$0xf0]  ;;  %v3223_v4 = vld [vmem:[#allocation2 + $0xb0] sm:$0xf0]  ;;  %v3222_v10 = vld [vmem:[#allocation2 + $0xac] sm:$0xf] }
  0x3f   :  { %3344 = vmatpush.bf16.msra.mxu3 %v2852_v2  ;;  %855 = vmatpush.bf16.msra.mxu1 %v2924_v6  ;;  %v3259_v26 = vld [vmem:[#allocation5 + $0x54] sm:$0xf] }
  0x40   :  { %945 = vmatpush.bf16.msra.mxu2 %v3855_v8  ;;  %767 = vmatpush.bf16.msra.mxu0 %v2852_v2  ;;  %v2709_v2 = vld [vmem:[#allocation2 + $0x6c] sm:$0xf0] }
  0x42   :  { %828 = vmatmul.bf16.vlgmr.msra.gmra.mxu3 %v3857_v15  ;;  %v3231_v15 = vld [vmem:[#allocation2 + $0xf4] sm:$0xf] }
  0x43   :  { %3345 = vmatpush.bf16.msrb.mxu3 %v3824_v18  ;;  %946 = vmatmul.bf16.vlgmr.msra.gmra.mxu2 %v3859_v16  ;;  %v3241_v18 = vld [vmem:[#allocation2 + $0x140] sm:$0xf0] }
  0x44   :  { %856 = vmatpush.bf16.msra.mxu1 %v2916_v17  ;;  %768 = vmatmul.bf16.vlgmr.msra.gmra.mxu0 %v3863_v21  ;;  %v3874_v30 = vor.u32 %v3241_v18, %v2815_v25  ;;  %v3279_v25 = vld [vmem:[#allocation5 + $0xf4] sm:$0xf]  ;;  %v2973_v18 = vld [vmem:[#allocation5 + $0xf8] sm:$0xf0] }
  0x45   :  { %v2976_v27 = vor.u32 %v3279_v25, %v2973_v18 }
  0x46   :  { %4854 = vst [vmem:[#allocation21_spill] sm:$0xff] %v3874_v30 }
  0x47   :  { %3346 = vmatpush.bf16.msrb.mxu3 %v3827_v23  ;;  %857 = vmatmul.bf16.vlgmr.msra.gmra.mxu1 %v3866_v22  ;;  %v3882_v23 = vor.u32 %v3204_v34, %v2673_v35  ;;  %v3243_v34 = vld [vmem:[#allocation2 + $0x154] sm:$0xf]  ;;  %v2829_v35 = vld [vmem:[#allocation2 + $0x15c] sm:$0xf0] }
  0x48   :  { %1116 = vmatpush.bf16.msrb.mxu0 %v2976_v27  ;;  %1205 = vmatpush.bf16.msrb.mxu1 %v3040_v29  ;;  %v2893_v27 = vld [vmem:[#allocation5 + $0x58] sm:$0xf0]  ;;  %v3257_v29 = vld [vmem:[#allocation5 + $0x44] sm:$0xf] }
  0x49   :  { %v2896_v28 = vor.u32 %v3259_v26, %v2893_v27 }
  0x4b   :  { %3347 = vmatpush.bf16.msrb.mxu3 %v3833_v32  ;;  %v2827_v32 = vld [vmem:[#allocation2 + $0x150] sm:$0xf] }
  0x4c   :  { %v3888_v43 = vor.u32 %v3244_v37, %v2827_v32  ;;  %v2739_v32 = vld [vmem:[#allocation2 + $0x98] sm:$0xf]  ;;  %v3221_v37 = vld [vmem:[#allocation2 + $0xa0] sm:$0xf0] }
  0x4e   :  { %4855 = vst [vmem:[#allocation22_spill] sm:$0xff] %v3888_v43 }
  0x4f   :  { %3348 = vmatpush.bf16.msrb.mxu3 %v3839_v41  ;;  %v3208_v41 = vld [vmem:[#allocation2 + $0x38] sm:$0xf0] }
  0x50   :  { %v3892_v47 = vor.u32 %v3208_v41, %v2683_v40  ;;  %v3943_v40 = vor.u32 %v3243_v34, %v2829_v35  ;;  %v3945_v41 = vor.u32 %v3221_v37, %v2739_v32  ;;  %v2885_v34 = vld [vmem:[#allocation5 + $0x48] sm:$0xf0]  ;;  %v2811_v32 = vld [vmem:[#allocation2 + $0x128] sm:$0xf]  ;;  %v3239_v37 = vld [vmem:[#allocation2 + $0x130] sm:$0xf0] }
  0x51   :  { %v2888_v35 = vor.u32 %v3257_v29, %v2885_v34  ;;  %v2869_v29 = vld [vmem:[#allocation5 + $0x28] sm:$0xf0] }
  0x52   :  { %833 = vmatmul.bf16.gmra.mxu3 %v3874_v30  ;;  %4859 = vst [vmem:[#allocation26_spill] sm:$0xff] %v3943_v40  ;;  %v3302_v34 = vld [vmem:[#allocation8 + $0x28] sm:$0xff]  ;;  %v2787_v30 = vld [vmem:[#allocation2 + $0xf8] sm:$0xf] }
  0x53   :  { %3349 = vmatpush.bf16.msrb.mxu3 %v3845_v51  ;;  %951 = vmatmul.bf16.gmra.mxu2 %v3876_v31  ;;  %v3212_v51 = vld [vmem:[#allocation2 + $0x58] sm:$0xf0] }
  0x54   :  { %773 = vmatmul.bf16.gmra.mxu0 %v3878_v36  ;;  %v3906_v55 = vor.u32 %v3212_v51, %v2703_v50  ;;  %v3263_v50 = vld [vmem:[#allocation5 + $0x74] sm:$0xf]  ;;  %v2909_v51 = vld [vmem:[#allocation5 + $0x78] sm:$0xf0] }
  0x57   :  { %3350 = vmatpush.bf16.msrb.mxu3 %v2932_v59  ;;  %862 = vmatmul.bf16.gmra.mxu1 %v3882_v23  ;;  %v2715_v59 = vld [vmem:[#allocation2 + $0x68] sm:$0xf] }
  0x58   :  { %v3921_v0 = vor.u32 %v3215_v61, %v2715_v59  ;;  %v3246_v59 = vld [vmem:[#allocation2 + $0x16c] sm:$0xf]  ;;  %v2841_v61 = vld [vmem:[#allocation2 + $0x174] sm:$0xf0] }
  0x59   :  { %v3955_v5 = vor.u32 %v3246_v59, %v2841_v61  ;;  %v3255_v61 = vld [vmem:[#allocation5 + $0x34] sm:$0xf] }
  0x5b   :  { %3351 = vmatpush.bf16.msrb.mxu3 %v2924_v6  ;;  %v2727_v6 = vld [vmem:[#allocation2 + $0x80] sm:$0xf]  ;;  %4860 = vst [vmem:[#allocation27_spill] sm:$0xff] %v3955_v5 }
  0x5f   :  { %3352 = vmatpush.bf16.msrb.mxu3 %v2916_v17  ;;  %v2721_v17 = vld [vmem:[#allocation2 + $0x84] sm:$0xf0] }
  0x60   :  { %v3938_v20 = vor.u32 %v3216_v14, %v2721_v17  ;;  %v2745_v14 = vld [vmem:[#allocation2 + $0xb4] sm:$0xf0] }
  0x61   :  { %v3962_v18 = vor.u32 %v3222_v10, %v2745_v14  ;;  %v3291_v10 = vld [vmem:[#allocation5 + $0x154] sm:$0xf]  ;;  %v3021_v14 = vld [vmem:[#allocation5 + $0x158] sm:$0xf0] }
  0x62   :  { %838 = vmatmul.bf16.gmra.mxu3 %v3888_v43  ;;  %v3024_v26 = vor.u32 %v3291_v10, %v3021_v14  ;;  %v2941_v43 = vld [vmem:[#allocation5 + $0xb8] sm:$0xf0] }
  0x63   :  { %3353 = vmatpush.bf16.msra.mxu3 %v3819_v7  ;;  %956 = vmatmul.bf16.gmra.mxu2 %v3890_v44  ;;  %v2839_v7 = vld [vmem:[#allocation2 + $0x168] sm:$0xf] }
  0x64   :  { %778 = vmatmul.bf16.gmra.mxu0 %v3892_v47  ;;  %v3904_v54 = vor.u32 %v3247_v49, %v2839_v7  ;;  %v3947_v7 = vor.u32 %v3220_v39, %v2731_v38  ;;  %v3950_v49 = vor.u32 %v3219_v45, %v2733_v46  ;;  %v2763_v38 = vld [vmem:[#allocation2 + $0xc8] sm:$0xf]  ;;  %v3227_v39 = vld [vmem:[#allocation2 + $0xd0] sm:$0xf0]  ;;  %v2755_v45 = vld [vmem:[#allocation2 + $0xc0] sm:$0xf] }
  0x65   :  { %v3226_v46 = vld [vmem:[#allocation2 + $0xc8] sm:$0xf0] }
  0x66   :  { %4856 = vst [vmem:[#allocation23_spill] sm:$0xff] %v3904_v54 }
  0x67   :  { %3354 = vmatpush.bf16.msra.mxu3 %v3822_v12  ;;  %867 = vmatmul.bf16.gmra.mxu1 %v3896_v48  ;;  %v3211_v12 = vld [vmem:[#allocation2 + $0x50] sm:$0xf0] }
  0x68   :  { %v3908_v58 = vor.u32 %v3211_v12, %v2695_v53  ;;  %v2912_v53 = vor.u32 %v3263_v50, %v2909_v51  ;;  %v3261_v12 = vld [vmem:[#allocation5 + $0x64] sm:$0xf]  ;;  %v3967_v50 = vor.u32 %v3239_v37, %v2811_v32  ;;  %v3969_v51 = vor.u32 %v3227_v39, %v2763_v38  ;;  %v2823_v37 = vld [vmem:[#allocation2 + $0x140] sm:$0xf]  ;;  %v3242_v38 = vld [vmem:[#allocation2 + $0x148] sm:$0xf0] }
  0x69   :  { %v2775_v39 = vld [vmem:[#allocation2 + $0xe0] sm:$0xf] }
  0x6a   :  { %4861 = vst [vmem:[#allocation28_spill] sm:$0xff] %v3967_v50 }
  0x6b   :  { %3355 = vmatpush.bf16.msra.mxu3 %v3830_v24  ;;  %v3912_v24 = vor.u32 %v3210_v56, %v2697_v57  ;;  %v2901_v56 = vld [vmem:[#allocation5 + $0x68] sm:$0xf0]  ;;  %4862 = vst [vmem:[#allocation29_spill] sm:$0xff] %v3969_v51 }
  0x6c   :  { %v2904_v57 = vor.u32 %v3261_v12, %v2901_v56  ;;  %v2757_v12 = vld [vmem:[#allocation2 + $0xcc] sm:$0xf0]  ;;  %v3971_v56 = vor.u32 %v3226_v46, %v2755_v45  ;;  %v3230_v45 = vld [vmem:[#allocation2 + $0xe8] sm:$0xf0] }
  0x6f   :  { %3356 = vmatpush.bf16.msra.mxu3 %v3836_v33  ;;  %v3237_v33 = vld [vmem:[#allocation2 + $0x124] sm:$0xf] }
  0x72   :  { %843 = vmatmul.bf16.gmra.mxu3 %v3904_v54 }
  0x73   :  { %3357 = vmatpush.bf16.msra.mxu3 %v3842_v42  ;;  %961 = vmatmul.bf16.gmra.mxu2 %v3906_v55  ;;  %v2805_v42 = vld [vmem:[#allocation2 + $0x12c] sm:$0xf0] }
  0x74   :  { %783 = vmatmul.bf16.gmra.mxu0 %v3908_v58  ;;  %v3919_v63 = vor.u32 %v3237_v33, %v2805_v42  ;;  %v3277_v33 = vld [vmem:[#allocation5 + $0xe4] sm:$0xf]  ;;  %v2965_v42 = vld [vmem:[#allocation5 + $0xe8] sm:$0xf0] }
  0x76   :  { %4857 = vst [vmem:[#allocation24_spill] sm:$0xff] %v3919_v63 }
  0x77   :  { %3358 = vmatpush.bf16.msra.mxu3 %v3848_v52  ;;  %872 = vmatmul.bf16.gmra.mxu1 %v3912_v24  ;;  %v3214_v52 = vld [vmem:[#allocation2 + $0x68] sm:$0xf0] }
  0x78   :  { %v3923_v3 = vor.u32 %v3214_v52, %v2707_v62  ;;  %v2968_v62 = vor.u32 %v3277_v33, %v2965_v42  ;;  %v2751_v52 = vld [vmem:[#allocation2 + $0xb0] sm:$0xf]  ;;  %v3304_v42 = vld [vmem:[#allocation8 + $0x38] sm:$0xff] }
  0x79   :  { %1522 = vmatpush.bf16.msrb.mxu2 %v3304_v42 }
  0x7a   :  { %1117 = vmatpush.bf16.msrb.mxu0 %v2968_v62  ;;  %v2877_v62 = vld [vmem:[#allocation5 + $0x38] sm:$0xf0] }
  0x7b   :  { %3359 = vmatpush.bf16.msra.mxu3 %v3852_v60  ;;  %v3926_v60 = vor.u32 %v3213_v1, %v2709_v2  ;;  %v3224_v1 = vld [vmem:[#allocation2 + $0xb8] sm:$0xf0]  ;;  %v2743_v2 = vld [vmem:[#allocation2 + $0xa8] sm:$0xf] }
  0x7c   :  { %v3957_v9 = vor.u32 %v3224_v1, %v2751_v52  ;;  %v3959_v25 = vor.u32 %v3223_v4, %v2743_v2  ;;  %v3275_v52 = vld [vmem:[#allocation5 + $0xd4] sm:$0xf]  ;;  %v2880_v1 = vor.u32 %v3255_v61, %v2877_v62  ;;  %v2957_v2 = vld [vmem:[#allocation5 + $0xd8] sm:$0xf0]  ;;  %v3995_v61 = vor.u32 %v3242_v38, %v2823_v37  ;;  %v3301_v62 = vld [vmem:[#allocation8 + $0x20] sm:$0xff] }
  0x7d   :  { %v3273_v37 = vld [vmem:[#allocation5 + $0xc4] sm:$0xf]  ;;  %v2949_v38 = vld [vmem:[#allocation5 + $0xc8] sm:$0xf0] }
  0x7e   :  { %4864 = vst [vmem:[#allocation31_spill] sm:$0xff] %v3995_v61 }
  0x7f   :  { %3360 = vmatpush.bf16.msra.mxu3 %v3855_v8  ;;  %v3218_v8 = vld [vmem:[#allocation2 + $0x88] sm:$0xf0] }
  0x80   :  { %v3933_v13 = vor.u32 %v3218_v8, %v2727_v6  ;;  %v3293_v6 = vld [vmem:[#allocation5 + $0x164] sm:$0xf]  ;;  %v3029_v8 = vld [vmem:[#allocation5 + $0x168] sm:$0xf0] }
  0x81   :  { %v3032_v17 = vor.u32 %v3293_v6, %v3029_v8  ;;  %v2960_v6 = vor.u32 %v3275_v52, %v2957_v2  ;;  %v3997_v52 = vor.u32 %v3230_v45, %v2775_v39  ;;  %v2769_v2 = vld [vmem:[#allocation2 + $0xe4] sm:$0xf0]  ;;  %v2952_v45 = vor.u32 %v3273_v37, %v2949_v38  ;;  %v3287_v38 = vld [vmem:[#allocation5 + $0x134] sm:$0xf] }
  0x82   :  { %917 = vmatmul.bf16.vlgmr.msrb.gmra.mxu3 %v3919_v63 }
  0x83   :  { %966 = vmatmul.bf16.gmra.mxu2 %v3921_v0  ;;  %1027 = vmatpush.bf16.msrb.mxu3 %v2912_v53  ;;  %v3225_v53 = vld [vmem:[#allocation2 + $0xc4] sm:$0xf]  ;;  %4865 = vst [vmem:[#allocation32_spill] sm:$0xff] %v3997_v52 }
  0x84   :  { %788 = vmatmul.bf16.gmra.mxu0 %v3923_v3  ;;  %1206 = vmatpush.bf16.msrb.mxu1 %v3032_v17  ;;  %v3976_v33 = vor.u32 %v3225_v53, %v2757_v12  ;;  %v3303_v17 = vld [vmem:[#allocation8 + $0x30] sm:$0xff]  ;;  %v3229_v12 = vld [vmem:[#allocation2 + $0xe0] sm:$0xf0] }
  0x85   :  { %1118 = vmatpush.bf16.msrb.mxu0 %v2960_v6  ;;  %1523 = vmatpush.bf16.msrb.mxu2 %v3303_v17  ;;  %v2767_v53 = vld [vmem:[#allocation2 + $0xd8] sm:$0xf] }
  0x86   :  { %4863 = vst [vmem:[#allocation30_spill] sm:$0xff] %v3976_v33  ;;  %v3999_v6 = vor.u32 %v3229_v12, %v2767_v53  ;;  %v3300_v17 = vld [vmem:[#allocation8 + $0x18] sm:$0xff]  ;;  %v3299_v53 = vld [vmem:[#allocation8 + $0x10] sm:$0xff]  ;;  %v3289_v12 = vld [vmem:[#allocation5 + $0x144] sm:$0xf] }
  0x87   :  { %877 = vmatmul.bf16.gmra.mxu1 %v3926_v60  ;;  %1028 = vmatpush.bf16.msrb.mxu3 %v2904_v57 }
  0x88   :  { %1207 = vmatpush.bf16.msrb.mxu1 %v3024_v26  ;;  %4866 = vst [vmem:[#allocation33_spill] sm:$0xff] %v3999_v6 }
  0x89   :  { %1524 = vmatpush.bf16.msrb.mxu2 %v3302_v34  ;;  %1119 = vmatpush.bf16.msrb.mxu0 %v2952_v45  ;;  %v3233_v45 = vld [vmem:[#allocation2 + $0x100] sm:$0xf0] }
  0x8b   :  { %1029 = vmatpush.bf16.msrb.mxu3 %v2896_v28  ;;  %v3253_v28 = vld [vmem:[#allocation5 + $0x24] sm:$0xf] }
  0x8d   :  { %1525 = vmatpush.bf16.msrb.mxu2 %v3301_v62  ;;  %v3013_v62 = vld [vmem:[#allocation5 + $0x148] sm:$0xf0] }
  0x8f   :  { %1030 = vmatpush.bf16.msrb.mxu3 %v2888_v35  ;;  %v2872_v35 = vor.u32 %v3253_v28, %v2869_v29  ;;  %v3251_v28 = vld [vmem:[#allocation5 + $0x14] sm:$0xf]  ;;  %v2861_v29 = vld [vmem:[#allocation5 + $0x18] sm:$0xf0] }
  0x90   :  { %v2864_v34 = vor.u32 %v3251_v28, %v2861_v29  ;;  %v3249_v28 = vld [vmem:[#allocation5 + $0x4] sm:$0xf]  ;;  %v3298_v29 = vld [vmem:[#allocation8 + $0x8] sm:$0xff] }
  0x91   :  { %1526 = vmatpush.bf16.msrb.mxu2 %v3300_v17  ;;  %v2853_v17 = vld [vmem:[#allocation5 + $0x8] sm:$0xf0] }
  0x92   :  { %922 = vmatmul.bf16.gmra.mxu3 %v3931_v11  ;;  %v2856_v54 = vor.u32 %v3249_v28, %v2853_v17  ;;  %v3005_v11 = vld [vmem:[#allocation5 + $0x138] sm:$0xf0]  ;;  %v2933_v28 = vld [vmem:[#allocation5 + $0xa8] sm:$0xf0] }
  0x93   :  { %971 = vmatmul.bf16.gmra.mxu2 %v3933_v13  ;;  %1031 = vmatpush.bf16.msrb.mxu3 %v2880_v1  ;;  %v3228_v1 = vld [vmem:[#allocation2 + $0xdc] sm:$0xf] }
  0x94   :  { %793 = vmatmul.bf16.gmra.mxu0 %v3935_v19  ;;  %v4004_v14 = vor.u32 %v3228_v1, %v2769_v2  ;;  %v3016_v1 = vor.u32 %v3289_v12, %v3013_v62  ;;  %v3008_v12 = vor.u32 %v3287_v38, %v3005_v11 }
  0x95   :  { %1527 = vmatpush.bf16.msrb.mxu2 %v3299_v53  ;;  %v2779_v53 = vld [vmem:[#allocation2 + $0xf0] sm:$0xf] }
  0x96   :  { %4867 = vst [vmem:[#allocation34_spill] sm:$0xff] %v4004_v14  ;;  %1208 = vmatpush.bf16.msrb.mxu1 %v3016_v1  ;;  %v3269_v1 = vld [vmem:[#allocation5 + $0xa4] sm:$0xf] }
  0x97   :  { %882 = vmatmul.bf16.gmra.mxu1 %v3938_v20  ;;  %1032 = vmatpush.bf16.msrb.mxu3 %v2872_v35 }
  0x99   :  { %1528 = vmatpush.bf16.msrb.mxu2 %v3298_v29  ;;  %v2997_v29 = vld [vmem:[#allocation5 + $0x128] sm:$0xf0] }
  0x9a   :  { %1209 = vmatpush.bf16.msrb.mxu1 %v3008_v12 }
  0x9b   :  { %1033 = vmatpush.bf16.msrb.mxu3 %v2864_v34  ;;  %v3245_v34 = vld [vmem:[#allocation2 + $0x160] sm:$0xf0] }
  0x9f   :  { %1034 = vmatpush.bf16.msrb.mxu3 %v2856_v54  ;;  %v3285_v54 = vld [vmem:[#allocation5 + $0x124] sm:$0xf] }
  0xa0   :  { %v3000_v38 = vor.u32 %v3285_v54, %v2997_v29  ;;  %v4045_v29 = vld [vmem:[#allocation7] sm:$0x3] }
  0xa1   :  { %4872 = vst [vmem:[#allocation39_spill] sm:$0xff] %v4045_v29 }
  0xa2   :  { %927 = vmatmul.bf16.gmra.mxu3 %v3943_v40  ;;  %v3271_v40 = vld [vmem:[#allocation5 + $0xb4] sm:$0xf]  ;;  %1210 = vmatpush.bf16.msrb.mxu1 %v3000_v38 }
  0xa3   :  { %976 = vmatmul.bf16.gmra.mxu2 %v3945_v41  ;;  %v2944_v37 = vor.u32 %v3271_v40, %v2941_v43  ;;  %v2936_v43 = vor.u32 %v3269_v1, %v2933_v28  ;;  %v3297_v40 = vld [vmem:[#allocation8] sm:$0xff] }
  0xa4   :  { %798 = vmatmul.bf16.gmra.mxu0 %v3947_v7  ;;  %1529 = vmatpush.bf16.msrb.mxu2 %v3297_v40  ;;  %v3265_v28 = vld [vmem:[#allocation5 + $0x84] sm:$0xf] }
  0xa5   :  { %1120 = vmatpush.bf16.msrb.mxu0 %v2944_v37 }
  0xa7   :  { %887 = vmatmul.bf16.gmra.mxu1 %v3950_v49 }
  0xa9   :  { %1121 = vmatpush.bf16.msrb.mxu0 %v2936_v43  ;;  %v2917_v43 = vld [vmem:[#allocation5 + $0x88] sm:$0xf0] }
  0xb2   :  { %932 = vmatmul.bf16.gmra.mxu3 %v3955_v5  ;;  %v2835_v5 = vld [vmem:[#allocation2 + $0x158] sm:$0xf] }
  0xb3   :  { %981 = vmatmul.bf16.gmra.mxu2 %v3957_v9  ;;  %v4023_v63 = vor.u32 %v3245_v34, %v2835_v5 }
  0xb4   :  { %803 = vmatmul.bf16.gmra.mxu0 %v3959_v25 }
  0xb5   :  { %4868 = vst [vmem:[#allocation35_spill] sm:$0xff] %v4023_v63 }
  0xb7   :  { %892 = vmatmul.bf16.gmra.mxu1 %v3962_v18 }
  0xc1   :  { %v3973_v57 = vpop.f32.mrf.mxu0 }
  0xc2   :  { %1006 = vmatmul.bf16.vlgmr.msra.gmra.mxu3 %v3967_v50  ;;  %v3232_v50 = vld [vmem:[#allocation2 + $0xf8] sm:$0xf0] }
  0xc3   :  { %986 = vmatmul.bf16.gmra.mxu2 %v3969_v51  ;;  %v4027_v11 = vor.u32 %v3232_v50, %v2779_v53  ;;  %v2925_v51 = vld [vmem:[#allocation5 + $0x98] sm:$0xf0]  ;;  %v3283_v50 = vld [vmem:[#allocation5 + $0x114] sm:$0xf] }
  0xc4   :  { %v3979_v59 = vpop.f32.mrf.mxu1  ;;  %808 = vmatmul.bf16.gmra.mxu0 %v3971_v56  ;;  %v2989_v53 = vld [vmem:[#allocation5 + $0x118] sm:$0xf0] }
  0xc5   :  { %v3982_v4 = vpop.f32.mrf.mxu3  ;;  %4870 = vst [vmem:[#allocation37_spill] sm:$0xff] %v4027_v11  ;;  %v2992_v12 = vor.u32 %v3283_v50, %v2989_v53  ;;  %v2799_v50 = vld [vmem:[#allocation2 + $0x110] sm:$0xf]  ;;  %v3236_v53 = vld [vmem:[#allocation2 + $0x118] sm:$0xf0] }
  0xc6   :  { %v3984_v8 = vpop.f32.mrf.mxu2 }
  0xc7   :  { %897 = vmatmul.bf16.gmra.mxu1 %v3976_v33 }
  0xc8   :  { %1211 = vmatpush.bf16.msrb.mxu1 %v2992_v12  ;;  %v2791_v12 = vld [vmem:[#allocation2 + $0x108] sm:$0xf] }
  0xc9   :  { %v3987_v27 = vpop.f32.mrf.mxu0 }
  0xcc   :  { %v3989_v32 = vpop.f32.mrf.mxu1 }
  0xcd   :  { %v3991_v46 = vpop.f32.mrf.mxu3 }
  0xce   :  { %v3993_v42 = vpop.f32.mrf.mxu2 }
  0xd1   :  { %v4001_v10 = vpop.f32.mrf.mxu0 }
  0xd2   :  { %1011 = vmatmul.bf16.gmra.mxu3 %v3995_v61 }
  0xd3   :  { %991 = vmatmul.bf16.gmra.mxu2 %v3997_v52  ;;  %v4025_v52 = vor.u32 %v3233_v45, %v2787_v30  ;;  %v3312_v45 = vld [vmem:[#allocation8 + $0x78] sm:$0xff] }
  0xd4   :  { %v4007_v26 = vpop.f32.mrf.mxu1  ;;  %813 = vmatmul.bf16.gmra.mxu0 %v3999_v6  ;;  %v3267_v6 = vld [vmem:[#allocation5 + $0x94] sm:$0xf]  ;;  %1611 = vmatpush.bf16.msra.mxu3 %v3312_v45  ;;  %v2847_v45 = vld [vmem:[#allocation2 + $0x170] sm:$0xf] }
  0xd5   :  { %v4010_v35 = vpop.f32.mrf.mxu3  ;;  %4869 = vst [vmem:[#allocation36_spill] sm:$0xff] %v4025_v52  ;;  %v2928_v34 = vor.u32 %v3267_v6, %v2925_v51  ;;  %v2920_v51 = vor.u32 %v3265_v28, %v2917_v43  ;;  %v3281_v6 = vld [vmem:[#allocation5 + $0x104] sm:$0xf]  ;;  %v3235_v43 = vld [vmem:[#allocation2 + $0x110] sm:$0xf0] }
  0xd6   :  { %v4012_v39 = vpop.f32.mrf.mxu2  ;;  %v4064_v33 = vor.u32 %v3235_v43, %v2791_v12 }
  0xd7   :  { %902 = vmatmul.bf16.gmra.mxu1 %v4004_v14  ;;  %v2781_v14 = vld [vmem:[#allocation2 + $0xfc] sm:$0xf0]  ;;  %1122 = vmatpush.bf16.msrb.mxu0 %v2928_v34  ;;  %v3248_v34 = vld [vmem:[#allocation2 + $0x178] sm:$0xf0] }
  0xd8   :  { %v4032_v5 = vor.u32 %v3231_v15, %v2781_v14  ;;  %v2981_v14 = vld [vmem:[#allocation5 + $0x108] sm:$0xf0] }
  0xd9   :  { %v4015_v2 = vpop.f32.mrf.mxu0  ;;  %v2984_v40 = vor.u32 %v3281_v6, %v2981_v14  ;;  %v4054_v6 = vor.u32 %v3248_v34, %v2847_v45 }
  0xda   :  { %4871 = vst [vmem:[#allocation38_spill] sm:$0xff] %v4032_v5 }
  0xdb   :  { %1123 = vmatpush.bf16.msrb.mxu0 %v2920_v51  ;;  %1212 = vmatpush.bf16.msrb.mxu1 %v2984_v40  ;;  %4873 = vst [vmem:[#allocation40_spill] sm:$0xff] %v4054_v6  ;;  %v4062_v40 = vor.u32 %v3236_v53, %v2799_v50 }
  0xdc   :  { %v4017_v61 = vpop.f32.mrf.mxu1 }
  0xdd   :  { %v4019_v62 = vpop.f32.mrf.mxu3  ;;  %4874 = vst [vmem:[#allocation41_spill] sm:$0xff] %v4062_v40 }
  0xde   :  { %v4021_v17 = vpop.f32.mrf.mxu2 }
  0xe1   :  { %v4029_v37 = vpop.f32.mrf.mxu0 }
  0xe2   :  { %1016 = vmatmul.bf16.gmra.mxu3 %v4023_v63  ;;  %v4050_v63 = vperm.slane %v4045_v29, 0 }
  0xe3   :  { %996 = vmatmul.bf16.gmra.mxu2 %v4025_v52 }
  0xe4   :  { %v4035_v30 = vpop.f32.mrf.mxu1  ;;  %818 = vmatmul.bf16.gmra.mxu0 %v4027_v11  ;;  %v770_v51 = vadd.f32 %v3973_v57, %v4050_v63  ;;  %v772_v14 = vadd.f32 %v3987_v27, %v4050_v63  ;;  %v2793_v11 = vld [vmem:[#allocation2 + $0x114] sm:$0xf0] }
  0xe5   :  { %v4038_v1 = vpop.f32.mrf.mxu3 }
  0xe6   :  { %v4040_v15 = vpop.f32.mrf.mxu2  ;;  %v859_v34 = vadd.f32 %v3979_v59, %v770_v51  ;;  %v861_v57 = vadd.f32 %v3989_v32, %v772_v14 }
  0xe7   :  { %907 = vmatmul.bf16.gmra.mxu1 %v4032_v5  ;;  %v3234_v5 = vld [vmem:[#allocation2 + $0x10c] sm:$0xf] }
  0xe8   :  { %v4069_v45 = vor.u32 %v3234_v5, %v2793_v11  ;;  %v948_v53 = vadd.f32 %v3984_v8, %v859_v34  ;;  %v950_v12 = vadd.f32 %v3993_v42, %v861_v57 }
  0xe9   :  { %v4043_v54 = vpop.f32.mrf.mxu0 }
  0xea   :  { %4875 = vst [vmem:[#allocation42_spill] sm:$0xff] %v4069_v45  ;;  %v1294_v59 = vmax.f32 %v948_v53, 0.0  ;;  %v1296_v43 = vmax.f32 %v950_v12, 0.0  ;;  %v3311_v53 = vld [vmem:[#allocation8 + $0x70] sm:$0xff]  ;;  %v830_v12 = vadd.f32 %v3982_v4, %v4050_v63 }
  0xeb   :  { %1612 = vmatpush.bf16.msra.mxu3 %v3311_v53  ;;  %v780_v53 = vadd.f32 %v4029_v37, %v4050_v63 }
  0xec   :  { %v4047_v38 = vpop.f32.mrf.mxu1  ;;  %v1358_v14 = vpack.c.bf16 %v1296_v43, %v1294_v59  ;;  %v832_v43 = vadd.f32 %v3991_v46, %v4050_v63 }
  0xed   :  { %v4052_v28 = vpop.f32.mrf.mxu3 }
  0xee   :  { %v4060_v52 = vpop.f32.mrf.mxu2 }
  0xf1   :  { %v4066_v29 = vpop.f32.mrf.mxu0 }
  0xf2   :  { %1021 = vmatmul.bf16.gmra.mxu3 %v4054_v6  ;;  %v775_v6 = vadd.f32 %v4001_v10, %v4050_v63 }
  0xf3   :  { %1001 = vmatmul.bf16.gmra.mxu2 %v4062_v40  ;;  %v777_v40 = vadd.f32 %v4015_v2, %v4050_v63 }
  0xf4   :  { %v4074_v27 = vpop.f32.mrf.mxu1  ;;  %823 = vmatmul.bf16.gmra.mxu0 %v4064_v33  ;;  %v864_v8 = vadd.f32 %v4007_v26, %v775_v6 }
  0xf5   :  { %v4077_v50 = vpop.f32.mrf.mxu3  ;;  %v866_v42 = vadd.f32 %v4017_v61, %v777_v40 }
  0xf6   :  { %v4082_v11 = vpop.f32.mrf.mxu2 }
  0xf7   :  { %912 = vmatmul.bf16.gmra.mxu1 %v4069_v45  ;;  %v955_v61 = vadd.f32 %v4021_v17, %v866_v42 }
  0xf9   :  { %v786_v5 = vpop.f32.mrf.mxu0  ;;  %v1300_v40 = vmax.f32 %v955_v61, 0.0 }
  0xfc   :  { %v875_v32 = vpop.f32.mrf.mxu1 }
  0xfd   :  { %v4084_v51 = vpop.f32.mrf.mxu3 }
  0xfe   :  { %v964_v34 = vpop.f32.mrf.mxu2 }
 0x101   :  { %v4090_v45 = vpop.f32.mrf.mxu0 }
 0x102   :  { %1035 = vmatmul.bf16.vlgmr.msrb.gmra.mxu3 %v3863_v21  ;;  %v953_v21 = vadd.f32 %v4012_v39, %v864_v8  ;;  %v869_v8 = vadd.f32 %v4035_v30, %v780_v53 }
 0x103   :  { %1530 = vmatmul.bf16.vlgmr.msrb.gmra.mxu2 %v1358_v14 }
 0x104   :  { %v4095_v57 = vpop.f32.mrf.mxu1  ;;  %1124 = vmatmul.bf16.vlgmr.msrb.gmra.mxu0 %v3866_v22  ;;  %v1298_v6 = vmax.f32 %v953_v21, 0.0 }
 0x105   :  { %v918_v10 = vpop.f32.mrf.mxu3 }
 0x106   :  { %v4100_v2 = vadd.f32 %v918_v10, %v830_v12  ;;  %v4107_v4 = vpop.f32.mrf.mxu2  ;;  %v1360_v39 = vpack.c.bf16 %v1300_v40, %v1298_v6  ;;  %v835_v12 = vadd.f32 %v4010_v35, %v4050_v63  ;;  %v837_v40 = vadd.f32 %v4019_v62, %v4050_v63 }
 0x107   :  { %1213 = vmatmul.bf16.vlgmr.msrb.gmra.mxu1 %v3859_v16  ;;  %v782_v16 = vadd.f32 %v4043_v54, %v4050_v63  ;;  %v958_v54 = vadd.f32 %v4040_v15, %v869_v8  ;;  %v840_v8 = vadd.f32 %v4038_v1, %v4050_v63 }
 0x109   :  { %v791_v26 = vpop.f32.mrf.mxu0  ;;  %v871_v46 = vadd.f32 %v4047_v38, %v782_v16  ;;  %v1302_v38 = vmax.f32 %v958_v54, 0.0 }
 0x10c   :  { %v880_v59 = vpop.f32.mrf.mxu1 }
 0x10d   :  { %v920_v22 = vpop.f32.mrf.mxu3 }
 0x10e   :  { %v4109_v14 = vadd.f32 %v920_v22, %v832_v43  ;;  %v969_v30 = vpop.f32.mrf.mxu2 }
 0x111   :  { %v4115_v17 = vpop.f32.mrf.mxu0 }
 0x112   :  { %1040 = vmatmul.bf16.gmra.mxu3 %v3878_v36  ;;  %v960_v36 = vadd.f32 %v4060_v52, %v871_v46 }
 0x113   :  { %1535 = vmatmul.bf16.gmra.mxu2 %v1360_v39  ;;  %v3310_v39 = vld [vmem:[#allocation8 + $0x68] sm:$0xff] }
 0x114   :  { %v4120_v42 = vpop.f32.mrf.mxu1  ;;  %1129 = vmatmul.bf16.gmra.mxu0 %v3882_v23  ;;  %v1304_v61 = vmax.f32 %v960_v36, 0.0  ;;  %v785_v23 = vadd.f32 %v4066_v29, %v4050_v63  ;;  %1613 = vmatpush.bf16.msra.mxu3 %v3310_v39  ;;  %v842_v36 = vadd.f32 %v4052_v28, %v4050_v63  ;;  %v845_v28 = vadd.f32 %v4077_v50, %v4050_v63 }
 0x115   :  { %v923_v37 = vpop.f32.mrf.mxu3 }
 0x116   :  { %v4125_v10 = vadd.f32 %v923_v37, %v835_v12  ;;  %v1362_v22 = vpack.c.bf16 %v1304_v61, %v1302_v38  ;;  %v4137_v15 = vpop.f32.mrf.mxu2  ;;  %v874_v53 = vadd.f32 %v4074_v27, %v785_v23  ;;  %v792_v61 = vadd.f32 %v791_v26, %v4050_v63 }
 0x117   :  { %1218 = vmatmul.bf16.gmra.mxu1 %v3876_v31  ;;  %v787_v31 = vadd.f32 %v786_v5, %v4050_v63 }
 0x119   :  { %v796_v21 = vpop.f32.mrf.mxu0  ;;  %v876_v16 = vadd.f32 %v875_v32, %v787_v31 }
 0x11b   :  { %v965_v46 = vadd.f32 %v964_v34, %v876_v16  ;;  %v881_v34 = vadd.f32 %v880_v59, %v792_v61  ;;  %v847_v16 = vadd.f32 %v4084_v51, %v4050_v63  ;;  %v3309_v51 = vld [vmem:[#allocation8 + $0x60] sm:$0xff] }
 0x11c   :  { %v885_v6 = vpop.f32.mrf.mxu1  ;;  %1614 = vmatpush.bf16.msra.mxu3 %v3309_v51 }
 0x11d   :  { %v925_v35 = vpop.f32.mrf.mxu3  ;;  %v1308_v12 = vmax.f32 %v965_v46, 0.0 }
 0x11e   :  { %v4132_v43 = vadd.f32 %v925_v35, %v837_v40  ;;  %v974_v37 = vpop.f32.mrf.mxu2 }
 0x121   :  { %v4139_v52 = vpop.f32.mrf.mxu0 }
 0x122   :  { %1045 = vmatmul.bf16.gmra.mxu3 %v3892_v47  ;;  %v963_v47 = vadd.f32 %v4082_v11, %v874_v53 }
 0x123   :  { %1540 = vmatmul.bf16.gmra.mxu2 %v1362_v22 }
 0x124   :  { %v4143_v62 = vpop.f32.mrf.mxu1  ;;  %1134 = vmatmul.bf16.gmra.mxu0 %v3896_v48  ;;  %v1306_v32 = vmax.f32 %v963_v47, 0.0  ;;  %v790_v48 = vadd.f32 %v4090_v45, %v4050_v63 }
 0x125   :  { %v928_v29 = vpop.f32.mrf.mxu3 }
 0x126   :  { %v4148_v5 = vadd.f32 %v928_v29, %v840_v8  ;;  %v879_v11 = vadd.f32 %v4095_v57, %v790_v48  ;;  %v977_v23 = vpop.f32.mrf.mxu2  ;;  %v797_v8 = vadd.f32 %v796_v21, %v4050_v63 }
 0x127   :  { %1223 = vmatmul.bf16.gmra.mxu1 %v3890_v44  ;;  %v1364_v44 = vpack.c.bf16 %v1308_v12, %v1306_v32 }
 0x128   :  { %v968_v26 = vadd.f32 %v4107_v4, %v879_v11  ;;  %v886_v47 = vadd.f32 %v885_v6, %v797_v8 }
 0x129   :  { %v801_v27 = vpop.f32.mrf.mxu0 }
 0x12a   :  { %v1310_v57 = vmax.f32 %v968_v26, 0.0  ;;  %v975_v12 = vadd.f32 %v974_v37, %v886_v47  ;;  %v3308_v47 = vld [vmem:[#allocation8 + $0x58] sm:$0xff] }
 0x12b   :  { %1615 = vmatpush.bf16.msra.mxu3 %v3308_v47 }
 0x12c   :  { %v890_v54 = vpop.f32.mrf.mxu1 }
 0x12d   :  { %v930_v1 = vpop.f32.mrf.mxu3 }
 0x12e   :  { %v4154_v38 = vadd.f32 %v930_v1, %v842_v36 }
 0x131   :  { %v4159_v40 = vpop.f32.mrf.mxu0 }
 0x132   :  { %1050 = vmatmul.bf16.gmra.mxu3 %v3908_v58  ;;  %v970_v58 = vadd.f32 %v969_v30, %v881_v34 }
 0x133   :  { %1545 = vmatmul.bf16.gmra.mxu2 %v1364_v44  ;;  %v802_v44 = vadd.f32 %v801_v27, %v4050_v63 }
 0x134   :  { %v4163_v35 = vpop.f32.mrf.mxu1  ;;  %1139 = vmatmul.bf16.gmra.mxu0 %v3912_v24  ;;  %v1312_v59 = vmax.f32 %v970_v58, 0.0  ;;  %v795_v24 = vadd.f32 %v4115_v17, %v4050_v63 }
 0x135   :  { %v933_v45 = vpop.f32.mrf.mxu3 }
 0x136   :  { %v4168_v31 = vadd.f32 %v933_v45, %v845_v28  ;;  %v1366_v29 = vpack.c.bf16 %v1312_v59, %v1310_v57  ;;  %v884_v30 = vadd.f32 %v4120_v42, %v795_v24  ;;  %v1316_v42 = vmax.f32 %v975_v12, 0.0 }
 0x137   :  { %1228 = vmatmul.bf16.gmra.mxu1 %v3906_v55  ;;  %v979_v55 = vpop.f32.mrf.mxu2  ;;  %v891_v28 = vadd.f32 %v890_v54, %v802_v44 }
 0x138   :  { %v973_v21 = vadd.f32 %v4137_v15, %v884_v30 }
 0x139   :  { %v806_v22 = vpop.f32.mrf.mxu0  ;;  %v980_v58 = vadd.f32 %v979_v55, %v891_v28 }
 0x13a   :  { %v1314_v1 = vmax.f32 %v973_v21, 0.0  ;;  %v807_v24 = vadd.f32 %v806_v22, %v4050_v63 }
 0x13b   :  { %v1320_v59 = vmax.f32 %v980_v58, 0.0 }
 0x13c   :  { %v4172_v53 = vpop.f32.mrf.mxu1 }
 0x13d   :  { %v935_v50 = vpop.f32.mrf.mxu3  ;;  %v896_v30 = vadd.f32 %v4172_v53, %v807_v24 }
 0x13e   :  { %v4176_v39 = vadd.f32 %v935_v50, %v847_v16 }
 0x13f   :  { %v982_v36 = vpop.f32.mrf.mxu2 }
 0x141   :  { %v4181_v4 = vpop.f32.mrf.mxu0 }
 0x142   :  { %1055 = vmatmul.bf16.gmra.mxu3 %v3923_v3 }
 0x143   :  { %1550 = vmatmul.bf16.gmra.mxu2 %v1366_v29 }
 0x144   :  { %v4185_v46 = vpop.f32.mrf.mxu1  ;;  %1144 = vmatmul.bf16.gmra.mxu0 %v3926_v60  ;;  %v800_v60 = vadd.f32 %v4139_v52, %v4050_v63 }
 0x145   :  { %v1007_v32 = vpop.f32.mrf.mxu3 }
 0x146   :  { %v1008_v17 = vadd.f32 %v1007_v32, %v4100_v2  ;;  %v1368_v2 = vpack.c.bf16 %v1316_v42, %v1314_v1  ;;  %v889_v37 = vadd.f32 %v4143_v62, %v800_v60 }
 0x147   :  { %1233 = vmatmul.bf16.gmra.mxu1 %v3921_v0  ;;  %v984_v45 = vpop.f32.mrf.mxu2 }
 0x148   :  { %v1342_v11 = vmax.f32 %v1008_v17, 0.0  ;;  %v978_v26 = vadd.f32 %v977_v23, %v889_v37 }
 0x149   :  { %v811_v3 = vpop.f32.mrf.mxu0 }
 0x14a   :  { %v812_v42 = vadd.f32 %v811_v3, %v4050_v63 }
 0x14c   :  { %v4191_v6 = vpop.f32.mrf.mxu1 }
 0x14d   :  { %v1009_v48 = vpop.f32.mrf.mxu3 }
 0x14e   :  { %v1010_v61 = vadd.f32 %v1009_v48, %v4109_v14 }
 0x14f   :  { %v987_v62 = vpop.f32.mrf.mxu2 }
 0x150   :  { %v1344_v0 = vmax.f32 %v1010_v61, 0.0 }
 0x151   :  { %v4197_v34 = vpop.f32.mrf.mxu0 }
 0x152   :  { %1060 = vmatmul.bf16.gmra.mxu3 %v3935_v19  ;;  %v4200_v15 = vpack.c.bf16 %v1344_v0, %v1342_v11  ;;  %v1318_v19 = vmax.f32 %v978_v26, 0.0  ;;  %v3320_v11 = vld [vmem:[#allocation10 + $0x38] sm:$0xff] }
 0x153   :  { %1555 = vmatmul.bf16.gmra.mxu2 %v1368_v2  ;;  %v901_v2 = vadd.f32 %v4191_v6, %v812_v42  ;;  %1816 = vmatpush.bf16.msra.mxu0 %v3320_v11  ;;  %v4881_v11 = vld [vmem:[#allocation32_spill] sm:$0xff] }
 0x154   :  { %v4203_v14 = vpop.f32.mrf.mxu1  ;;  %1149 = vmatmul.bf16.gmra.mxu0 %v3938_v20  ;;  %v805_v20 = vadd.f32 %v4159_v40, %v4050_v63 }
 0x155   :  { %v1012_v52 = vpop.f32.mrf.mxu3 }
 0x156   :  { %v1013_v27 = vadd.f32 %v1012_v52, %v4125_v10  ;;  %v1370_v10 = vpack.c.bf16 %v1320_v59, %v1318_v19  ;;  %v894_v29 = vadd.f32 %v4163_v35, %v805_v20 }
 0x157   :  { %1238 = vmatmul.bf16.gmra.mxu1 %v3933_v13  ;;  %v989_v32 = vpop.f32.mrf.mxu2 }
 0x158   :  { %v1346_v8 = vmax.f32 %v1013_v27, 0.0  ;;  %v983_v51 = vadd.f32 %v982_v36, %v894_v29  ;;  %v990_v37 = vadd.f32 %v989_v32, %v901_v2 }
 0x159   :  { %v4208_v57 = vpop.f32.mrf.mxu0 }
 0x15a   :  { %v1322_v35 = vmax.f32 %v983_v51, 0.0 }
 0x15c   :  { %v4210_v16 = vpop.f32.mrf.mxu1 }
 0x15d   :  { %v1014_v54 = vpop.f32.mrf.mxu3 }
 0x15e   :  { %v1015_v50 = vadd.f32 %v1014_v54, %v4132_v43 }
 0x15f   :  { %v992_v36 = vpop.f32.mrf.mxu2 }
 0x160   :  { %v1348_v13 = vmax.f32 %v1015_v50, 0.0  ;;  %v4876_v50 = vld [vmem:[#allocation39_spill] sm:$0xff] }
 0x161   :  { %v4216_v23 = vpop.f32.mrf.mxu0  ;;  %v4263_v20 = vperm.slane %v4876_v50, 1  ;;  %v4882_v50 = vld [vmem:[#allocation37_spill] sm:$0xff] }
 0x162   :  { %1065 = vmatmul.bf16.gmra.mxu3 %v3947_v7  ;;  %v4219_v55 = vpack.c.bf16 %v1348_v13, %v1346_v8  ;;  %v985_v7 = vadd.f32 %v984_v45, %v896_v30  ;;  %v4878_v8 = vld [vmem:[#allocation29_spill] sm:$0xff] }
 0x163   :  { %1560 = vmatmul.bf16.gmra.mxu2 %v1370_v10 }
 0x164   :  { %v4223_v43 = vpop.f32.mrf.mxu1  ;;  %1154 = vmatmul.bf16.gmra.mxu0 %v3950_v49  ;;  %v1324_v21 = vmax.f32 %v985_v7, 0.0  ;;  %v810_v49 = vadd.f32 %v4181_v4, %v4050_v63  ;;  %v820_v7 = vadd.f32 %v4216_v23, %v4050_v63  ;;  %v4880_v23 = vld [vmem:[#allocation34_spill] sm:$0xff] }
 0x165   :  { %v1017_v40 = vpop.f32.mrf.mxu3 }
 0x166   :  { %v1018_v22 = vadd.f32 %v1017_v40, %v4148_v5  ;;  %v1372_v5 = vpack.c.bf16 %v1324_v21, %v1322_v35  ;;  %v899_v44 = vadd.f32 %v4185_v46, %v810_v49  ;;  %v1328_v46 = vmax.f32 %v990_v37, 0.0 }
 0x167   :  { %1243 = vmatmul.bf16.gmra.mxu1 %v3945_v41  ;;  %v994_v45 = vpop.f32.mrf.mxu2 }
 0x168   :  { %v1350_v48 = vmax.f32 %v1018_v22, 0.0  ;;  %v988_v0 = vadd.f32 %v987_v62, %v899_v44 }
 0x169   :  { %v4228_v17 = vpop.f32.mrf.mxu0 }
 0x16a   :  { %v1326_v28 = vmax.f32 %v988_v0, 0.0  ;;  %v822_v35 = vadd.f32 %v4228_v17, %v4050_v63 }
 0x16c   :  { %v4230_v53 = vpop.f32.mrf.mxu1 }
 0x16d   :  { %v1019_v12 = vpop.f32.mrf.mxu3 }
 0x16e   :  { %v1020_v1 = vadd.f32 %v1019_v12, %v4154_v38 }
 0x16f   :  { %v997_v24 = vpop.f32.mrf.mxu2 }
 0x170   :  { %v1352_v41 = vmax.f32 %v1020_v1, 0.0 }
 0x171   :  { %v4236_v61 = vpop.f32.mrf.mxu0 }
 0x172   :  { %1070 = vmatmul.bf16.gmra.mxu3 %v3959_v25  ;;  %v4239_v60 = vpack.c.bf16 %v1352_v41, %v1350_v48  ;;  %v909_v48 = vadd.f32 %v4223_v43, %v820_v7  ;;  %v911_v41 = vadd.f32 %v4230_v53, %v822_v35 }
 0x173   :  { %1565 = vmatmul.bf16.gmra.mxu2 %v1372_v5  ;;  %v4879_v5 = vld [vmem:[#allocation33_spill] sm:$0xff] }
 0x174   :  { %v4243_v38 = vpop.f32.mrf.mxu1  ;;  %1159 = vmatmul.bf16.gmra.mxu0 %v3962_v18  ;;  %v815_v18 = vadd.f32 %v4197_v34, %v4050_v63  ;;  %v4877_v34 = vld [vmem:[#allocation30_spill] sm:$0xff]  ;;  %v998_v0 = vadd.f32 %v997_v24, %v909_v48 }
 0x175   :  { %v1022_v4 = vpop.f32.mrf.mxu3 }
 0x176   :  { %v1023_v3 = vadd.f32 %v1022_v4, %v4168_v31  ;;  %v1374_v31 = vpack.c.bf16 %v1328_v46, %v1326_v28  ;;  %v904_v62 = vadd.f32 %v4203_v14, %v815_v18  ;;  %v3319_v4 = vld [vmem:[#allocation10 + $0x30] sm:$0xff]  ;;  %v1334_v53 = vmax.f32 %v998_v0, 0.0 }
 0x177   :  { %1248 = vmatmul.bf16.gmra.mxu1 %v3957_v9  ;;  %v817_v9 = vadd.f32 %v4208_v57, %v4050_v63  ;;  %v3307_v57 = vld [vmem:[#allocation8 + $0x50] sm:$0xff]  ;;  %v999_v32 = vpop.f32.mrf.mxu2  ;;  %1817 = vmatpush.bf16.msra.mxu0 %v3319_v4 }
 0x178   :  { %v1354_v26 = vmax.f32 %v1023_v3, 0.0  ;;  %1616 = vmatpush.bf16.msra.mxu3 %v3307_v57  ;;  %v1000_v37 = vadd.f32 %v999_v32, %v911_v41  ;;  %v4885_v41 = vld [vmem:[#allocation42_spill] sm:$0xff] }
 0x179   :  { %v4248_v25 = vpop.f32.mrf.mxu0  ;;  %v906_v54 = vadd.f32 %v4210_v16, %v817_v9 }
 0x17b   :  { %v995_v13 = vadd.f32 %v994_v45, %v906_v54  ;;  %v1336_v45 = vmax.f32 %v1000_v37, 0.0 }
 0x17c   :  { %v4250_v6 = vpop.f32.mrf.mxu1 }
 0x17d   :  { %v1024_v52 = vpop.f32.mrf.mxu3  ;;  %v1332_v16 = vmax.f32 %v995_v13, 0.0  ;;  %v3306_v13 = vld [vmem:[#allocation8 + $0x48] sm:$0xff] }
 0x17e   :  { %v1025_v27 = vadd.f32 %v1024_v52, %v4176_v39  ;;  %1617 = vmatpush.bf16.msra.mxu3 %v3306_v13 }
 0x17f   :  { %v1002_v43 = vpop.f32.mrf.mxu2 }
 0x180   :  { %v1356_v58 = vmax.f32 %v1025_v27, 0.0 }
 0x181   :  { %v1125_v19 = vpop.f32.mrf.mxu0 }
 0x182   :  { %1075 = vmatmul.bf16.gmra.mxu3 %v3971_v56  ;;  %v4258_v59 = vpack.c.bf16 %v1356_v58, %v1354_v26  ;;  %v993_v56 = vadd.f32 %v992_v36, %v904_v62  ;;  %v827_v26 = vadd.f32 %v4248_v25, %v4050_v63  ;;  %v1378_v58 = vpack.c.bf16 %v1336_v45, %v1334_v53  ;;  %v4884_v25 = vld [vmem:[#allocation36_spill] sm:$0xff] }
 0x183   :  { %1570 = vmatmul.bf16.gmra.mxu2 %v1374_v31  ;;  %v825_v31 = vadd.f32 %v4236_v61, %v4050_v63  ;;  %v4883_v61 = vld [vmem:[#allocation38_spill] sm:$0xff] }
 0x184   :  { %v1214_v39 = vpop.f32.mrf.mxu1  ;;  %1164 = vmatmul.bf16.gmra.mxu0 %v4877_v34  ;;  %v1330_v30 = vmax.f32 %v993_v56, 0.0  ;;  %v916_v24 = vadd.f32 %v4250_v6, %v827_v26  ;;  %v4888_v26 = vld [vmem:[#allocation24_spill] sm:$0xff] }
 0x185   :  { %v1036_v10 = vpop.f32.mrf.mxu3  ;;  %v914_v34 = vadd.f32 %v4243_v38, %v825_v31 }
 0x186   :  { %v1037_v29 = vadd.f32 %v1036_v10, %v4263_v20  ;;  %v1376_v21 = vpack.c.bf16 %v1332_v16, %v1330_v30 }
 0x187   :  { %1253 = vmatmul.bf16.gmra.mxu1 %v4878_v8  ;;  %v1004_v57 = vpop.f32.mrf.mxu2 }
 0x188   :  { %v1126_v40 = vadd.f32 %v1125_v19, %v1037_v29  ;;  %v1005_v30 = vadd.f32 %v1004_v57, %v916_v24 }
 0x189   :  { %v1127_v14 = vpop.f32.mrf.mxu0 }
 0x18a   :  { %v1215_v12 = vadd.f32 %v1214_v39, %v1126_v40  ;;  %v1340_v6 = vmax.f32 %v1005_v30, 0.0 }
 0x18c   :  { %v1216_v47 = vpop.f32.mrf.mxu1  ;;  %v1295_v44 = vmax.f32 %v1215_v12, 0.0 }
 0x18d   :  { %v1038_v22 = vpop.f32.mrf.mxu3 }
 0x18e   :  { %v1039_v51 = vadd.f32 %v1038_v22, %v4263_v20 }
 0x190   :  { %v1128_v1 = vadd.f32 %v1127_v14, %v1039_v51  ;;  %v1003_v14 = vadd.f32 %v1002_v43, %v914_v34  ;;  %v4294_v51 = vpop.f32.mrf.mxu2 }
 0x191   :  { %v1130_v49 = vpop.f32.mrf.mxu0 }
 0x192   :  { %v1217_v42 = vadd.f32 %v1216_v47, %v1128_v1  ;;  %1080 = vmatmul.bf16.gmra.mxu3 %v4879_v5  ;;  %v1338_v47 = vmax.f32 %v1003_v14, 0.0 }
 0x193   :  { %1575 = vmatmul.bf16.gmra.mxu2 %v1376_v21 }
 0x194   :  { %v1219_v36 = vpop.f32.mrf.mxu1  ;;  %v1297_v2 = vmax.f32 %v1217_v42, 0.0  ;;  %1169 = vmatmul.bf16.gmra.mxu0 %v4880_v23  ;;  %v1380_v35 = vpack.c.bf16 %v1340_v6, %v1338_v47 }
 0x195   :  { %v1041_v3 = vpop.f32.mrf.mxu3 }
 0x196   :  { %v4277_v17 = vpack.c.bf16 %v1297_v2, %v1295_v44  ;;  %v1042_v28 = vadd.f32 %v1041_v3, %v4263_v20  ;;  %v4886_v2 = vld [vmem:[#allocation41_spill] sm:$0xff] }
 0x197   :  { %1258 = vmatmul.bf16.gmra.mxu1 %v4881_v11 }
 0x198   :  { %v1131_v27 = vadd.f32 %v1130_v49, %v1042_v28  ;;  %v4302_v4 = vpop.f32.mrf.mxu2 }
 0x199   :  { %v1132_v46 = vpop.f32.mrf.mxu0 }
 0x19a   :  { %v1220_v19 = vadd.f32 %v1219_v36, %v1131_v27  ;;  %v3318_v36 = vld [vmem:[#allocation10 + $0x28] sm:$0xff]  ;;  %v4887_v27 = vld [vmem:[#allocation20_spill] sm:$0xff] }
 0x19b   :  { %1818 = vmatpush.bf16.msra.mxu0 %v3318_v36 }
 0x19c   :  { %v1221_v52 = vpop.f32.mrf.mxu1  ;;  %v1299_v8 = vmax.f32 %v1220_v19, 0.0 }
 0x19d   :  { %v1043_v18 = vpop.f32.mrf.mxu3 }
 0x19e   :  { %v1044_v9 = vadd.f32 %v1043_v18, %v4263_v20 }
 0x1a0   :  { %v1133_v62 = vadd.f32 %v1132_v46, %v1044_v9  ;;  %v4306_v53 = vpop.f32.mrf.mxu2 }
 0x1a1   :  { %v1135_v54 = vpop.f32.mrf.mxu0 }
 0x1a2   :  { %v1222_v39 = vadd.f32 %v1221_v52, %v1133_v62  ;;  %1085 = vmatmul.bf16.gmra.mxu3 %v4882_v50  ;;  %v4889_v62 = vld [vmem:[#allocation28_spill] sm:$0xff] }
 0x1a3   :  { %1580 = vmatmul.bf16.gmra.mxu2 %v1378_v58  ;;  %v3305_v58 = vld [vmem:[#allocation8 + $0x40] sm:$0xff] }
 0x1a4   :  { %v1224_v10 = vpop.f32.mrf.mxu1  ;;  %v1301_v56 = vmax.f32 %v1222_v39, 0.0  ;;  %1174 = vmatmul.bf16.gmra.mxu0 %v4883_v61  ;;  %1618 = vmatpush.bf16.msra.mxu3 %v3305_v58 }
 0x1a5   :  { %v1046_v63 = vpop.f32.mrf.mxu3 }
 0x1a6   :  { %v4291_v29 = vpack.c.bf16 %v1301_v56, %v1299_v8  ;;  %v1047_v38 = vadd.f32 %v1046_v63, %v4263_v20  ;;  %v4890_v63 = vld [vmem:[#allocation21_spill] sm:$0xff] }
 0x1a7   :  { %1263 = vmatmul.bf16.gmra.mxu1 %v4884_v25 }
 0x1a8   :  { %v1136_v22 = vadd.f32 %v1135_v54, %v1047_v38  ;;  %v4315_v34 = vpop.f32.mrf.mxu2  ;;  %v4891_v38 = vld [vmem:[#allocation25_spill] sm:$0xff] }
 0x1a9   :  { %v1137_v16 = vpop.f32.mrf.mxu0 }
 0x1aa   :  { %v1225_v21 = vadd.f32 %v1224_v10, %v1136_v22 }
 0x1ac   :  { %v1226_v40 = vpop.f32.mrf.mxu1  ;;  %v1303_v5 = vmax.f32 %v1225_v21, 0.0 }
 0x1ad   :  { %v1048_v7 = vpop.f32.mrf.mxu3 }
 0x1ae   :  { %v1049_v32 = vadd.f32 %v1048_v7, %v4263_v20 }
 0x1b0   :  { %v1138_v12 = vadd.f32 %v1137_v16, %v1049_v32  ;;  %v3317_v16 = vld [vmem:[#allocation10 + $0x20] sm:$0xff]  ;;  %v4321_v47 = vpop.f32.mrf.mxu2 }
 0x1b1   :  { %v1140_v1 = vpop.f32.mrf.mxu0  ;;  %1819 = vmatpush.bf16.msra.mxu0 %v3317_v16 }
 0x1b2   :  { %v1227_v49 = vadd.f32 %v1226_v40, %v1138_v12  ;;  %1090 = vmatmul.bf16.gmra.mxu3 %v4064_v33  ;;  %v4892_v40 = vld [vmem:[#allocation31_spill] sm:$0xff] }
 0x1b3   :  { %1585 = vmatmul.bf16.gmra.mxu2 %v1380_v35 }
 0x1b4   :  { %v1229_v42 = vpop.f32.mrf.mxu1  ;;  %v1305_v48 = vmax.f32 %v1227_v49, 0.0  ;;  %1179 = vmatmul.bf16.gmra.mxu0 %v4885_v41  ;;  %v4893_v41 = vld [vmem:[#allocation22_spill] sm:$0xff] }
 0x1b5   :  { %v1051_v44 = vpop.f32.mrf.mxu3 }
 0x1b6   :  { %v4300_v23 = vpack.c.bf16 %v1305_v48, %v1303_v5  ;;  %v1052_v3 = vadd.f32 %v1051_v44, %v4263_v20 }
 0x1b7   :  { %1268 = vmatmul.bf16.gmra.mxu1 %v4886_v2 }
 0x1b8   :  { %v1141_v33 = vadd.f32 %v1140_v1, %v1052_v3  ;;  %v4328_v1 = vpop.f32.mrf.mxu2  ;;  %v4894_v3 = vld [vmem:[#allocation26_spill] sm:$0xff] }
 0x1b9   :  { %v1142_v11 = vpop.f32.mrf.mxu0 }
 0x1ba   :  { %v1230_v43 = vadd.f32 %v1229_v42, %v1141_v33 }
 0x1bc   :  { %v1231_v0 = vpop.f32.mrf.mxu1  ;;  %v1307_v9 = vmax.f32 %v1230_v43, 0.0 }
 0x1bd   :  { %v1053_v37 = vpop.f32.mrf.mxu3 }
 0x1be   :  { %v1054_v28 = vadd.f32 %v1053_v37, %v4263_v20 }
 0x1c0   :  { %v1143_v46 = vadd.f32 %v1142_v11, %v1054_v28  ;;  %v4337_v28 = vpop.f32.mrf.mxu2 }
 0x1c1   :  { %v1145_v45 = vpop.f32.mrf.mxu0 }
 0x1c2   :  { %v1232_v52 = vadd.f32 %v1231_v0, %v1143_v46  ;;  %1095 = vmatmul.bf16.gmra.mxu3 %v4887_v27  ;;  %v4895_v0 = vld [vmem:[#allocation35_spill] sm:$0xff] }
 0x1c3   :  { %1590 = vmatmul.bf16.gmra.mxu2 %v4200_v15 }
 0x1c4   :  { %v1234_v18 = vpop.f32.mrf.mxu1  ;;  %v1309_v31 = vmax.f32 %v1232_v52, 0.0  ;;  %1184 = vmatmul.bf16.gmra.mxu0 %v4888_v26  ;;  %v4896_v26 = vld [vmem:[#allocation23_spill] sm:$0xff] }
 0x1c5   :  { %v1056_v19 = vpop.f32.mrf.mxu3 }
 0x1c6   :  { %v4312_v54 = vpack.c.bf16 %v1309_v31, %v1307_v9  ;;  %v1057_v39 = vadd.f32 %v1056_v19, %v4263_v20 }
 0x1c7   :  { %1273 = vmatmul.bf16.gmra.mxu1 %v4889_v62 }
 0x1c8   :  { %v1146_v24 = vadd.f32 %v1145_v45, %v1057_v39  ;;  %v4341_v58 = vpop.f32.mrf.mxu2 }
 0x1c9   :  { %v1147_v50 = vpop.f32.mrf.mxu0 }
 0x1ca   :  { %v1235_v8 = vadd.f32 %v1234_v18, %v1146_v24 }
 0x1cc   :  { %v1236_v57 = vpop.f32.mrf.mxu1  ;;  %v1311_v14 = vmax.f32 %v1235_v8, 0.0 }
 0x1cd   :  { %v1058_v15 = vpop.f32.mrf.mxu3 }
 0x1ce   :  { %v1059_v10 = vadd.f32 %v1058_v15, %v4263_v20  ;;  %v4898_v15 = vld [vmem:[#allocation40_spill] sm:$0xff] }
 0x1d0   :  { %v1148_v56 = vadd.f32 %v1147_v50, %v1059_v10  ;;  %v4897_v50 = vld [vmem:[#allocation27_spill] sm:$0xff] }
 0x1d1   :  { %v1150_v61 = vpop.f32.mrf.mxu0 }
 0x1d2   :  { %v1237_v13 = vadd.f32 %v1236_v57, %v1148_v56  ;;  %1100 = vmatmul.bf16.gmra.mxu3 %v4890_v63  ;;  %v3316_v57 = vld [vmem:[#allocation10 + $0x18] sm:$0xff] }
 0x1d3   :  { %1595 = vmatmul.bf16.gmra.mxu2 %v4219_v55  ;;  %1820 = vmatpush.bf16.msra.mxu0 %v3316_v57 }
 0x1d4   :  { %v1239_v25 = vpop.f32.mrf.mxu1  ;;  %v1313_v30 = vmax.f32 %v1237_v13, 0.0  ;;  %1189 = vmatmul.bf16.gmra.mxu0 %v4891_v38 }
 0x1d5   :  { %v1061_v6 = vpop.f32.mrf.mxu3 }
 0x1d6   :  { %v4324_v22 = vpack.c.bf16 %v1313_v30, %v1311_v14  ;;  %v1062_v7 = vadd.f32 %v1061_v6, %v4263_v20  ;;  %v3328_v30 = vld [vmem:[#allocation11 + $0x38] sm:$0xff] }
 0x1d7   :  { %1278 = vmatmul.bf16.gmra.mxu1 %v4892_v40 }
 0x1d8   :  { %v1151_v21 = vadd.f32 %v1150_v61, %v1062_v7  ;;  %2021 = vmatpush.bf16.msra.mxu1 %v3328_v30 }
 0x1d9   :  { %v1152_v32 = vpop.f32.mrf.mxu0 }
 0x1da   :  { %v1240_v49 = vadd.f32 %v1239_v25, %v1151_v21 }
 0x1dc   :  { %v1241_v35 = vpop.f32.mrf.mxu1  ;;  %v1315_v44 = vmax.f32 %v1240_v49, 0.0 }
 0x1dd   :  { %v1063_v55 = vpop.f32.mrf.mxu3 }
 0x1de   :  { %v1064_v12 = vadd.f32 %v1063_v55, %v4263_v20 }
 0x1e0   :  { %v1153_v42 = vadd.f32 %v1152_v32, %v1064_v12 }
 0x1e1   :  { %v1155_v5 = vpop.f32.mrf.mxu0 }
 0x1e2   :  { %v1242_v48 = vadd.f32 %v1241_v35, %v1153_v42  ;;  %1105 = vmatmul.bf16.gmra.mxu3 %v4893_v41 }
 0x1e3   :  { %1600 = vmatmul.bf16.gmra.mxu2 %v4239_v60 }
 0x1e4   :  { %v1244_v36 = vpop.f32.mrf.mxu1  ;;  %v1317_v2 = vmax.f32 %v1242_v48, 0.0  ;;  %1194 = vmatmul.bf16.gmra.mxu0 %v4894_v3 }
 0x1e5   :  { %v1066_v11 = vpop.f32.mrf.mxu3 }
 0x1e6   :  { %v4334_v33 = vpack.c.bf16 %v1317_v2, %v1315_v44  ;;  %v1067_v37 = vadd.f32 %v1066_v11, %v4263_v20  ;;  %v3315_v11 = vld [vmem:[#allocation10 + $0x10] sm:$0xff] }
 0x1e7   :  { %1283 = vmatmul.bf16.gmra.mxu1 %v4895_v0  ;;  %1821 = vmatpush.bf16.msra.mxu0 %v3315_v11 }
 0x1e8   :  { %v1156_v45 = vadd.f32 %v1155_v5, %v1067_v37 }
 0x1e9   :  { %v1157_v43 = vpop.f32.mrf.mxu0 }
 0x1ea   :  { %v1245_v27 = vadd.f32 %v1244_v36, %v1156_v45 }
 0x1ec   :  { %v1246_v46 = vpop.f32.mrf.mxu1  ;;  %v1319_v62 = vmax.f32 %v1245_v27, 0.0 }
 0x1ed   :  { %v1068_v52 = vpop.f32.mrf.mxu3 }
 0x1ee   :  { %v1069_v60 = vadd.f32 %v1068_v52, %v4263_v20 }
 0x1f0   :  { %v1158_v18 = vadd.f32 %v1157_v43, %v1069_v60 }
 0x1f1   :  { %v1160_v9 = vpop.f32.mrf.mxu0 }
 0x1f2   :  { %v1247_v31 = vadd.f32 %v1246_v46, %v1158_v18  ;;  %1110 = vmatmul.bf16.gmra.mxu3 %v4896_v26 }
 0x1f3   :  { %1605 = vmatmul.bf16.gmra.mxu2 %v4258_v59 }
 0x1f4   :  { %v1249_v19 = vpop.f32.mrf.mxu1  ;;  %v1321_v39 = vmax.f32 %v1247_v31, 0.0  ;;  %1199 = vmatmul.bf16.gmra.mxu0 %v4897_v50  ;;  %v3327_v31 = vld [vmem:[#allocation11 + $0x30] sm:$0xff] }
 0x1f5   :  { %v1071_v24 = vpop.f32.mrf.mxu3  ;;  %2022 = vmatpush.bf16.msra.mxu1 %v3327_v31 }
 0x1f6   :  { %v4346_v10 = vpack.c.bf16 %v1321_v39, %v1319_v62  ;;  %v1072_v8 = vadd.f32 %v1071_v24, %v4263_v20 }
 0x1f7   :  { %1288 = vmatmul.bf16.gmra.mxu1 %v4898_v15 }
 0x1f8   :  { %v1161_v13 = vadd.f32 %v1160_v9, %v1072_v8 }
 0x1f9   :  { %v1162_v56 = vpop.f32.mrf.mxu0 }
 0x1fa   :  { %v1250_v25 = vadd.f32 %v1249_v19, %v1161_v13 }
 0x1fc   :  { %v1251_v61 = vpop.f32.mrf.mxu1  ;;  %v1323_v40 = vmax.f32 %v1250_v25, 0.0 }
 0x1fd   :  { %v1073_v63 = vpop.f32.mrf.mxu3 }
 0x1fe   :  { %v1074_v59 = vadd.f32 %v1073_v63, %v4263_v20 }
 0x200   :  { %v1163_v14 = vadd.f32 %v1162_v56, %v1074_v59 }
 0x201   :  { %v1165_v38 = vpop.f32.mrf.mxu0 }
 0x202   :  { %v1252_v16 = vadd.f32 %v1251_v61, %v1163_v14  ;;  %1619 = vmatmul.bf16.vlgmr.msra.gmra.mxu3 %v4277_v17 }
 0x204   :  { %v1254_v6 = vpop.f32.mrf.mxu1  ;;  %v1325_v7 = vmax.f32 %v1252_v16, 0.0  ;;  %v3314_v16 = vld [vmem:[#allocation10 + $0x8] sm:$0xff] }
 0x205   :  { %v1076_v32 = vpop.f32.mrf.mxu3  ;;  %1822 = vmatpush.bf16.msra.mxu0 %v3314_v16 }
 0x206   :  { %v4351_v35 = vpack.c.bf16 %v1325_v7, %v1323_v40  ;;  %v1077_v21 = vadd.f32 %v1076_v32, %v4263_v20 }
 0x208   :  { %v1166_v49 = vadd.f32 %v1165_v38, %v1077_v21 }
 0x209   :  { %v1167_v55 = vpop.f32.mrf.mxu0 }
 0x20a   :  { %v1255_v48 = vadd.f32 %v1254_v6, %v1166_v49 }
 0x20c   :  { %v1256_v12 = vpop.f32.mrf.mxu1  ;;  %v1327_v2 = vmax.f32 %v1255_v48, 0.0  ;;  %v3326_v48 = vld [vmem:[#allocation11 + $0x28] sm:$0xff] }
 0x20d   :  { %v1078_v42 = vpop.f32.mrf.mxu3  ;;  %2023 = vmatpush.bf16.msra.mxu1 %v3326_v48 }
 0x20e   :  { %v1079_v5 = vadd.f32 %v1078_v42, %v4263_v20 }
 0x210   :  { %v1168_v41 = vadd.f32 %v1167_v55, %v1079_v5 }
 0x211   :  { %v1170_v36 = vpop.f32.mrf.mxu0 }
 0x212   :  { %v1257_v44 = vadd.f32 %v1256_v12, %v1168_v41  ;;  %1624 = vmatmul.bf16.gmra.mxu3 %v4291_v29 }
 0x214   :  { %v1259_v17 = vpop.f32.mrf.mxu1  ;;  %v1329_v3 = vmax.f32 %v1257_v44, 0.0 }
 0x215   :  { %v1081_v0 = vpop.f32.mrf.mxu3 }
 0x216   :  { %v4356_v37 = vpack.c.bf16 %v1329_v3, %v1327_v2  ;;  %v1082_v43 = vadd.f32 %v1081_v0, %v4263_v20 }
 0x218   :  { %v1171_v52 = vadd.f32 %v1170_v36, %v1082_v43 }
 0x219   :  { %v1172_v46 = vpop.f32.mrf.mxu0 }
 0x21a   :  { %v1260_v18 = vadd.f32 %v1259_v17, %v1171_v52 }
 0x21c   :  { %v1261_v45 = vpop.f32.mrf.mxu1  ;;  %v1331_v62 = vmax.f32 %v1260_v18, 0.0 }
 0x21d   :  { %v1083_v60 = vpop.f32.mrf.mxu3 }
 0x21e   :  { %v1084_v27 = vadd.f32 %v1083_v60, %v4263_v20 }
 0x220   :  { %v1173_v9 = vadd.f32 %v1172_v46, %v1084_v27 }
 0x221   :  { %v1175_v29 = vpop.f32.mrf.mxu0 }
 0x222   :  { %v1262_v26 = vadd.f32 %v1261_v45, %v1173_v9  ;;  %1629 = vmatmul.bf16.gmra.mxu3 %v4300_v23 }
 0x224   :  { %v1264_v19 = vpop.f32.mrf.mxu1  ;;  %v1333_v39 = vmax.f32 %v1262_v26, 0.0  ;;  %v3313_v26 = vld [vmem:[#allocation10] sm:$0xff] }
 0x225   :  { %v1086_v50 = vpop.f32.mrf.mxu3  ;;  %1823 = vmatpush.bf16.msra.mxu0 %v3313_v26 }
 0x226   :  { %v4361_v57 = vpack.c.bf16 %v1333_v39, %v1331_v62  ;;  %v1087_v24 = vadd.f32 %v1086_v50, %v4263_v20 }
 0x228   :  { %v1176_v56 = vadd.f32 %v1175_v29, %v1087_v24 }
 0x229   :  { %v1177_v15 = vpop.f32.mrf.mxu0 }
 0x22a   :  { %v1265_v63 = vadd.f32 %v1264_v19, %v1176_v56 }
 0x22c   :  { %v1266_v8 = vpop.f32.mrf.mxu1  ;;  %v1335_v30 = vmax.f32 %v1265_v63, 0.0  ;;  %v3325_v63 = vld [vmem:[#allocation11 + $0x20] sm:$0xff] }
 0x22d   :  { %v1088_v61 = vpop.f32.mrf.mxu3  ;;  %2024 = vmatpush.bf16.msra.mxu1 %v3325_v63 }
 0x22e   :  { %v1089_v13 = vadd.f32 %v1088_v61, %v4263_v20 }
 0x230   :  { %v1178_v59 = vadd.f32 %v1177_v15, %v1089_v13 }
 0x231   :  { %v1180_v25 = vpop.f32.mrf.mxu0 }
 0x232   :  { %v1267_v14 = vadd.f32 %v1266_v8, %v1178_v59  ;;  %1634 = vmatmul.bf16.gmra.mxu3 %v4312_v54 }
 0x234   :  { %v1269_v23 = vpop.f32.mrf.mxu1  ;;  %v1337_v38 = vmax.f32 %v1267_v14, 0.0 }
 0x235   :  { %v1091_v6 = vpop.f32.mrf.mxu3 }
 0x236   :  { %v4366_v40 = vpack.c.bf16 %v1337_v38, %v1335_v30  ;;  %v1092_v7 = vadd.f32 %v1091_v6, %v4263_v20 }
 0x238   :  { %v1181_v55 = vadd.f32 %v1180_v25, %v1092_v7 }
 0x239   :  { %v1182_v32 = vpop.f32.mrf.mxu0 }
 0x23a   :  { %v1270_v42 = vadd.f32 %v1269_v23, %v1181_v55 }
 0x23c   :  { %v1271_v21 = vpop.f32.mrf.mxu1  ;;  %v1339_v44 = vmax.f32 %v1270_v42, 0.0 }
 0x23d   :  { %v1093_v12 = vpop.f32.mrf.mxu3 }
 0x23e   :  { %v1094_v49 = vadd.f32 %v1093_v12, %v4263_v20 }
 0x240   :  { %v1183_v5 = vadd.f32 %v1182_v32, %v1094_v49 }
 0x241   :  { %v1185_v54 = vpop.f32.mrf.mxu0 }
 0x242   :  { %v1272_v41 = vadd.f32 %v1271_v21, %v1183_v5  ;;  %1639 = vmatmul.bf16.gmra.mxu3 %v4324_v22 }
 0x244   :  { %v1274_v36 = vpop.f32.mrf.mxu1  ;;  %v1341_v17 = vmax.f32 %v1272_v41, 0.0 }
 0x245   :  { %v1096_v2 = vpop.f32.mrf.mxu3 }
 0x246   :  { %v4371_v3 = vpack.c.bf16 %v1341_v17, %v1339_v44  ;;  %v1097_v11 = vadd.f32 %v1096_v2, %v4263_v20 }
 0x248   :  { %v1186_v46 = vadd.f32 %v1185_v54, %v1097_v11 }
 0x249   :  { %v1187_v0 = vpop.f32.mrf.mxu0 }
 0x24a   :  { %v1275_v60 = vadd.f32 %v1274_v36, %v1186_v46 }
 0x24c   :  { %v1276_v43 = vpop.f32.mrf.mxu1  ;;  %v1343_v31 = vmax.f32 %v1275_v60, 0.0 }
 0x24d   :  { %v1098_v45 = vpop.f32.mrf.mxu3 }
 0x24e   :  { %v1099_v52 = vadd.f32 %v1098_v45, %v4263_v20 }
 0x250   :  { %v1188_v27 = vadd.f32 %v1187_v0, %v1099_v52  ;;  %v3324_v52 = vld [vmem:[#allocation11 + $0x18] sm:$0xff] }
 0x251   :  { %v1190_v18 = vpop.f32.mrf.mxu0  ;;  %2025 = vmatpush.bf16.msra.mxu1 %v3324_v52 }
 0x252   :  { %v1277_v9 = vadd.f32 %v1276_v43, %v1188_v27  ;;  %1644 = vmatmul.bf16.gmra.mxu3 %v4334_v33 }
 0x254   :  { %v1279_v22 = vpop.f32.mrf.mxu1  ;;  %v1345_v29 = vmax.f32 %v1277_v9, 0.0  ;;  %v4394_v9 = vld [vmem:[%s4822_s4] ss:$0 sm:$0xff] }
 0x255   :  { %v1101_v19 = vpop.f32.mrf.mxu3 }
 0x256   :  { %v4376_v62 = vpack.c.bf16 %v1345_v29, %v1343_v31  ;;  %v1102_v39 = vadd.f32 %v1101_v19, %v4263_v20  ;;  %v3336_v31 = vld [vmem:[#allocation13 + $0x38] sm:$0xff]  ;;  %v1534_v29 = vadd.f32 %v4394_v9, %v4302_v4 }
 0x257   :  { %2226 = vmatpush.bf16.msra.mxu2 %v3336_v31 }
 0x258   :  { %v1191_v15 = vadd.f32 %v1190_v18, %v1102_v39 }
 0x259   :  { %v1192_v50 = vpop.f32.mrf.mxu0 }
 0x25a   :  { %v1280_v61 = vadd.f32 %v1279_v22, %v1191_v15  ;;  %v1551_v15 = vpop.f32.mrf.mxu2 }
 0x25c   :  { %v1281_v24 = vpop.f32.mrf.mxu1  ;;  %v1347_v14 = vmax.f32 %v1280_v61, 0.0 }
 0x25d   :  { %v1103_v8 = vpop.f32.mrf.mxu3 }
 0x25e   :  { %v1104_v56 = vadd.f32 %v1103_v8, %v4263_v20 }
 0x260   :  { %v1193_v13 = vadd.f32 %v1192_v50, %v1104_v56  ;;  %v1537_v56 = vadd.f32 %v4394_v9, %v4306_v53  ;;  %v1542_v53 = vadd.f32 %v4394_v9, %v4321_v47  ;;  %v1549_v47 = vadd.f32 %v4394_v9, %v4341_v58 }
 0x261   :  { %v1195_v33 = vpop.f32.mrf.mxu0 }
 0x262   :  { %v1282_v59 = vadd.f32 %v1281_v24, %v1193_v13  ;;  %1649 = vmatmul.bf16.gmra.mxu3 %v4346_v10  ;;  %v1553_v13 = vpop.f32.mrf.mxu2 }
 0x264   :  { %v1284_v25 = vpop.f32.mrf.mxu1  ;;  %v1349_v23 = vmax.f32 %v1282_v59, 0.0 }
 0x265   :  { %v1106_v30 = vpop.f32.mrf.mxu3 }
 0x266   :  { %v4381_v38 = vpack.c.bf16 %v1349_v23, %v1347_v14  ;;  %v1107_v16 = vadd.f32 %v1106_v30, %v4263_v20  ;;  %v3335_v30 = vld [vmem:[#allocation13 + $0x30] sm:$0xff] }
 0x267   :  { %2227 = vmatpush.bf16.msra.mxu2 %v3335_v30 }
 0x268   :  { %v1196_v32 = vadd.f32 %v1195_v33, %v1107_v16 }
 0x269   :  { %v1197_v6 = vpop.f32.mrf.mxu0 }
 0x26a   :  { %v1285_v12 = vadd.f32 %v1284_v25, %v1196_v32  ;;  %v3323_v25 = vld [vmem:[#allocation11 + $0x10] sm:$0xff]  ;;  %v1556_v23 = vpop.f32.mrf.mxu2 }
 0x26b   :  { %2026 = vmatpush.bf16.msra.mxu1 %v3323_v25 }
 0x26c   :  { %v1286_v7 = vpop.f32.mrf.mxu1  ;;  %v1351_v5 = vmax.f32 %v1285_v12, 0.0 }
 0x26d   :  { %v1108_v21 = vpop.f32.mrf.mxu3 }
 0x26e   :  { %v1109_v55 = vadd.f32 %v1108_v21, %v4263_v20 }
 0x270   :  { %v1198_v49 = vadd.f32 %v1197_v6, %v1109_v55 }
 0x271   :  { %v1200_v10 = vpop.f32.mrf.mxu0 }
 0x272   :  { %v1287_v42 = vadd.f32 %v1286_v7, %v1198_v49  ;;  %1654 = vmatmul.bf16.gmra.mxu3 %v4351_v35  ;;  %v1558_v55 = vpop.f32.mrf.mxu2  ;;  %v1547_v49 = vadd.f32 %v4394_v9, %v4337_v28  ;;  %v1552_v28 = vadd.f32 %v4394_v9, %v1551_v15 }
 0x274   :  { %v1353_v48 = vmax.f32 %v1287_v42, 0.0  ;;  %v1289_v41 = vpop.f32.mrf.mxu1 }
 0x275   :  { %v1111_v54 = vpop.f32.mrf.mxu3 }
 0x276   :  { %v4386_v36 = vpack.c.bf16 %v1353_v48, %v1351_v5  ;;  %v1112_v44 = vadd.f32 %v1111_v54, %v4263_v20 }
 0x278   :  { %v1201_v17 = vadd.f32 %v1200_v10, %v1112_v44  ;;  %v3322_v44 = vld [vmem:[#allocation11 + $0x8] sm:$0xff] }
 0x279   :  { %v1202_v11 = vpop.f32.mrf.mxu0  ;;  %2027 = vmatpush.bf16.msra.mxu1 %v3322_v44 }
 0x27a   :  { %v1290_v46 = vadd.f32 %v1289_v41, %v1201_v17  ;;  %v1561_v42 = vpop.f32.mrf.mxu2 }
 0x27b   :  { %v1562_v15 = vadd.f32 %v4394_v9, %v1561_v42 }
 0x27c   :  { %v1291_v43 = vpop.f32.mrf.mxu1  ;;  %v1355_v35 = vmax.f32 %v1290_v46, 0.0 }
 0x27d   :  { %v1113_v2 = vpop.f32.mrf.mxu3 }
 0x27e   :  { %v1114_v0 = vadd.f32 %v1113_v2, %v4263_v20  ;;  %v1532_v20 = vadd.f32 %v4394_v9, %v4294_v51  ;;  %v1539_v51 = vadd.f32 %v4394_v9, %v4315_v34  ;;  %v1544_v34 = vadd.f32 %v4394_v9, %v4328_v1  ;;  %v3334_v2 = vld [vmem:[#allocation13 + $0x28] sm:$0xff] }
 0x27f   :  { %2228 = vmatpush.bf16.msra.mxu2 %v3334_v2 }
 0x280   :  { %v1203_v45 = vadd.f32 %v1202_v11, %v1114_v0  ;;  %v1554_v11 = vadd.f32 %v4394_v9, %v1553_v13 }
 0x282   :  { %v1292_v60 = vadd.f32 %v1291_v43, %v1203_v45  ;;  %1659 = vmatmul.bf16.gmra.mxu3 %v4356_v37 }
 0x284   :  { %v1357_v27 = vmax.f32 %v1292_v60, 0.0 }
 0x285   :  { %v1620_v18 = vpop.f32.mrf.mxu3 }
 0x286   :  { %v4396_v22 = vpack.c.bf16 %v1357_v27, %v1355_v35  ;;  %v1621_v37 = vadd.f32 %v1620_v18, %v1532_v20  ;;  %v1557_v27 = vadd.f32 %v4394_v9, %v1556_v23  ;;  %v1559_v18 = vadd.f32 %v4394_v9, %v1558_v55 }
 0x288   :  { %v1700_v39 = vmax.f32 %v1621_v37, 0.0 }
 0x28d   :  { %v1622_v26 = vpop.f32.mrf.mxu3 }
 0x28e   :  { %v1623_v19 = vadd.f32 %v1622_v26, %v1534_v29 }
 0x290   :  { %v1701_v50 = vmax.f32 %v1623_v19, 0.0 }
 0x292   :  { %v1732_v24 = vpack.c.bf16 %v1701_v50, %v1700_v39  ;;  %1664 = vmatmul.bf16.gmra.mxu3 %v4361_v57  ;;  %v3321_v39 = vld [vmem:[#allocation11] sm:$0xff] }
 0x293   :  { %2028 = vmatpush.bf16.msra.mxu1 %v3321_v39 }
 0x294   :  { %1824 = vmatmul.bf16.vlgmr.msra.gmra.mxu0 %v1732_v24  ;;  %v3333_v24 = vld [vmem:[#allocation13 + $0x20] sm:$0xff] }
 0x295   :  { %v1625_v8 = vpop.f32.mrf.mxu3  ;;  %2229 = vmatpush.bf16.msra.mxu2 %v3333_v24 }
 0x296   :  { %v1626_v61 = vadd.f32 %v1625_v8, %v1537_v56 }
 0x298   :  { %v1702_v33 = vmax.f32 %v1626_v61, 0.0 }
 0x29d   :  { %v1627_v4 = vpop.f32.mrf.mxu3 }
 0x29e   :  { %v1628_v63 = vadd.f32 %v1627_v4, %v1539_v51 }
 0x2a0   :  { %v1703_v59 = vmax.f32 %v1628_v63, 0.0 }
 0x2a2   :  { %1669 = vmatmul.bf16.gmra.mxu3 %v4366_v40  ;;  %v1733_v14 = vpack.c.bf16 %v1703_v59, %v1702_v33 }
 0x2a4   :  { %1829 = vmatmul.bf16.gmra.mxu0 %v1733_v14 }
 0x2a5   :  { %v1630_v57 = vpop.f32.mrf.mxu3 }
 0x2a6   :  { %v1631_v16 = vadd.f32 %v1630_v57, %v1542_v53 }
 0x2a8   :  { %v1704_v32 = vmax.f32 %v1631_v16, 0.0 }
 0x2ad   :  { %v1632_v6 = vpop.f32.mrf.mxu3 }
 0x2ae   :  { %v1633_v7 = vadd.f32 %v1632_v6, %v1544_v34 }
 0x2b0   :  { %v1705_v21 = vmax.f32 %v1633_v7, 0.0 }
 0x2b2   :  { %1674 = vmatmul.bf16.gmra.mxu3 %v4371_v3  ;;  %v1734_v40 = vpack.c.bf16 %v1705_v21, %v1704_v32  ;;  %v1563_v3 = vpop.f32.mrf.mxu2 }
 0x2b3   :  { %v1564_v8 = vadd.f32 %v4394_v9, %v1563_v3 }
 0x2b4   :  { %1834 = vmatmul.bf16.gmra.mxu0 %v1734_v40  ;;  %v3332_v40 = vld [vmem:[#allocation13 + $0x18] sm:$0xff] }
 0x2b5   :  { %v1635_v12 = vpop.f32.mrf.mxu3  ;;  %2230 = vmatpush.bf16.msra.mxu2 %v3332_v40 }
 0x2b6   :  { %v1636_v10 = vadd.f32 %v1635_v12, %v1547_v49 }
 0x2b8   :  { %v1706_v48 = vmax.f32 %v1636_v10, 0.0 }
 0x2ba   :  { %v1566_v46 = vpop.f32.mrf.mxu2 }
 0x2bb   :  { %v1567_v25 = vadd.f32 %v4394_v9, %v1566_v46 }
 0x2bd   :  { %v1637_v1 = vpop.f32.mrf.mxu3 }
 0x2be   :  { %v1638_v5 = vadd.f32 %v1637_v1, %v1549_v47 }
 0x2c0   :  { %v1707_v54 = vmax.f32 %v1638_v5, 0.0  ;;  %v4434_v5 = vld [vmem:[%s4824_s6] ss:$0 sm:$0xff] }
 0x2c2   :  { %1679 = vmatmul.bf16.gmra.mxu3 %v4376_v62  ;;  %v1735_v41 = vpack.c.bf16 %v1707_v54, %v1706_v48  ;;  %v1568_v35 = vpop.f32.mrf.mxu2 }
 0x2c3   :  { %v1569_v14 = vadd.f32 %v4394_v9, %v1568_v35 }
 0x2c4   :  { %1839 = vmatmul.bf16.gmra.mxu0 %v1735_v41 }
 0x2c5   :  { %v1640_v17 = vpop.f32.mrf.mxu3 }
 0x2c6   :  { %v1641_v58 = vadd.f32 %v1640_v17, %v1552_v28 }
 0x2c8   :  { %v1708_v45 = vmax.f32 %v1641_v58, 0.0 }
 0x2ca   :  { %v1571_v50 = vpop.f32.mrf.mxu2 }
 0x2cb   :  { %v1572_v32 = vadd.f32 %v4394_v9, %v1571_v50 }
 0x2cd   :  { %v1642_v0 = vpop.f32.mrf.mxu3 }
 0x2ce   :  { %v1643_v43 = vadd.f32 %v1642_v0, %v1554_v11 }
 0x2d0   :  { %v1709_v52 = vmax.f32 %v1643_v43, 0.0 }
 0x2d2   :  { %v1736_v60 = vpack.c.bf16 %v1709_v52, %v1708_v45  ;;  %1684 = vmatmul.bf16.gmra.mxu3 %v4381_v38  ;;  %v1573_v51 = vpop.f32.mrf.mxu2 }
 0x2d4   :  { %1844 = vmatmul.bf16.gmra.mxu0 %v1736_v60 }
 0x2d5   :  { %v1645_v62 = vpop.f32.mrf.mxu3 }
 0x2d6   :  { %v1646_v31 = vadd.f32 %v1645_v62, %v1557_v27 }
 0x2d8   :  { %v1710_v37 = vmax.f32 %v1646_v31, 0.0 }
 0x2da   :  { %v1576_v59 = vpop.f32.mrf.mxu2 }
 0x2db   :  { %v1577_v3 = vadd.f32 %v4394_v9, %v1576_v59 }
 0x2dd   :  { %v1647_v20 = vpop.f32.mrf.mxu3 }
 0x2de   :  { %v1648_v29 = vadd.f32 %v1647_v20, %v1559_v18 }
 0x2e0   :  { %v1711_v26 = vmax.f32 %v1648_v29, 0.0 }
 0x2e2   :  { %v1737_v19 = vpack.c.bf16 %v1711_v26, %v1710_v37  ;;  %1689 = vmatmul.bf16.gmra.mxu3 %v4386_v36  ;;  %v1578_v16 = vpop.f32.mrf.mxu2 }
 0x2e3   :  { %v1579_v2 = vadd.f32 %v4394_v9, %v1578_v16 }
 0x2e4   :  { %1849 = vmatmul.bf16.gmra.mxu0 %v1737_v19 }
 0x2e5   :  { %v1650_v38 = vpop.f32.mrf.mxu3 }
 0x2e6   :  { %v1651_v56 = vadd.f32 %v1650_v38, %v1562_v15  ;;  %v3331_v38 = vld [vmem:[#allocation13 + $0x10] sm:$0xff] }
 0x2e7   :  { %2231 = vmatpush.bf16.msra.mxu2 %v3331_v38 }
 0x2e8   :  { %v1712_v4 = vmax.f32 %v1651_v56, 0.0 }
 0x2ea   :  { %v1581_v21 = vpop.f32.mrf.mxu2 }
 0x2eb   :  { %v1582_v29 = vadd.f32 %v4394_v9, %v1581_v21 }
 0x2ed   :  { %v1652_v61 = vpop.f32.mrf.mxu3 }
 0x2ee   :  { %v1653_v13 = vadd.f32 %v1652_v61, %v1564_v8 }
 0x2f0   :  { %v1713_v63 = vmax.f32 %v1653_v13, 0.0 }
 0x2f2   :  { %v1738_v33 = vpack.c.bf16 %v1713_v63, %v1712_v4  ;;  %1694 = vmatmul.bf16.gmra.mxu3 %v4396_v22  ;;  %v1574_v22 = vadd.f32 %v4394_v9, %v1573_v51  ;;  %v1583_v48 = vpop.f32.mrf.mxu2 }
 0x2f3   :  { %v1584_v26 = vadd.f32 %v4394_v9, %v1583_v48 }
 0x2f4   :  { %1854 = vmatmul.bf16.gmra.mxu0 %v1738_v33 }
 0x2f5   :  { %v1655_v36 = vpop.f32.mrf.mxu3 }
 0x2f6   :  { %v1656_v57 = vadd.f32 %v1655_v36, %v1567_v25 }
 0x2f8   :  { %v1714_v53 = vmax.f32 %v1656_v57, 0.0 }
 0x2fa   :  { %v1586_v45 = vpop.f32.mrf.mxu2 }
 0x2fb   :  { %v1587_v59 = vadd.f32 %v4394_v9, %v1586_v45 }
 0x2fd   :  { %v1657_v23 = vpop.f32.mrf.mxu3 }
 0x2fe   :  { %v1658_v30 = vadd.f32 %v1657_v23, %v1569_v14 }
 0x300   :  { %v1715_v34 = vmax.f32 %v1658_v30, 0.0 }
 0x302   :  { %v1739_v6 = vpack.c.bf16 %v1715_v34, %v1714_v53  ;;  %v1588_v31 = vpop.f32.mrf.mxu2 }
 0x303   :  { %v1589_v14 = vadd.f32 %v4394_v9, %v1588_v31 }
 0x304   :  { %1859 = vmatmul.bf16.gmra.mxu0 %v1739_v6 }
 0x305   :  { %v1660_v7 = vpop.f32.mrf.mxu3 }
 0x306   :  { %v1661_v55 = vadd.f32 %v1660_v7, %v1572_v32 }
 0x308   :  { %v1716_v42 = vmax.f32 %v1661_v55, 0.0 }
 0x30a   :  { %v1591_v4 = vpop.f32.mrf.mxu2 }
 0x30d   :  { %v1662_v12 = vpop.f32.mrf.mxu3 }
 0x30e   :  { %v1663_v49 = vadd.f32 %v1662_v12, %v1574_v22 }
 0x310   :  { %v1717_v47 = vmax.f32 %v1663_v49, 0.0 }
 0x311   :  { %v1825_v10 = vpop.f32.mrf.mxu0 }
 0x312   :  { %v1740_v1 = vpack.c.bf16 %v1717_v47, %v1716_v42  ;;  %v1826_v41 = vadd.f32 %v4434_v5, %v1825_v10  ;;  %v1593_v53 = vpop.f32.mrf.mxu2  ;;  %v1592_v42 = vadd.f32 %v4394_v9, %v1591_v4 }
 0x313   :  { %v1594_v10 = vadd.f32 %v4394_v9, %v1593_v53 }
 0x314   :  { %1864 = vmatmul.bf16.gmra.mxu0 %v1740_v1  ;;  %v1905_v28 = vmax.f32 %v1826_v41, 0.0 }
 0x315   :  { %v1665_v54 = vpop.f32.mrf.mxu3 }
 0x316   :  { %v1666_v11 = vadd.f32 %v1665_v54, %v1577_v3 }
 0x318   :  { %v1718_v52 = vmax.f32 %v1666_v11, 0.0 }
 0x319   :  { %v1827_v44 = vpop.f32.mrf.mxu0 }
 0x31a   :  { %v1828_v17 = vadd.f32 %v4434_v5, %v1827_v44  ;;  %v1596_v40 = vpop.f32.mrf.mxu2 }
 0x31c   :  { %v1906_v58 = vmax.f32 %v1828_v17, 0.0  ;;  %v3330_v17 = vld [vmem:[#allocation13 + $0x8] sm:$0xff] }
 0x31d   :  { %v1667_v0 = vpop.f32.mrf.mxu3  ;;  %2232 = vmatpush.bf16.msra.mxu2 %v3330_v17 }
 0x31e   :  { %v1937_v43 = vpack.c.bf16 %v1906_v58, %v1905_v28  ;;  %v1668_v46 = vadd.f32 %v1667_v0, %v1579_v2 }
 0x320   :  { %v1719_v60 = vmax.f32 %v1668_v46, 0.0  ;;  %2029 = vmatmul.bf16.vlgmr.msra.gmra.mxu1 %v1937_v43 }
 0x321   :  { %v1830_v62 = vpop.f32.mrf.mxu0 }
 0x322   :  { %v1741_v35 = vpack.c.bf16 %v1719_v60, %v1718_v52  ;;  %v1831_v18 = vadd.f32 %v4434_v5, %v1830_v62  ;;  %v1598_v11 = vpop.f32.mrf.mxu2  ;;  %v1597_v52 = vadd.f32 %v4394_v9, %v1596_v40 }
 0x324   :  { %1869 = vmatmul.bf16.gmra.mxu0 %v1741_v35  ;;  %v1907_v19 = vmax.f32 %v1831_v18, 0.0  ;;  %v1599_v35 = vadd.f32 %v4394_v9, %v1598_v11 }
 0x325   :  { %v1670_v27 = vpop.f32.mrf.mxu3 }
 0x326   :  { %v1671_v39 = vadd.f32 %v1670_v27, %v1582_v29 }
 0x328   :  { %v1720_v56 = vmax.f32 %v1671_v39, 0.0 }
 0x329   :  { %v1832_v20 = vpop.f32.mrf.mxu0 }
 0x32a   :  { %v1833_v37 = vadd.f32 %v4434_v5, %v1832_v20  ;;  %v1601_v62 = vpop.f32.mrf.mxu2 }
 0x32c   :  { %v1908_v50 = vmax.f32 %v1833_v37, 0.0 }
 0x32d   :  { %v1672_v24 = vpop.f32.mrf.mxu3 }
 0x32e   :  { %v1673_v15 = vadd.f32 %v1672_v24, %v1584_v26  ;;  %v1938_v8 = vpack.c.bf16 %v1908_v50, %v1907_v19 }
 0x330   :  { %v1721_v51 = vmax.f32 %v1673_v15, 0.0  ;;  %2034 = vmatmul.bf16.gmra.mxu1 %v1938_v8 }
 0x331   :  { %v1835_v61 = vpop.f32.mrf.mxu0 }
 0x332   :  { %v1742_v13 = vpack.c.bf16 %v1721_v51, %v1720_v56  ;;  %v1836_v33 = vadd.f32 %v4434_v5, %v1835_v61  ;;  %v1603_v38 = vpop.f32.mrf.mxu2  ;;  %v1602_v56 = vadd.f32 %v4394_v9, %v1601_v62 }
 0x333   :  { %v1604_v61 = vadd.f32 %v4394_v9, %v1603_v38 }
 0x334   :  { %1874 = vmatmul.bf16.gmra.mxu0 %v1742_v13  ;;  %v1909_v57 = vmax.f32 %v1836_v33, 0.0 }
 0x335   :  { %v1675_v63 = vpop.f32.mrf.mxu3 }
 0x336   :  { %v1676_v23 = vadd.f32 %v1675_v63, %v1587_v59 }
 0x338   :  { %v1722_v7 = vmax.f32 %v1676_v23, 0.0 }
 0x339   :  { %v1837_v36 = vpop.f32.mrf.mxu0 }
 0x33a   :  { %v1838_v25 = vadd.f32 %v4434_v5, %v1837_v36 }
 0x33c   :  { %v1910_v30 = vmax.f32 %v1838_v25, 0.0  ;;  %v3329_v25 = vld [vmem:[#allocation13] sm:$0xff] }
 0x33d   :  { %v1677_v34 = vpop.f32.mrf.mxu3  ;;  %2233 = vmatpush.bf16.msra.mxu2 %v3329_v25 }
 0x33e   :  { %v1678_v16 = vadd.f32 %v1677_v34, %v1589_v14  ;;  %v1939_v6 = vpack.c.bf16 %v1910_v30, %v1909_v57  ;;  %v1606_v14 = vpop.f32.mrf.mxu2 }
 0x340   :  { %v1723_v32 = vmax.f32 %v1678_v16, 0.0  ;;  %2039 = vmatmul.bf16.gmra.mxu1 %v1939_v6 }
 0x341   :  { %v1840_v21 = vpop.f32.mrf.mxu0 }
 0x342   :  { %v1743_v22 = vpack.c.bf16 %v1723_v32, %v1722_v7  ;;  %v1841_v12 = vadd.f32 %v4434_v5, %v1840_v21  ;;  %v1607_v32 = vadd.f32 %v4394_v9, %v1606_v14 }
 0x344   :  { %1879 = vmatmul.bf16.gmra.mxu0 %v1743_v22  ;;  %v1911_v1 = vmax.f32 %v1841_v12, 0.0 }
 0x345   :  { %v1680_v55 = vpop.f32.mrf.mxu3 }
 0x346   :  { %v1681_v48 = vadd.f32 %v1680_v55, %v1592_v42  ;;  %v1608_v6 = vpop.f32.mrf.mxu2 }
 0x347   :  { %v1609_v22 = vadd.f32 %v4394_v9, %v1608_v6 }
 0x348   :  { %v1724_v2 = vmax.f32 %v1681_v48, 0.0 }
 0x349   :  { %v1842_v49 = vpop.f32.mrf.mxu0 }
 0x34a   :  { %v1843_v47 = vadd.f32 %v4434_v5, %v1842_v49 }
 0x34c   :  { %v1912_v54 = vmax.f32 %v1843_v47, 0.0 }
 0x34d   :  { %v1682_v41 = vpop.f32.mrf.mxu3 }
 0x34e   :  { %v1683_v44 = vadd.f32 %v1682_v41, %v1594_v10  ;;  %v1940_v3 = vpack.c.bf16 %v1912_v54, %v1911_v1 }
 0x350   :  { %v1725_v28 = vmax.f32 %v1683_v44, 0.0  ;;  %2044 = vmatmul.bf16.gmra.mxu1 %v1940_v3 }
 0x351   :  { %v1845_v58 = vpop.f32.mrf.mxu0 }
 0x352   :  { %v1744_v0 = vpack.c.bf16 %v1725_v28, %v1724_v2  ;;  %v1846_v46 = vadd.f32 %v4434_v5, %v1845_v58 }
 0x354   :  { %1884 = vmatmul.bf16.gmra.mxu0 %v1744_v0  ;;  %v1913_v27 = vmax.f32 %v1846_v46, 0.0 }
 0x355   :  { %v1685_v43 = vpop.f32.mrf.mxu3 }
 0x356   :  { %v1686_v18 = vadd.f32 %v1685_v43, %v1597_v52 }
 0x358   :  { %v1726_v26 = vmax.f32 %v1686_v18, 0.0 }
 0x359   :  { %v1847_v45 = vpop.f32.mrf.mxu0 }
 0x35a   :  { %v1848_v60 = vadd.f32 %v4434_v5, %v1847_v45 }
 0x35c   :  { %v1914_v31 = vmax.f32 %v1848_v60, 0.0  ;;  %v4471_v60 = vld [vmem:[%s4826_s8] ss:$0 sm:$0xff] }
 0x35d   :  { %v1687_v20 = vpop.f32.mrf.mxu3 }
 0x35e   :  { %v1941_v29 = vpack.c.bf16 %v1914_v31, %v1913_v27  ;;  %v1688_v37 = vadd.f32 %v1687_v20, %v1599_v35 }
 0x360   :  { %v1727_v19 = vmax.f32 %v1688_v37, 0.0  ;;  %2049 = vmatmul.bf16.gmra.mxu1 %v1941_v29 }
 0x361   :  { %v1850_v39 = vpop.f32.mrf.mxu0 }
 0x362   :  { %v1745_v50 = vpack.c.bf16 %v1727_v19, %v1726_v26  ;;  %v1851_v15 = vadd.f32 %v4434_v5, %v1850_v39 }
 0x364   :  { %1889 = vmatmul.bf16.gmra.mxu0 %v1745_v50  ;;  %v1915_v13 = vmax.f32 %v1851_v15, 0.0 }
 0x365   :  { %v1690_v24 = vpop.f32.mrf.mxu3 }
 0x366   :  { %v1691_v4 = vadd.f32 %v1690_v24, %v1602_v56 }
 0x368   :  { %v1728_v57 = vmax.f32 %v1691_v4, 0.0 }
 0x369   :  { %v1852_v8 = vpop.f32.mrf.mxu0 }
 0x36a   :  { %v1853_v51 = vadd.f32 %v4434_v5, %v1852_v8 }
 0x36c   :  { %v1916_v63 = vmax.f32 %v1853_v51, 0.0 }
 0x36d   :  { %v1692_v33 = vpop.f32.mrf.mxu3 }
 0x36e   :  { %v1942_v36 = vpack.c.bf16 %v1916_v63, %v1915_v13  ;;  %v1693_v59 = vadd.f32 %v1692_v33, %v1604_v61 }
 0x370   :  { %v1729_v23 = vmax.f32 %v1693_v59, 0.0  ;;  %2054 = vmatmul.bf16.gmra.mxu1 %v1942_v36 }
 0x371   :  { %v1855_v30 = vpop.f32.mrf.mxu0 }
 0x372   :  { %v1746_v53 = vpack.c.bf16 %v1729_v23, %v1728_v57  ;;  %v1856_v16 = vadd.f32 %v4434_v5, %v1855_v30 }
 0x374   :  { %1894 = vmatmul.bf16.gmra.mxu0 %v1746_v53  ;;  %v1917_v55 = vmax.f32 %v1856_v16, 0.0 }
 0x375   :  { %v1695_v34 = vpop.f32.mrf.mxu3 }
 0x376   :  { %v1696_v40 = vadd.f32 %v1695_v34, %v1607_v32 }
 0x378   :  { %v1730_v10 = vmax.f32 %v1696_v40, 0.0 }
 0x379   :  { %v1857_v7 = vpop.f32.mrf.mxu0 }
 0x37a   :  { %v1858_v21 = vadd.f32 %v4434_v5, %v1857_v7 }
 0x37c   :  { %v1918_v12 = vmax.f32 %v1858_v21, 0.0 }
 0x37d   :  { %v1697_v49 = vpop.f32.mrf.mxu3 }
 0x37e   :  { %v1943_v42 = vpack.c.bf16 %v1918_v12, %v1917_v55  ;;  %v1698_v47 = vadd.f32 %v1697_v49, %v1609_v22 }
 0x380   :  { %v1731_v1 = vmax.f32 %v1698_v47, 0.0  ;;  %2059 = vmatmul.bf16.gmra.mxu1 %v1943_v42 }
 0x381   :  { %v1860_v48 = vpop.f32.mrf.mxu0 }
 0x382   :  { %v1747_v54 = vpack.c.bf16 %v1731_v1, %v1730_v10  ;;  %v1861_v41 = vadd.f32 %v4434_v5, %v1860_v48 }
 0x384   :  { %1899 = vmatmul.bf16.gmra.mxu0 %v1747_v54  ;;  %v1919_v17 = vmax.f32 %v1861_v41, 0.0 }
 0x389   :  { %v1862_v44 = vpop.f32.mrf.mxu0 }
 0x38a   :  { %v1863_v3 = vadd.f32 %v4434_v5, %v1862_v44 }
 0x38c   :  { %v1920_v2 = vmax.f32 %v1863_v3, 0.0 }
 0x38e   :  { %v1944_v9 = vpack.c.bf16 %v1920_v2, %v1919_v17 }
 0x390   :  { %2064 = vmatmul.bf16.gmra.mxu1 %v1944_v9 }
 0x391   :  { %v1865_v28 = vpop.f32.mrf.mxu0 }
 0x392   :  { %v1866_v11 = vadd.f32 %v4434_v5, %v1865_v28 }
 0x394   :  { %v1921_v43 = vmax.f32 %v1866_v11, 0.0 }
 0x399   :  { %v1867_v58 = vpop.f32.mrf.mxu0 }
 0x39a   :  { %v1868_v0 = vadd.f32 %v4434_v5, %v1867_v58 }
 0x39c   :  { %v1922_v46 = vmax.f32 %v1868_v0, 0.0 }
 0x39d   :  { %v2030_v45 = vpop.f32.mrf.mxu1 }
 0x39e   :  { %v1945_v52 = vpack.c.bf16 %v1922_v46, %v1921_v43  ;;  %v2031_v35 = vadd.f32 %v4471_v60, %v2030_v45 }
 0x3a0   :  { %2069 = vmatmul.bf16.gmra.mxu1 %v1945_v52  ;;  %v2110_v31 = vmax.f32 %v2031_v35, 0.0 }
 0x3a1   :  { %v1870_v62 = vpop.f32.mrf.mxu0 }
 0x3a2   :  { %v1871_v20 = vadd.f32 %v4434_v5, %v1870_v62 }
 0x3a4   :  { %v1923_v39 = vmax.f32 %v1871_v20, 0.0 }
 0x3a5   :  { %v2032_v27 = vpop.f32.mrf.mxu1 }
 0x3a6   :  { %v2033_v18 = vadd.f32 %v4471_v60, %v2032_v27 }
 0x3a8   :  { %v2111_v29 = vmax.f32 %v2033_v18, 0.0 }
 0x3a9   :  { %v1872_v37 = vpop.f32.mrf.mxu0 }
 0x3aa   :  { %v2142_v26 = vpack.c.bf16 %v2111_v29, %v2110_v31  ;;  %v1873_v19 = vadd.f32 %v4434_v5, %v1872_v37 }
 0x3ac   :  { %v1924_v50 = vmax.f32 %v1873_v19, 0.0  ;;  %2234 = vmatmul.bf16.vlgmr.msra.gmra.mxu2 %v2142_v26 }
 0x3ad   :  { %v2035_v38 = vpop.f32.mrf.mxu1 }
 0x3ae   :  { %v1946_v24 = vpack.c.bf16 %v1924_v50, %v1923_v39  ;;  %v2036_v8 = vadd.f32 %v4471_v60, %v2035_v38 }
 0x3b0   :  { %2074 = vmatmul.bf16.gmra.mxu1 %v1946_v24  ;;  %v2112_v61 = vmax.f32 %v2036_v8, 0.0 }
 0x3b1   :  { %v1875_v15 = vpop.f32.mrf.mxu0 }
 0x3b2   :  { %v1876_v13 = vadd.f32 %v4434_v5, %v1875_v15 }
 0x3b4   :  { %v1925_v59 = vmax.f32 %v1876_v13, 0.0 }
 0x3b5   :  { %v2037_v56 = vpop.f32.mrf.mxu1 }
 0x3b6   :  { %v2038_v51 = vadd.f32 %v4471_v60, %v2037_v56 }
 0x3b8   :  { %v2113_v4 = vmax.f32 %v2038_v51, 0.0 }
 0x3b9   :  { %v1877_v63 = vpop.f32.mrf.mxu0 }
 0x3ba   :  { %v1878_v33 = vadd.f32 %v4434_v5, %v1877_v63  ;;  %v2143_v36 = vpack.c.bf16 %v2113_v4, %v2112_v61 }
 0x3bc   :  { %v1926_v25 = vmax.f32 %v1878_v33, 0.0  ;;  %2239 = vmatmul.bf16.gmra.mxu2 %v2143_v36 }
 0x3bd   :  { %v2040_v14 = vpop.f32.mrf.mxu1 }
 0x3be   :  { %v1947_v57 = vpack.c.bf16 %v1926_v25, %v1925_v59  ;;  %v2041_v30 = vadd.f32 %v4471_v60, %v2040_v14 }
 0x3c0   :  { %2079 = vmatmul.bf16.gmra.mxu1 %v1947_v57  ;;  %v2114_v16 = vmax.f32 %v2041_v30, 0.0 }
 0x3c1   :  { %v1880_v23 = vpop.f32.mrf.mxu0 }
 0x3c2   :  { %v1881_v6 = vadd.f32 %v4434_v5, %v1880_v23 }
 0x3c4   :  { %v1927_v55 = vmax.f32 %v1881_v6, 0.0 }
 0x3c5   :  { %v2042_v53 = vpop.f32.mrf.mxu1 }
 0x3c6   :  { %v2043_v34 = vadd.f32 %v4471_v60, %v2042_v53 }
 0x3c8   :  { %v2115_v7 = vmax.f32 %v2043_v34, 0.0 }
 0x3c9   :  { %v1882_v32 = vpop.f32.mrf.mxu0 }
 0x3ca   :  { %v1883_v21 = vadd.f32 %v4434_v5, %v1882_v32  ;;  %v2144_v22 = vpack.c.bf16 %v2115_v7, %v2114_v16 }
 0x3cc   :  { %v1928_v40 = vmax.f32 %v1883_v21, 0.0  ;;  %2244 = vmatmul.bf16.gmra.mxu2 %v2144_v22 }
 0x3cd   :  { %v2045_v12 = vpop.f32.mrf.mxu1 }
 0x3ce   :  { %v1948_v49 = vpack.c.bf16 %v1928_v40, %v1927_v55  ;;  %v2046_v47 = vadd.f32 %v4471_v60, %v2045_v12 }
 0x3d0   :  { %2084 = vmatmul.bf16.gmra.mxu1 %v1948_v49  ;;  %v2116_v48 = vmax.f32 %v2046_v47, 0.0 }
 0x3d1   :  { %v1885_v42 = vpop.f32.mrf.mxu0 }
 0x3d2   :  { %v1886_v54 = vadd.f32 %v4434_v5, %v1885_v42 }
 0x3d4   :  { %v1929_v2 = vmax.f32 %v1886_v54, 0.0 }
 0x3d5   :  { %v2047_v10 = vpop.f32.mrf.mxu1 }
 0x3d6   :  { %v2048_v1 = vadd.f32 %v4471_v60, %v2047_v10 }
 0x3d8   :  { %v2117_v41 = vmax.f32 %v2048_v1, 0.0 }
 0x3d9   :  { %v1887_v44 = vpop.f32.mrf.mxu0 }
 0x3da   :  { %v1888_v3 = vadd.f32 %v4434_v5, %v1887_v44  ;;  %v2145_v17 = vpack.c.bf16 %v2117_v41, %v2116_v48  ;;  %v4508_v41 = vld [vmem:[%s4828_s10] ss:$0 sm:$0xff]  ;;  %s3722_s10 = smov [#allocation14]  }
 0x3db   :  { %s2639_s18 = sshll.u32 %s3722_s10, 4  ;;  %s2640_s18 = int_to_ptr.vmem [resolvable:$true] %s2639_s18 }
 0x3dc   :  { %v1930_v9 = vmax.f32 %v1888_v3, 0.0  ;;  %2249 = vmatmul.bf16.gmra.mxu2 %v2145_v17 }
 0x3dd   :  { %v2050_v28 = vpop.f32.mrf.mxu1 }
 0x3de   :  { %v1949_v11 = vpack.c.bf16 %v1930_v9, %v1929_v2  ;;  %v2051_v0 = vadd.f32 %v4471_v60, %v2050_v28 }
 0x3e0   :  { %2089 = vmatmul.bf16.gmra.mxu1 %v1949_v11  ;;  %v2118_v45 = vmax.f32 %v2051_v0, 0.0 }
 0x3e1   :  { %v1890_v58 = vpop.f32.mrf.mxu0 }
 0x3e2   :  { %v1891_v52 = vadd.f32 %v4434_v5, %v1890_v58 }
 0x3e4   :  { %v1931_v31 = vmax.f32 %v1891_v52, 0.0 }
 0x3e5   :  { %v2052_v43 = vpop.f32.mrf.mxu1 }
 0x3e6   :  { %v2053_v46 = vadd.f32 %v4471_v60, %v2052_v43 }
 0x3e8   :  { %v2119_v62 = vmax.f32 %v2053_v46, 0.0 }
 0x3e9   :  { %v1892_v35 = vpop.f32.mrf.mxu0 }
 0x3ea   :  { %v2146_v27 = vpack.c.bf16 %v2119_v62, %v2118_v45  ;;  %v1893_v18 = vadd.f32 %v4434_v5, %v1892_v35 }
 0x3ec   :  { %v1932_v20 = vmax.f32 %v1893_v18, 0.0  ;;  %2254 = vmatmul.bf16.gmra.mxu2 %v2146_v27 }
 0x3ed   :  { %v2055_v29 = vpop.f32.mrf.mxu1 }
 0x3ee   :  { %v1950_v37 = vpack.c.bf16 %v1932_v20, %v1931_v31  ;;  %v2056_v19 = vadd.f32 %v4471_v60, %v2055_v29 }
 0x3f0   :  { %2094 = vmatmul.bf16.gmra.mxu1 %v1950_v37  ;;  %v2120_v38 = vmax.f32 %v2056_v19, 0.0 }
 0x3f1   :  { %v1895_v26 = vpop.f32.mrf.mxu0 }
 0x3f2   :  { %v1896_v24 = vadd.f32 %v4434_v5, %v1895_v26 }
 0x3f4   :  { %v1933_v61 = vmax.f32 %v1896_v24, 0.0 }
 0x3f5   :  { %v2057_v39 = vpop.f32.mrf.mxu1 }
 0x3f6   :  { %v2058_v50 = vadd.f32 %v4471_v60, %v2057_v39 }
 0x3f8   :  { %v2121_v15 = vmax.f32 %v2058_v50, 0.0 }
 0x3f9   :  { %v1897_v8 = vpop.f32.mrf.mxu0 }
 0x3fa   :  { %v2147_v56 = vpack.c.bf16 %v2121_v15, %v2120_v38  ;;  %v1898_v51 = vadd.f32 %v4434_v5, %v1897_v8 }
 0x3fc   :  { %v1934_v13 = vmax.f32 %v1898_v51, 0.0  ;;  %2259 = vmatmul.bf16.gmra.mxu2 %v2147_v56 }
 0x3fd   :  { %v2060_v4 = vpop.f32.mrf.mxu1 }
 0x3fe   :  { %v1951_v63 = vpack.c.bf16 %v1934_v13, %v1933_v61  ;;  %v2061_v36 = vadd.f32 %v4471_v60, %v2060_v4 }
 0x400   :  { %2099 = vmatmul.bf16.gmra.mxu1 %v1951_v63  ;;  %v2122_v14 = vmax.f32 %v2061_v36, 0.0 }
 0x401   :  { %v1900_v33 = vpop.f32.mrf.mxu0 }
 0x402   :  { %v1901_v57 = vadd.f32 %v4434_v5, %v1900_v33 }
 0x404   :  { %v1935_v16 = vmax.f32 %v1901_v57, 0.0 }
 0x405   :  { %v2062_v59 = vpop.f32.mrf.mxu1 }
 0x406   :  { %v2063_v25 = vadd.f32 %v4471_v60, %v2062_v59 }
 0x408   :  { %v2123_v23 = vmax.f32 %v2063_v25, 0.0 }
 0x409   :  { %v1902_v30 = vpop.f32.mrf.mxu0 }
 0x40a   :  { %v2148_v53 = vpack.c.bf16 %v2123_v23, %v2122_v14  ;;  %v1903_v34 = vadd.f32 %v4434_v5, %v1902_v30 }
 0x40c   :  { %v1936_v6 = vmax.f32 %v1903_v34, 0.0  ;;  %2264 = vmatmul.bf16.gmra.mxu2 %v2148_v53 }
 0x40d   :  { %v2065_v7 = vpop.f32.mrf.mxu1 }
 0x40e   :  { %v1952_v32 = vpack.c.bf16 %v1936_v6, %v1935_v16  ;;  %v2066_v21 = vadd.f32 %v4471_v60, %v2065_v7 }
 0x410   :  { %2104 = vmatmul.bf16.gmra.mxu1 %v1952_v32  ;;  %v2124_v40 = vmax.f32 %v2066_v21, 0.0 }
 0x415   :  { %v2067_v22 = vpop.f32.mrf.mxu1 }
 0x416   :  { %v2068_v55 = vadd.f32 %v4471_v60, %v2067_v22 }
 0x418   :  { %v2125_v12 = vmax.f32 %v2068_v55, 0.0 }
 0x41a   :  { %v2149_v49 = vpack.c.bf16 %v2125_v12, %v2124_v40 }
 0x41c   :  { %2269 = vmatmul.bf16.gmra.mxu2 %v2149_v49 }
 0x41d   :  { %v2070_v42 = vpop.f32.mrf.mxu1 }
 0x41e   :  { %v2071_v47 = vadd.f32 %v4471_v60, %v2070_v42 }
 0x420   :  { %v2126_v1 = vmax.f32 %v2071_v47, 0.0 }
 0x425   :  { %v2072_v10 = vpop.f32.mrf.mxu1 }
 0x426   :  { %v2073_v5 = vadd.f32 %v4471_v60, %v2072_v10 }
 0x428   :  { %v2127_v48 = vmax.f32 %v2073_v5, 0.0 }
 0x42a   :  { %v2150_v54 = vpack.c.bf16 %v2127_v48, %v2126_v1 }
 0x42c   :  { %2274 = vmatmul.bf16.gmra.mxu2 %v2150_v54 }
 0x42d   :  { %v2075_v44 = vpop.f32.mrf.mxu1 }
 0x42e   :  { %v2076_v2 = vadd.f32 %v4471_v60, %v2075_v44 }
 0x42f   :  { %v2235_v3 = vpop.f32.mrf.mxu2 }
 0x430   :  { %v4511_v17 = vadd.f32 %v4508_v41, %v2235_v3  ;;  %v2128_v58 = vmax.f32 %v2076_v2, 0.0 }
 0x432   :  { %2315 = vmax.xlane.f32.xlu0 %v4511_v17 }
 0x435   :  { %v2077_v9 = vpop.f32.mrf.mxu1 }
 0x436   :  { %v2078_v28 = vadd.f32 %v4471_v60, %v2077_v9 }
 0x437   :  { %v2237_v11 = vpop.f32.mrf.mxu2 }
 0x438   :  { %v2129_v0 = vmax.f32 %v2078_v28, 0.0  ;;  %v4517_v43 = vadd.f32 %v4508_v41, %v2237_v11 }
 0x43a   :  { %v2151_v46 = vpack.c.bf16 %v2129_v0, %v2128_v58  ;;  %2317 = vmax.xlane.f32.xlu0 %v4517_v43 }
 0x43c   :  { %2279 = vmatmul.bf16.gmra.mxu2 %v2151_v46 }
 0x43d   :  { %v2080_v45 = vpop.f32.mrf.mxu1 }
 0x43e   :  { %v2081_v35 = vadd.f32 %v4471_v60, %v2080_v45 }
 0x43f   :  { %v2240_v52 = vpop.f32.mrf.mxu2 }
 0x440   :  { %v4521_v62 = vadd.f32 %v4508_v41, %v2240_v52  ;;  %v2130_v20 = vmax.f32 %v2081_v35, 0.0 }
 0x442   :  { %2319 = vmax.xlane.f32.xlu1 %v4521_v62 }
 0x445   :  { %v2082_v27 = vpop.f32.mrf.mxu1 }
 0x446   :  { %v2083_v18 = vadd.f32 %v4471_v60, %v2082_v27 }
 0x447   :  { %v2242_v31 = vpop.f32.mrf.mxu2 }
 0x448   :  { %v2131_v29 = vmax.f32 %v2083_v18, 0.0  ;;  %v4527_v37 = vadd.f32 %v4508_v41, %v2242_v31 }
 0x44a   :  { %v2152_v26 = vpack.c.bf16 %v2131_v29, %v2130_v20  ;;  %2321 = vmax.xlane.f32.xlu1 %v4527_v37 }
 0x44c   :  { %2284 = vmatmul.bf16.gmra.mxu2 %v2152_v26 }
 0x44d   :  { %v2085_v19 = vpop.f32.mrf.mxu1 }
 0x44e   :  { %v2086_v38 = vadd.f32 %v4471_v60, %v2085_v19 }
 0x44f   :  { %v2245_v39 = vpop.f32.mrf.mxu2 }
 0x450   :  { %v4531_v50 = vadd.f32 %v4508_v41, %v2245_v39  ;;  %v2132_v56 = vmax.f32 %v2086_v38, 0.0 }
 0x452   :  { %2323 = vmax.xlane.f32.xlu2 %v4531_v50 }
 0x455   :  { %v2087_v24 = vpop.f32.mrf.mxu1 }
 0x456   :  { %v2088_v15 = vadd.f32 %v4471_v60, %v2087_v24 }
 0x457   :  { %v2247_v8 = vpop.f32.mrf.mxu2 }
 0x458   :  { %v2133_v51 = vmax.f32 %v2088_v15, 0.0  ;;  %v4537_v61 = vadd.f32 %v4508_v41, %v2247_v8 }
 0x45a   :  { %v2153_v13 = vpack.c.bf16 %v2133_v51, %v2132_v56  ;;  %2325 = vmax.xlane.f32.xlu2 %v4537_v61 }
 0x45c   :  { %2289 = vmatmul.bf16.gmra.mxu2 %v2153_v13 }
 0x45d   :  { %v2090_v4 = vpop.f32.mrf.mxu1 }
 0x45e   :  { %v2091_v36 = vadd.f32 %v4471_v60, %v2090_v4 }
 0x45f   :  { %v2250_v63 = vpop.f32.mrf.mxu2 }
 0x460   :  { %v4541_v33 = vadd.f32 %v4508_v41, %v2250_v63  ;;  %v2134_v57 = vmax.f32 %v2091_v36, 0.0 }
 0x462   :  { %2327 = vmax.xlane.f32.xlu0 %v4541_v33 }
 0x465   :  { %v2092_v59 = vpop.f32.mrf.mxu1 }
 0x466   :  { %v2093_v25 = vadd.f32 %v4471_v60, %v2092_v59 }
 0x467   :  { %v2252_v14 = vpop.f32.mrf.mxu2 }
 0x468   :  { %v2135_v23 = vmax.f32 %v2093_v25, 0.0  ;;  %v4547_v30 = vadd.f32 %v4508_v41, %v2252_v14 }
 0x46a   :  { %v2154_v53 = vpack.c.bf16 %v2135_v23, %v2134_v57  ;;  %2329 = vmax.xlane.f32.xlu1 %v4547_v30 }
 0x46c   :  { %2294 = vmatmul.bf16.gmra.mxu2 %v2154_v53 }
 0x46d   :  { %v2095_v34 = vpop.f32.mrf.mxu1 }
 0x46e   :  { %v2096_v7 = vadd.f32 %v4471_v60, %v2095_v34 }
 0x46f   :  { %v2255_v16 = vpop.f32.mrf.mxu2 }
 0x470   :  { %v4551_v6 = vadd.f32 %v4508_v41, %v2255_v16  ;;  %v2136_v55 = vmax.f32 %v2096_v7, 0.0 }
 0x472   :  { %2331 = vmax.xlane.f32.xlu2 %v4551_v6 }
 0x475   :  { %v2097_v32 = vpop.f32.mrf.mxu1 }
 0x476   :  { %v2098_v21 = vadd.f32 %v4471_v60, %v2097_v32 }
 0x477   :  { %v2257_v22 = vpop.f32.mrf.mxu2 }
 0x478   :  { %v2137_v40 = vmax.f32 %v2098_v21, 0.0  ;;  %v4557_v12 = vadd.f32 %v4508_v41, %v2257_v22 }
 0x47a   :  { %v2155_v49 = vpack.c.bf16 %v2137_v40, %v2136_v55  ;;  %2333 = vmax.xlane.f32.xlu0 %v4557_v12 }
 0x47c   :  { %2299 = vmatmul.bf16.gmra.mxu2 %v2155_v49 }
 0x47d   :  { %v2100_v42 = vpop.f32.mrf.mxu1 }
 0x47e   :  { %v2101_v5 = vadd.f32 %v4471_v60, %v2100_v42 }
 0x47f   :  { %v2260_v47 = vpop.f32.mrf.mxu2 }
 0x480   :  { %v4561_v10 = vadd.f32 %v4508_v41, %v2260_v47  ;;  %v2138_v44 = vmax.f32 %v2101_v5, 0.0 }
 0x482   :  { %2335 = vmax.xlane.f32.xlu1 %v4561_v10 }
 0x485   :  { %v2102_v1 = vpop.f32.mrf.mxu1 }
 0x486   :  { %v2103_v48 = vadd.f32 %v4471_v60, %v2102_v1 }
 0x487   :  { %v2262_v54 = vpop.f32.mrf.mxu2 }
 0x488   :  { %v2139_v3 = vmax.f32 %v2103_v48, 0.0  ;;  %v4567_v2 = vadd.f32 %v4508_v41, %v2262_v54 }
 0x48a   :  { %v2156_v9 = vpack.c.bf16 %v2139_v3, %v2138_v44  ;;  %2337 = vmax.xlane.f32.xlu2 %v4567_v2 }
 0x48c   :  { %2304 = vmatmul.bf16.gmra.mxu2 %v2156_v9 }
 0x48d   :  { %v2105_v28 = vpop.f32.mrf.mxu1 }
 0x48e   :  { %v2106_v0 = vadd.f32 %v4471_v60, %v2105_v28 }
 0x48f   :  { %v2265_v11 = vpop.f32.mrf.mxu2 }
 0x490   :  { %v4571_v58 = vadd.f32 %v4508_v41, %v2265_v11  ;;  %v2140_v35 = vmax.f32 %v2106_v0, 0.0 }
 0x492   :  { %2339 = vmax.xlane.f32.xlu0 %v4571_v58 }
 0x495   :  { %v2107_v46 = vpop.f32.mrf.mxu1 }
 0x496   :  { %v2108_v45 = vadd.f32 %v4471_v60, %v2107_v46 }
 0x497   :  { %v2267_v52 = vpop.f32.mrf.mxu2 }
 0x498   :  { %v2141_v27 = vmax.f32 %v2108_v45, 0.0  ;;  %v4577_v18 = vadd.f32 %v4508_v41, %v2267_v52 }
 0x49a   :  { %v2157_v31 = vpack.c.bf16 %v2141_v27, %v2140_v35  ;;  %2341 = vmax.xlane.f32.xlu1 %v4577_v18 }
 0x49c   :  { %2309 = vmatmul.bf16.gmra.mxu2 %v2157_v31 }
 0x49f   :  { %v2270_v20 = vpop.f32.mrf.mxu2 }
 0x4a0   :  { %v4581_v29 = vadd.f32 %v4508_v41, %v2270_v20 }
 0x4a2   :  { %2343 = vmax.xlane.f32.xlu2 %v4581_v29 }
 0x4a5   :  { %v2316_v26 = vpop.xlane.xlu0 %2315 }
 0x4a6   :  { %v2379_v19 = vsub.f32 %v4511_v17, %v2316_v26 }
 0x4a7   :  { %v2272_v60 = vpop.f32.mrf.mxu2 }
 0x4a8   :  { %v2411_v39 = vmul.f32 1.442695, %v2379_v19  ;;  %v4586_v38 = vadd.f32 %v4508_v41, %v2272_v60 }
 0x4aa   :  { %3379 = vpow2.f32 %v2411_v39  ;;  %2345 = vmax.xlane.f32.xlu0 %v4586_v38 }
 0x4ad   :  { %v2318_v24 = vpop.xlane.xlu0 %2317 }
 0x4ae   :  { %v2380_v15 = vsub.f32 %v4517_v43, %v2318_v24 }
 0x4af   :  { %v2275_v8 = vpop.f32.mrf.mxu2 }
 0x4b0   :  { %v4590_v56 = vpop.eup %3379  ;;  %v2413_v51 = vmul.f32 1.442695, %v2380_v15  ;;  %v4593_v13 = vadd.f32 %v4508_v41, %v2275_v8 }
 0x4b1   :  { %2475 = vadd.xlane.f32.xlu2 %v4590_v56 }
 0x4b2   :  { %3381 = vpow2.f32 %v2413_v51  ;;  %2347 = vmax.xlane.f32.xlu1 %v4593_v13 }
 0x4b5   :  { %v2320_v17 = vpop.xlane.xlu1 %2319 }
 0x4b6   :  { %v2381_v4 = vsub.f32 %v4521_v62, %v2320_v17 }
 0x4b7   :  { %v2277_v63 = vpop.f32.mrf.mxu2 }
 0x4b8   :  { %v4598_v36 = vpop.eup %3381  ;;  %v2415_v59 = vmul.f32 1.442695, %v2381_v4  ;;  %v4601_v43 = vadd.f32 %v4508_v41, %v2277_v63 }
 0x4b9   :  { %2477 = vadd.xlane.f32.xlu0 %v4598_v36 }
 0x4ba   :  { %3383 = vpow2.f32 %v2415_v59  ;;  %2349 = vmax.xlane.f32.xlu2 %v4601_v43 }
 0x4bd   :  { %v2322_v25 = vpop.xlane.xlu1 %2321 }
 0x4be   :  { %v2382_v14 = vsub.f32 %v4527_v37, %v2322_v25 }
 0x4bf   :  { %v2280_v57 = vpop.f32.mrf.mxu2 }
 0x4c0   :  { %v4606_v23 = vpop.eup %3383  ;;  %v2417_v53 = vmul.f32 1.442695, %v2382_v14  ;;  %v4609_v62 = vadd.f32 %v4508_v41, %v2280_v57 }
 0x4c1   :  { %2479 = vadd.xlane.f32.xlu1 %v4606_v23 }
 0x4c2   :  { %3385 = vpow2.f32 %v2417_v53  ;;  %2351 = vmax.xlane.f32.xlu0 %v4609_v62 }
 0x4c5   :  { %v2324_v34 = vpop.xlane.xlu2 %2323 }
 0x4c6   :  { %v2383_v16 = vsub.f32 %v4531_v50, %v2324_v34 }
 0x4c7   :  { %v2282_v7 = vpop.f32.mrf.mxu2 }
 0x4c8   :  { %v4614_v32 = vpop.eup %3385  ;;  %v2419_v21 = vmul.f32 1.442695, %v2383_v16  ;;  %v4617_v37 = vadd.f32 %v4508_v41, %v2282_v7 }
 0x4c9   :  { %2481 = vadd.xlane.f32.xlu2 %v4614_v32 }
 0x4ca   :  { %3387 = vpow2.f32 %v2419_v21  ;;  %2353 = vmax.xlane.f32.xlu1 %v4617_v37 }
 0x4cd   :  { %v2326_v22 = vpop.xlane.xlu2 %2325 }
 0x4ce   :  { %v2384_v55 = vsub.f32 %v4537_v61, %v2326_v22 }
 0x4cf   :  { %v2285_v40 = vpop.f32.mrf.mxu2 }
 0x4d0   :  { %v4622_v49 = vpop.eup %3387  ;;  %v2421_v42 = vmul.f32 1.442695, %v2384_v55  ;;  %v4625_v50 = vadd.f32 %v4508_v41, %v2285_v40 }
 0x4d1   :  { %2483 = vadd.xlane.f32.xlu0 %v4622_v49 }
 0x4d2   :  { %3389 = vpow2.f32 %v2421_v42  ;;  %2355 = vmax.xlane.f32.xlu2 %v4625_v50 }
 0x4d5   :  { %v2328_v47 = vpop.xlane.xlu0 %2327 }
 0x4d6   :  { %v2385_v5 = vsub.f32 %v4541_v33, %v2328_v47 }
 0x4d7   :  { %v2287_v1 = vpop.f32.mrf.mxu2 }
 0x4d8   :  { %v4630_v48 = vpop.eup %3389  ;;  %v2423_v54 = vmul.f32 1.442695, %v2385_v5  ;;  %v4633_v61 = vadd.f32 %v4508_v41, %v2287_v1 }
 0x4d9   :  { %2485 = vadd.xlane.f32.xlu1 %v4630_v48 }
 0x4da   :  { %3391 = vpow2.f32 %v2423_v54  ;;  %2357 = vmax.xlane.f32.xlu0 %v4633_v61 }
 0x4dd   :  { %v2330_v44 = vpop.xlane.xlu1 %2329 }
 0x4de   :  { %v2386_v3 = vsub.f32 %v4547_v30, %v2330_v44 }
 0x4df   :  { %v2290_v9 = vpop.f32.mrf.mxu2 }
 0x4e0   :  { %v4638_v28 = vpop.eup %3391  ;;  %v2425_v11 = vmul.f32 1.442695, %v2386_v3  ;;  %v4641_v33 = vadd.f32 %v4508_v41, %v2290_v9 }
 0x4e1   :  { %2487 = vadd.xlane.f32.xlu2 %v4638_v28 }
 0x4e2   :  { %3393 = vpow2.f32 %v2425_v11  ;;  %2359 = vmax.xlane.f32.xlu1 %v4641_v33 }
 0x4e5   :  { %v2332_v0 = vpop.xlane.xlu2 %2331 }
 0x4e6   :  { %v2387_v46 = vsub.f32 %v4551_v6, %v2332_v0 }
 0x4e7   :  { %v2292_v45 = vpop.f32.mrf.mxu2 }
 0x4e8   :  { %v4646_v52 = vpop.eup %3393  ;;  %v2427_v35 = vmul.f32 1.442695, %v2387_v46  ;;  %v4649_v30 = vadd.f32 %v4508_v41, %v2292_v45 }
 0x4e9   :  { %2489 = vadd.xlane.f32.xlu0 %v4646_v52 }
 0x4ea   :  { %3395 = vpow2.f32 %v2427_v35  ;;  %2361 = vmax.xlane.f32.xlu2 %v4649_v30 }
 0x4ed   :  { %v2334_v27 = vpop.xlane.xlu0 %2333 }
 0x4ee   :  { %v2388_v31 = vsub.f32 %v4557_v12, %v2334_v27 }
 0x4ef   :  { %v2295_v20 = vpop.f32.mrf.mxu2 }
 0x4f0   :  { %v4654_v26 = vpop.eup %3395  ;;  %v2429_v19 = vmul.f32 1.442695, %v2388_v31  ;;  %v4657_v6 = vadd.f32 %v4508_v41, %v2295_v20 }
 0x4f1   :  { %2491 = vadd.xlane.f32.xlu1 %v4654_v26 }
 0x4f2   :  { %3397 = vpow2.f32 %v2429_v19  ;;  %2363 = vmax.xlane.f32.xlu0 %v4657_v6 }
 0x4f5   :  { %v2336_v60 = vpop.xlane.xlu1 %2335 }
 0x4f6   :  { %v2389_v39 = vsub.f32 %v4561_v10, %v2336_v60 }
 0x4f7   :  { %v2297_v24 = vpop.f32.mrf.mxu2 }
 0x4f8   :  { %v4662_v15 = vpop.eup %3397  ;;  %v2431_v8 = vmul.f32 1.442695, %v2389_v39  ;;  %v4665_v12 = vadd.f32 %v4508_v41, %v2297_v24 }
 0x4f9   :  { %2493 = vadd.xlane.f32.xlu2 %v4662_v15 }
 0x4fa   :  { %3399 = vpow2.f32 %v2431_v8  ;;  %2365 = vmax.xlane.f32.xlu1 %v4665_v12 }
 0x4fd   :  { %v2338_v53 = vpop.xlane.xlu2 %2337 }
 0x4fe   :  { %v2390_v44 = vsub.f32 %v4567_v2, %v2338_v53 }
 0x4ff   :  { %v2300_v51 = vpop.f32.mrf.mxu2 }
 0x500   :  { %v4669_v17 = vpop.eup %3399  ;;  %v4672_v4 = vadd.f32 %v4508_v41, %v2300_v51  ;;  %v2433_v9 = vmul.f32 1.442695, %v2390_v44 }
 0x501   :  { %2495 = vadd.xlane.f32.xlu0 %v4669_v17 }
 0x502   :  { %2367 = vmax.xlane.f32.xlu2 %v4672_v4 }
 0x505   :  { %v2340_v25 = vpop.xlane.xlu0 %2339 }
 0x506   :  { %v2391_v57 = vsub.f32 %v4571_v58, %v2340_v25 }
 0x507   :  { %v2302_v10 = vpop.f32.mrf.mxu2 }
 0x508   :  { %v4677_v63 = vadd.f32 %v4508_v41, %v2302_v10  ;;  %v2435_v34 = vmul.f32 1.442695, %v2391_v57 }
 0x50a   :  { %2369 = vmax.xlane.f32.xlu0 %v4677_v63  ;;  %3401 = vpow2.f32 %v2435_v34 }
 0x50d   :  { %v2342_v7 = vpop.xlane.xlu1 %2341 }
 0x50e   :  { %v2392_v22 = vsub.f32 %v4577_v18, %v2342_v7 }
 0x50f   :  { %v2305_v59 = vpop.f32.mrf.mxu2 }
 0x510   :  { %v4681_v14 = vadd.f32 %v4508_v41, %v2305_v59  ;;  %v2437_v47 = vmul.f32 1.442695, %v2392_v22  ;;  %v4694_v54 = vpop.eup %3401 }
 0x512   :  { %2371 = vmax.xlane.f32.xlu1 %v4681_v14 }
 0x515   :  { %v2344_v55 = vpop.xlane.xlu2 %2343 }
 0x516   :  { %v2393_v27 = vsub.f32 %v4581_v29, %v2344_v55 }
 0x517   :  { %v2307_v16 = vpop.f32.mrf.mxu2 }
 0x518   :  { %v4686_v21 = vadd.f32 %v4508_v41, %v2307_v16 }
 0x51a   :  { %2373 = vmax.xlane.f32.xlu2 %v4686_v21 }
 0x51d   :  { %v2346_v40 = vpop.xlane.xlu0 %2345 }
 0x51e   :  { %v2394_v42 = vsub.f32 %v4586_v38, %v2346_v40 }
 0x51f   :  { %v2310_v5 = vpop.f32.mrf.mxu2 }
 0x520   :  { %v2441_v1 = vmul.f32 1.442695, %v2394_v42  ;;  %v4692_v58 = vadd.f32 %v4508_v41, %v2310_v5 }
 0x522   :  { %3403 = vpow2.f32 %v2441_v1  ;;  %2375 = vmax.xlane.f32.xlu0 %v4692_v58  ;;  %2499 = vadd.xlane.f32.xlu2 %v4694_v54 }
 0x523   :  { %3405 = vpow2.f32 %v2437_v47 }
 0x524   :  { %v2476_v18 = vpop.xlane.xlu2 %2475 }
 0x525   :  { %3407 = vrcp.f32 %v2476_v18  ;;  %v2348_v3 = vpop.xlane.xlu1 %2347 }
 0x526   :  { %v2395_v38 = vsub.f32 %v4593_v13, %v2348_v3 }
 0x527   :  { %v2312_v11 = vpop.f32.mrf.mxu2 }
 0x528   :  { %v4700_v0 = vpop.eup %3403  ;;  %v2443_v46 = vmul.f32 1.442695, %v2395_v38  ;;  %v4703_v45 = vadd.f32 %v4508_v41, %v2312_v11  ;;  %v2439_v41 = vmul.f32 1.442695, %v2393_v27 }
 0x529   :  { %v4705_v35 = vpop.eup %3405 }
 0x52a   :  { %3409 = vpow2.f32 %v2443_v46  ;;  %2377 = vmax.xlane.f32.xlu1 %v4703_v45  ;;  %2501 = vadd.xlane.f32.xlu0 %v4705_v35 }
 0x52b   :  { %v3408_v2 = vpop.eup %3407  ;;  %3411 = vpow2.f32 %v2433_v9  ;;  %2505 = vadd.xlane.f32.xlu2 %v4700_v0 }
 0x52c   :  { %v2571_v13 = vmul.f32 %v3408_v2, %v4590_v56  ;;  %v2478_v31 = vpop.xlane.xlu0 %2477 }
 0x52d   :  { %3413 = vrcp.f32 %v2478_v31  ;;  %v2350_v19 = vpop.xlane.xlu2 %2349 }
 0x52e   :  { %2603 = vst [vmem:[#allocation14] sm:$0xff] %v2571_v13  ;;  %3415 = vpow2.f32 %v2439_v41  ;;  %v2396_v29 = vsub.f32 %v4601_v43, %v2350_v19 }
 0x530   :  { %v4712_v20 = vpop.eup %3409  ;;  %v2445_v10 = vmul.f32 1.442695, %v2396_v29 }
 0x531   :  { %v4714_v60 = vpop.eup %3411 }
 0x532   :  { %2497 = vadd.xlane.f32.xlu1 %v4714_v60  ;;  %2507 = vadd.xlane.f32.xlu0 %v4712_v20 }
 0x533   :  { %v3414_v39 = vpop.eup %3413 }
 0x534   :  { %v2572_v24 = vmul.f32 %v3414_v39, %v4598_v36  ;;  %v2480_v56 = vpop.xlane.xlu1 %2479  ;;  %v4721_v25 = vpop.eup %3415 }
 0x535   :  { %3417 = vrcp.f32 %v2480_v56  ;;  %v2352_v8 = vpop.xlane.xlu0 %2351 }
 0x536   :  { %2604 = vst [vmem:[#allocation14 + $0x8] sm:$0xff] %v2572_v24  ;;  %v2397_v51 = vsub.f32 %v4609_v62, %v2352_v8 }
 0x538   :  { %v2447_v59 = vmul.f32 1.442695, %v2397_v51 }
 0x53a   :  { %3419 = vpow2.f32 %v2447_v59  ;;  %2503 = vadd.xlane.f32.xlu1 %v4721_v25 }
 0x53b   :  { %v3418_v57 = vpop.eup %3417  ;;  %3421 = vpow2.f32 %v2445_v10 }
 0x53c   :  { %v2573_v53 = vmul.f32 %v3418_v57, %v4606_v23  ;;  %v2482_v43 = vpop.xlane.xlu2 %2481 }
 0x53d   :  { %3423 = vrcp.f32 %v2482_v43  ;;  %v2354_v36 = vpop.xlane.xlu1 %2353 }
 0x53e   :  { %2605 = vst [vmem:[#allocation14 + $0x10] sm:$0xff] %v2573_v53  ;;  %v2398_v34 = vsub.f32 %v4617_v37, %v2354_v36 }
 0x540   :  { %v4726_v16 = vpop.eup %3419  ;;  %v2449_v62 = vmul.f32 1.442695, %v2398_v34 }
 0x541   :  { %v4728_v7 = vpop.eup %3421  ;;  %2511 = vadd.xlane.f32.xlu2 %v4726_v16 }
 0x542   :  { %3425 = vpow2.f32 %v2449_v62  ;;  %2509 = vadd.xlane.f32.xlu1 %v4728_v7 }
 0x543   :  { %v3424_v22 = vpop.eup %3423 }
 0x544   :  { %v2574_v55 = vmul.f32 %v3424_v22, %v4614_v32  ;;  %v2484_v23 = vpop.xlane.xlu0 %2483 }
 0x545   :  { %3427 = vrcp.f32 %v2484_v23  ;;  %v2356_v40 = vpop.xlane.xlu2 %2355 }
 0x546   :  { %2606 = vst [vmem:[#allocation14 + $0x18] sm:$0xff] %v2574_v55  ;;  %v2399_v42 = vsub.f32 %v4625_v50, %v2356_v40 }
 0x548   :  { %v4734_v37 = vpop.eup %3425  ;;  %v2451_v47 = vmul.f32 1.442695, %v2399_v42 }
 0x549   :  { %2513 = vadd.xlane.f32.xlu0 %v4734_v37 }
 0x54a   :  { %3429 = vpow2.f32 %v2451_v47 }
 0x54b   :  { %v3428_v5 = vpop.eup %3427 }
 0x54c   :  { %v2575_v1 = vmul.f32 %v3428_v5, %v4622_v49  ;;  %v2486_v44 = vpop.xlane.xlu1 %2485 }
 0x54d   :  { %3431 = vrcp.f32 %v2486_v44  ;;  %v2358_v18 = vpop.xlane.xlu0 %2357 }
 0x54e   :  { %2607 = vst [vmem:[#allocation14 + $0x20] sm:$0xff] %v2575_v1  ;;  %v2400_v32 = vsub.f32 %v4633_v61, %v2358_v18 }
 0x550   :  { %v4739_v3 = vpop.eup %3429  ;;  %v2453_v38 = vmul.f32 1.442695, %v2400_v32 }
 0x551   :  { %2515 = vadd.xlane.f32.xlu1 %v4739_v3 }
 0x552   :  { %3433 = vpow2.f32 %v2453_v38 }
 0x553   :  { %v3432_v50 = vpop.eup %3431 }
 0x554   :  { %v2576_v9 = vmul.f32 %v3432_v50, %v4630_v48  ;;  %v2488_v11 = vpop.xlane.xlu2 %2487 }
 0x555   :  { %3435 = vrcp.f32 %v2488_v11  ;;  %v2360_v46 = vpop.xlane.xlu1 %2359 }
 0x556   :  { %2608 = vst [vmem:[#allocation14 + $0x28] sm:$0xff] %v2576_v9  ;;  %v2401_v49 = vsub.f32 %v4641_v33, %v2360_v46 }
 0x558   :  { %v4744_v2 = vpop.eup %3433  ;;  %v2455_v27 = vmul.f32 1.442695, %v2401_v49 }
 0x559   :  { %2517 = vadd.xlane.f32.xlu2 %v4744_v2 }
 0x55a   :  { %3437 = vpow2.f32 %v2455_v27 }
 0x55b   :  { %v3436_v61 = vpop.eup %3435 }
 0x55c   :  { %v2577_v13 = vmul.f32 %v3436_v61, %v4638_v28  ;;  %v2490_v31 = vpop.xlane.xlu0 %2489 }
 0x55d   :  { %3439 = vrcp.f32 %v2490_v31  ;;  %v2362_v41 = vpop.xlane.xlu2 %2361 }
 0x55e   :  { %2609 = vst [vmem:[#allocation14 + $0x30] sm:$0xff] %v2577_v13  ;;  %v2402_v48 = vsub.f32 %v4649_v30, %v2362_v41 }
 0x560   :  { %v4749_v19 = vpop.eup %3437  ;;  %v2457_v39 = vmul.f32 1.442695, %v2402_v48 }
 0x561   :  { %2519 = vadd.xlane.f32.xlu0 %v4749_v19 }
 0x562   :  { %3441 = vpow2.f32 %v2457_v39 }
 0x563   :  { %v3440_v33 = vpop.eup %3439 }
 0x564   :  { %v2578_v29 = vmul.f32 %v3440_v33, %v4646_v52  ;;  %v2492_v24 = vpop.xlane.xlu1 %2491 }
 0x565   :  { %3443 = vrcp.f32 %v2492_v24  ;;  %v2364_v56 = vpop.xlane.xlu0 %2363 }
 0x566   :  { %2610 = vst [vmem:[#allocation14 + $0x38] sm:$0xff] %v2578_v29  ;;  %v2403_v28 = vsub.f32 %v4657_v6, %v2364_v56 }
 0x568   :  { %v4754_v8 = vpop.eup %3441  ;;  %v2459_v51 = vmul.f32 1.442695, %v2403_v28 }
 0x569   :  { %2521 = vadd.xlane.f32.xlu1 %v4754_v8 }
 0x56a   :  { %3445 = vpow2.f32 %v2459_v51 }
 0x56b   :  { %v3444_v30 = vpop.eup %3443 }
 0x56c   :  { %v2579_v10 = vmul.f32 %v3444_v30, %v4654_v26  ;;  %v2494_v59 = vpop.xlane.xlu2 %2493 }
 0x56d   :  { %3447 = vrcp.f32 %v2494_v59  ;;  %v2366_v57 = vpop.xlane.xlu1 %2365 }
 0x56e   :  { %2611 = vst [vmem:[#allocation14 + $0x40] sm:$0xff] %v2579_v10  ;;  %v2404_v52 = vsub.f32 %v4665_v12, %v2366_v57 }
 0x570   :  { %v4759_v53 = vpop.eup %3445  ;;  %v2461_v43 = vmul.f32 1.442695, %v2404_v52 }
 0x571   :  { %2523 = vadd.xlane.f32.xlu2 %v4759_v53 }
 0x572   :  { %3449 = vpow2.f32 %v2461_v43 }
 0x573   :  { %v3448_v6 = vpop.eup %3447 }
 0x574   :  { %v2580_v36 = vmul.f32 %v3448_v6, %v4662_v15  ;;  %v2496_v34 = vpop.xlane.xlu0 %2495 }
 0x575   :  { %3451 = vrcp.f32 %v2496_v34  ;;  %v2368_v62 = vpop.xlane.xlu2 %2367 }
 0x576   :  { %2612 = vst [vmem:[#allocation14 + $0x48] sm:$0xff] %v2580_v36  ;;  %v2405_v26 = vsub.f32 %v4672_v4, %v2368_v62 }
 0x578   :  { %v4764_v22 = vpop.eup %3449  ;;  %v2463_v55 = vmul.f32 1.442695, %v2405_v26 }
 0x579   :  { %2525 = vadd.xlane.f32.xlu0 %v4764_v22 }
 0x57a   :  { %3453 = vpow2.f32 %v2463_v55 }
 0x57b   :  { %v3452_v12 = vpop.eup %3451 }
 0x57c   :  { %v2581_v23 = vmul.f32 %v3452_v12, %v4669_v17 }
 0x57d   :  { %v2370_v40 = vpop.xlane.xlu0 %2369 }
 0x57e   :  { %2613 = vst [vmem:[#allocation14 + $0x50] sm:$0xff] %v2581_v23  ;;  %v2406_v42 = vsub.f32 %v4677_v63, %v2370_v40 }
 0x580   :  { %v4769_v15 = vpop.eup %3453  ;;  %v2465_v47 = vmul.f32 1.442695, %v2406_v42 }
 0x581   :  { %2527 = vadd.xlane.f32.xlu1 %v4769_v15 }
 0x582   :  { %3455 = vpow2.f32 %v2465_v47 }
 0x585   :  { %v2372_v4 = vpop.xlane.xlu1 %2371 }
 0x586   :  { %v2407_v5 = vsub.f32 %v4681_v14, %v2372_v4 }
 0x588   :  { %v4773_v1 = vpop.eup %3455  ;;  %v2467_v44 = vmul.f32 1.442695, %v2407_v5 }
 0x589   :  { %2529 = vadd.xlane.f32.xlu2 %v4773_v1 }
 0x58a   :  { %3457 = vpow2.f32 %v2467_v44 }
 0x58d   :  { %v2374_v17 = vpop.xlane.xlu2 %2373 }
 0x58e   :  { %v2408_v18 = vsub.f32 %v4686_v21, %v2374_v17 }
 0x590   :  { %v4777_v32 = vpop.eup %3457  ;;  %v2469_v63 = vmul.f32 1.442695, %v2408_v18 }
 0x591   :  { %2531 = vadd.xlane.f32.xlu0 %v4777_v32 }
 0x592   :  { %3459 = vpow2.f32 %v2469_v63 }
 0x595   :  { %v2500_v38 = vpop.xlane.xlu2 %2499  ;;  %v2376_v50 = vpop.xlane.xlu0 %2375 }
 0x596   :  { %3461 = vrcp.f32 %v2500_v38  ;;  %v2409_v14 = vsub.f32 %v4692_v58, %v2376_v50 }
 0x598   :  { %v4781_v9 = vpop.eup %3459  ;;  %v2471_v11 = vmul.f32 1.442695, %v2409_v14 }
 0x599   :  { %2533 = vadd.xlane.f32.xlu1 %v4781_v9 }
 0x59a   :  { %3463 = vpow2.f32 %v2471_v11 }
 0x59c   :  { %v3462_v46 = vpop.eup %3461 }
 0x59d   :  { %v2583_v21 = vmul.f32 %v3462_v46, %v4694_v54  ;;  %v2378_v49 = vpop.xlane.xlu1 %2377  ;;  %v2502_v27 = vpop.xlane.xlu0 %2501 }
 0x59e   :  { %v2410_v61 = vsub.f32 %v4703_v45, %v2378_v49  ;;  %v2506_v13 = vpop.xlane.xlu2 %2505  ;;  %3465 = vrcp.f32 %v2502_v27 }
 0x59f   :  { %2615 = vst [vmem:[#allocation14 + $0x60] sm:$0xff] %v2583_v21  ;;  %3467 = vrcp.f32 %v2506_v13 }
 0x5a0   :  { %v4786_v31 = vpop.eup %3463  ;;  %v2473_v58 = vmul.f32 1.442695, %v2410_v61 }
 0x5a1   :  { %2535 = vadd.xlane.f32.xlu2 %v4786_v31 }
 0x5a2   :  { %3469 = vpow2.f32 %v2473_v58 }
 0x5a4   :  { %v3466_v41 = vpop.eup %3465 }
 0x5a5   :  { %v3468_v48 = vpop.eup %3467  ;;  %v2584_v39 = vmul.f32 %v3466_v41, %v4705_v35  ;;  %v2498_v33 = vpop.xlane.xlu1 %2497 }
 0x5a6   :  { %v2508_v54 = vpop.xlane.xlu0 %2507  ;;  %v2586_v29 = vmul.f32 %v3468_v48, %v4700_v0  ;;  %3471 = vrcp.f32 %v2498_v33 }
 0x5a7   :  { %2616 = vst [vmem:[#allocation14 + $0x68] sm:$0xff] %v2584_v39  ;;  %3473 = vrcp.f32 %v2508_v54 }
 0x5a8   :  { %v4791_v45 = vpop.eup %3469  ;;  %2618 = vst [vmem:[#allocation14 + $0x78] sm:$0xff] %v2586_v29 }
 0x5a9   :  { %2537 = vadd.xlane.f32.xlu0 %v4791_v45 }
 0x5ac   :  { %v3472_v24 = vpop.eup %3471 }
 0x5ad   :  { %v3474_v56 = vpop.eup %3473  ;;  %v2582_v28 = vmul.f32 %v3472_v24, %v4714_v60  ;;  %v2504_v51 = vpop.xlane.xlu1 %2503 }
 0x5ae   :  { %v2587_v30 = vmul.f32 %v3474_v56, %v4712_v20  ;;  %3475 = vrcp.f32 %v2504_v51 }
 0x5af   :  { %2614 = vst [vmem:[#allocation14 + $0x58] sm:$0xff] %v2582_v28 }
 0x5b0   :  { %2619 = vst [vmem:[#allocation14 + $0x80] sm:$0xff] %v2587_v30 }
 0x5b4   :  { %v3476_v35 = vpop.eup %3475  ;;  %v2512_v0 = vpop.xlane.xlu2 %2511 }
 0x5b5   :  { %v2585_v10 = vmul.f32 %v3476_v35, %v4721_v25  ;;  %3477 = vrcp.f32 %v2512_v0  ;;  %v2510_v59 = vpop.xlane.xlu1 %2509 }
 0x5b6   :  { %3479 = vrcp.f32 %v2510_v59 }
 0x5b7   :  { %2617 = vst [vmem:[#allocation14 + $0x70] sm:$0xff] %v2585_v10 }
 0x5bb   :  { %v3478_v57 = vpop.eup %3477 }
 0x5bc   :  { %v3480_v52 = vpop.eup %3479  ;;  %v2589_v43 = vmul.f32 %v3478_v57, %v4726_v16  ;;  %v2514_v6 = vpop.xlane.xlu0 %2513 }
 0x5bd   :  { %v2588_v60 = vmul.f32 %v3480_v52, %v4728_v7  ;;  %3481 = vrcp.f32 %v2514_v6 }
 0x5be   :  { %2621 = vst [vmem:[#allocation14 + $0x90] sm:$0xff] %v2589_v43 }
 0x5bf   :  { %2620 = vst [vmem:[#allocation14 + $0x88] sm:$0xff] %v2588_v60 }
 0x5c3   :  { %v3482_v20 = vpop.eup %3481 }
 0x5c4   :  { %v2590_v36 = vmul.f32 %v3482_v20, %v4734_v37  ;;  %v2516_v34 = vpop.xlane.xlu1 %2515 }
 0x5c5   :  { %3483 = vrcp.f32 %v2516_v34 }
 0x5c6   :  { %2622 = vst [vmem:[#allocation14 + $0x98] sm:$0xff] %v2590_v36 }
 0x5cb   :  { %v3484_v25 = vpop.eup %3483 }
 0x5cc   :  { %v2591_v62 = vmul.f32 %v3484_v25, %v4739_v3  ;;  %v2518_v26 = vpop.xlane.xlu2 %2517 }
 0x5cd   :  { %3485 = vrcp.f32 %v2518_v26 }
 0x5ce   :  { %2623 = vst [vmem:[#allocation14 + $0xa0] sm:$0xff] %v2591_v62 }
 0x5d3   :  { %v3486_v55 = vpop.eup %3485 }
 0x5d4   :  { %v2592_v16 = vmul.f32 %v3486_v55, %v4744_v2  ;;  %v2520_v12 = vpop.xlane.xlu0 %2519 }
 0x5d5   :  { %3487 = vrcp.f32 %v2520_v12 }
 0x5d6   :  { %2624 = vst [vmem:[#allocation14 + $0xa8] sm:$0xff] %v2592_v16 }
 0x5db   :  { %v3488_v7 = vpop.eup %3487 }
 0x5dc   :  { %v2593_v23 = vmul.f32 %v3488_v7, %v4749_v19  ;;  %v2522_v40 = vpop.xlane.xlu1 %2521 }
 0x5dd   :  { %3489 = vrcp.f32 %v2522_v40 }
 0x5de   :  { %2625 = vst [vmem:[#allocation14 + $0xb0] sm:$0xff] %v2593_v23 }
 0x5e3   :  { %v3490_v37 = vpop.eup %3489 }
 0x5e4   :  { %v2594_v42 = vmul.f32 %v3490_v37, %v4754_v8  ;;  %v2524_v47 = vpop.xlane.xlu2 %2523 }
 0x5e5   :  { %3491 = vrcp.f32 %v2524_v47 }
 0x5e6   :  { %2626 = vst [vmem:[#allocation14 + $0xb8] sm:$0xff] %v2594_v42 }
 0x5eb   :  { %v3492_v3 = vpop.eup %3491 }
 0x5ec   :  { %v2595_v4 = vmul.f32 %v3492_v3, %v4759_v53  ;;  %v2526_v5 = vpop.xlane.xlu0 %2525 }
 0x5ed   :  { %3493 = vrcp.f32 %v2526_v5 }
 0x5ee   :  { %2627 = vst [vmem:[#allocation14 + $0xc0] sm:$0xff] %v2595_v4 }
 0x5f3   :  { %v3494_v2 = vpop.eup %3493 }
 0x5f4   :  { %v2596_v44 = vmul.f32 %v3494_v2, %v4764_v22  ;;  %v2528_v17 = vpop.xlane.xlu1 %2527 }
 0x5f5   :  { %3495 = vrcp.f32 %v2528_v17 }
 0x5f6   :  { %2628 = vst [vmem:[#allocation14 + $0xc8] sm:$0xff] %v2596_v44 }
 0x5fb   :  { %v3496_v19 = vpop.eup %3495 }
 0x5fc   :  { %v2597_v18 = vmul.f32 %v3496_v19, %v4769_v15  ;;  %v2530_v63 = vpop.xlane.xlu2 %2529 }
 0x5fd   :  { %3497 = vrcp.f32 %v2530_v63 }
 0x5fe   :  { %2629 = vst [vmem:[#allocation14 + $0xd0] sm:$0xff] %v2597_v18 }
 0x603   :  { %v3498_v8 = vpop.eup %3497 }
 0x604   :  { %v2598_v38 = vmul.f32 %v3498_v8, %v4773_v1  ;;  %v2532_v50 = vpop.xlane.xlu0 %2531 }
 0x605   :  { %3499 = vrcp.f32 %v2532_v50 }
 0x606   :  { %2630 = vst [vmem:[#allocation14 + $0xd8] sm:$0xff] %v2598_v38 }
 0x60b   :  { %v3500_v53 = vpop.eup %3499 }
 0x60c   :  { %v2599_v14 = vmul.f32 %v3500_v53, %v4777_v32  ;;  %v2534_v11 = vpop.xlane.xlu1 %2533 }
 0x60d   :  { %3501 = vrcp.f32 %v2534_v11 }
 0x60e   :  { %2631 = vst [vmem:[#allocation14 + $0xe0] sm:$0xff] %v2599_v14 }
 0x613   :  { %v3502_v22 = vpop.eup %3501 }
 0x614   :  { %v2600_v46 = vmul.f32 %v3502_v22, %v4781_v9  ;;  %v2536_v21 = vpop.xlane.xlu2 %2535 }
 0x615   :  { %3503 = vrcp.f32 %v2536_v21 }
 0x616   :  { %2632 = vst [vmem:[#allocation14 + $0xe8] sm:$0xff] %v2600_v46 }
 0x61b   :  { %v3504_v15 = vpop.eup %3503 }
 0x61c   :  { %v2601_v49 = vmul.f32 %v3504_v15, %v4786_v31  ;;  %v2538_v27 = vpop.xlane.xlu0 %2537 }
 0x61d   :  { %3505 = vrcp.f32 %v2538_v27 }
 0x61e   :  { %2633 = vst [vmem:[#allocation14 + $0xf0] sm:$0xff] %v2601_v49 }
 0x623   :  { %v3506_v1 = vpop.eup %3505 }
 0x624   :  { %v2602_v32 = vmul.f32 %v3506_v1, %v4791_v45 }
 0x626   :  { %2634 = vst [vmem:[#allocation14 + $0xf8] sm:$0xff] %v2602_v32 }
 0x627   :  { %2647 = dma.vmem_to_hbm [thread:$0]  %s2640_s18, 4096, %s2642_s21, [#allocation4], %s3710_s25, %s3710_s25, %s3711_s26  }
 0x628   :  { %3707 = dma.done.wait [#allocation4], 4096  }
 0x629   :  { %3708 = vsyncadd [#allocation4], 4294963200 }
 0x62a   :  { %2652 = vsyncpa [#allocation3], 1 }
 0x62b   :  { %2653 = vsyncpa [#allocation6], 1 }
 0x62c   :  { %2654 = vsyncpa [#allocation9], 1 }
 0x62d   :  { %2655 = vsyncpa [#allocation12], 1 }
 0x62e   :  { %2656 = vsyncpa [#allocation4], 1 }

</bundles_post_ra>
